<compile_context>
chip_gen: v7x
topology: tpu7x:2x2x1
jax: 0.10.0
libtpu: 0.0.40
codegen_flags: <defaults>
</compile_context>

<pallas_src>
import functools
import math

import jax
import jax.numpy as jnp
from jax.experimental import pallas as pl
from jax.experimental.pallas import tpu as pltpu


CFG = dict(vocab=128, max_pos=32, type_vocab=2, hidden=64, n_heads=4,
           head_dim=16, ffn=256, n_layers=2, n_snli_classes=3, multi_task=True)

_CLS_PAD = 128  # lane-dense padded classifier output width


def _gelu(x):
    # TODO(synk): tanh-approx GELU; PyTorch nn.GELU defaults to the exact erf
    # form (activation difference is ~1e-3 level).
    c = math.sqrt(2.0 / math.pi)
    return 0.5 * x * (1.0 + jnp.tanh(c * (x + 0.044715 * x * x * x)))


# ----------------------------- fused kernel --------------------------------

def _fused_bert_kernel(
    emb_ref, bias_ref, emb_g_ref, emb_b_ref,
    wqkv_ref, bqkv_ref, wo_ref, bo_ref, ln1_g_ref, ln1_b_ref,
    w1_ref, b1_ref, w2_ref, b2_ref, ln2_g_ref, ln2_b_ref,
    wcls_ref, bcls_ref,
    out_ref,
    ctx_ref,                                   # VMEM scratch (B, S, H) f32
    *, n_layers, batch, seq, n_heads, head_dim, eps):
    H = n_heads * head_dim

    def layernorm(x, g, b):
        mu = jnp.mean(x, axis=-1, keepdims=True)
        var = jnp.mean((x - mu) ** 2, axis=-1, keepdims=True)
        return (x - mu) * jax.lax.rsqrt(var + eps) * g + b

    def mxu(x_bf, w_bf):
        # bf16 MXU operands (weights pre-cast in prepare_params), fp32 accum.
        return jnp.dot(x_bf, w_bf, preferred_element_type=jnp.float32)

    # Hoisted once: the additive attention bias, materialized at full (B,S,S)
    # so the per-head `s + bias_full` is a plain add (no re-broadcast).
    bias_full = jnp.broadcast_to(bias_ref[...][:, None, :], (batch, seq, seq))

    x = layernorm(emb_ref[...], emb_g_ref[...], emb_b_ref[...])      # (B*S, H)

    for l in range(n_layers):
        # ---- self-attention: fused QKV projection (scale folded into W_q) --
        x_bf = x.astype(jnp.bfloat16)
        qkv = mxu(x_bf, wqkv_ref[l]) + bqkv_ref[l]                   # (B*S, 3H)
        # Tile-aligned split of the row dim only; cast once, reuse per head.
        qkv_bf = qkv.reshape(batch, seq, 3 * H).astype(jnp.bfloat16)  # (B,S,3H)

        for h in range(n_heads):
            q_h = qkv_bf[:, :, h * head_dim:(h + 1) * head_dim]               # (B,S,dH)
            k_h = qkv_bf[:, :, H + h * head_dim:H + (h + 1) * head_dim]
            v_h = qkv_bf[:, :, 2 * H + h * head_dim:2 * H + (h + 1) * head_dim]
            s = jnp.einsum("bqd,bkd->bqk", q_h, k_h,
                           preferred_element_type=jnp.float32)                # (B,S,S)
            s = s + bias_full
            m = jnp.max(s, axis=-1, keepdims=True)
            p = jnp.exp(s - m)
            p = p * pl.reciprocal(jnp.sum(p, axis=-1, keepdims=True),
                                  approx=True)
            ctx_h = jnp.einsum("bqk,bkd->bqd", p.astype(jnp.bfloat16), v_h,
                               preferred_element_type=jnp.float32)            # (B,S,dH)
            # Write straight into the VMEM scratch (no concatenates).
            ctx_ref[:, :, h * head_dim:(h + 1) * head_dim] = ctx_h

        ctx_bf = ctx_ref[...].reshape(batch * seq, H).astype(jnp.bfloat16)
        attn_out = mxu(ctx_bf, wo_ref[l]) + bo_ref[l]
        x = layernorm(x + attn_out, ln1_g_ref[l], ln1_b_ref[l])

        # ---- feed-forward ----
        x_bf = x.astype(jnp.bfloat16)
        h1 = _gelu(mxu(x_bf, w1_ref[l]) + b1_ref[l])
        h2 = mxu(h1.astype(jnp.bfloat16), w2_ref[l]) + b2_ref[l]
        x = layernorm(x + h2, ln2_g_ref[l], ln2_b_ref[l])

    # ---- [CLS] pooling (reshape view) + lane-dense padded SNLI classifier --
    cls = x.reshape(batch, seq, H)[:, 0, :]                           # (B, H)
    out_ref[...] = (mxu(cls.astype(jnp.bfloat16), wcls_ref[...])
                    + bcls_ref[...]).astype(out_ref.dtype)


def _full_spec(shape):
    # Whole-array block (exempt from the (8,128) divisibility rule).
    return pl.BlockSpec(shape, lambda i, _r=len(shape): (0,) * _r)


# ----------------------------- model (glue) --------------------------------

def init_params(key, cfg):
    H, F = cfg["hidden"], cfg["ffn"]
    std = 0.02
    keys = iter(jax.random.split(key, 64))
    nrm = lambda shape: (std * jax.random.normal(next(keys), shape)).astype(jnp.float32)
    p = {
        "word_emb": nrm((cfg["vocab"], H)),
        "pos_emb": nrm((cfg["max_pos"], H)),
        "type_emb": nrm((cfg["type_vocab"], H)),
        "emb_ln_g": jnp.ones((H,), jnp.float32),
        "emb_ln_b": jnp.zeros((H,), jnp.float32),
        "layers": [],
        "fc_snli_w": nrm((H, cfg["n_snli_classes"])),
        "fc_snli_b": jnp.zeros((cfg["n_snli_classes"],), jnp.float32),
    }
    if cfg["multi_task"]:  # present as parameters, unused in the eval forward
        p["fc_sst2_w"], p["fc_sst2_b"] = nrm((H, 2)), jnp.zeros((2,), jnp.float32)
        p["fc_stsb_w"], p["fc_stsb_b"] = nrm((H, 1)), jnp.zeros((1,), jnp.float32)
        p["fc_qnli_w"], p["fc_qnli_b"] = nrm((H, 2)), jnp.zeros((2,), jnp.float32)
    for _ in range(cfg["n_layers"]):
        p["layers"].append({
            "wq": nrm((H, H)), "bq": jnp.zeros((H,), jnp.float32),
            "wk": nrm((H, H)), "bk": jnp.zeros((H,), jnp.float32),
            "wv": nrm((H, H)), "bv": jnp.zeros((H,), jnp.float32),
            "wo": nrm((H, H)), "bo": jnp.zeros((H,), jnp.float32),
            "ln1_g": jnp.ones((H,), jnp.float32), "ln1_b": jnp.zeros((H,), jnp.float32),
            "w1": nrm((H, F)), "b1": jnp.zeros((F,), jnp.float32),
            "w2": nrm((F, H)), "b2": jnp.zeros((H,), jnp.float32),
            "ln2_g": jnp.ones((H,), jnp.float32), "ln2_b": jnp.zeros((H,), jnp.float32),
        })
    return p


def _stack(layers, name):
    return jnp.stack([lp[name] for lp in layers], axis=0)


def prepare_params(params, cfg):
    """One-time packing of weights into the kernel layout (off the forward path)."""
    H, dH, NC = cfg["hidden"], cfg["head_dim"], cfg["n_snli_classes"]
    scale = 1.0 / math.sqrt(dH)
    lyr = params["layers"]
    # Fold 1/sqrt(head_dim) into the Q projection (weights AND bias).
    wq = _stack(lyr, "wq") * scale
    bq = _stack(lyr, "bq") * scale
    wqkv = jnp.concatenate([wq, _stack(lyr, "wk"), _stack(lyr, "wv")],
                           axis=-1).astype(jnp.bfloat16)              # (L, H, 3H)
    bqkv = jnp.concatenate([bq, _stack(lyr, "bk"), _stack(lyr, "bv")],
                           axis=-1)[:, None, :]                       # (L, 1, 3H)
    # Pad the 3-class head to a lane-dense 128-wide output; slice outside.
    wcls = jnp.zeros((H, _CLS_PAD), jnp.float32)
    wcls = wcls.at[:, :NC].set(params["fc_snli_w"]).astype(jnp.bfloat16)
    bcls = jnp.zeros((1, _CLS_PAD), jnp.float32).at[:, :NC].set(params["fc_snli_b"])
    return {
        "word_emb": params["word_emb"],
        "pos_emb": params["pos_emb"],
        "type_emb": params["type_emb"],
        "emb_ln_g": params["emb_ln_g"].reshape(1, H),
        "emb_ln_b": params["emb_ln_b"].reshape(1, H),
        "wqkv": wqkv, "bqkv": bqkv,
        "wo": _stack(lyr, "wo").astype(jnp.bfloat16),
        "bo": _stack(lyr, "bo")[:, None, :],
        "ln1_g": _stack(lyr, "ln1_g")[:, None, :],
        "ln1_b": _stack(lyr, "ln1_b")[:, None, :],
        "w1": _stack(lyr, "w1").astype(jnp.bfloat16),
        "b1": _stack(lyr, "b1")[:, None, :],
        "w2": _stack(lyr, "w2").astype(jnp.bfloat16),
        "b2": _stack(lyr, "b2")[:, None, :],
        "ln2_g": _stack(lyr, "ln2_g")[:, None, :],
        "ln2_b": _stack(lyr, "ln2_b")[:, None, :],
        "wcls": wcls, "bcls": bcls,
    }


def multi_task_bert_forward(prepped, snli_token_ids, snli_seg_ids, snli_mask_ids,
                            cfg=CFG):
    """Eval-mode forward of MultiTaskBert (self.training == False)."""
    B, S = snli_token_ids.shape
    H, nH, dH = cfg["hidden"], cfg["n_heads"], cfg["head_dim"]
    L, NC, F = cfg["n_layers"], cfg["n_snli_classes"], cfg["ffn"]
    BS = B * S

    # Embedding gathers are data-dependent lookups; they stay in XLA. Every
    # dense op afterwards is fused into the single Pallas kernel below.
    we = jnp.take(prepped["word_emb"], snli_token_ids, axis=0)        # (B,S,H)
    pe = prepped["pos_emb"][:S][None, :, :]                           # (1,S,H)
    te = jnp.take(prepped["type_emb"], snli_seg_ids, axis=0)          # (B,S,H)
    emb = (we + pe + te).reshape(BS, H).astype(jnp.float32)
    attn_bias = (1.0 - snli_mask_ids.astype(jnp.float32)) * (-1e9)    # (B,S)

    inputs = (emb, attn_bias,
              prepped["emb_ln_g"], prepped["emb_ln_b"],
              prepped["wqkv"], prepped["bqkv"], prepped["wo"], prepped["bo"],
              prepped["ln1_g"], prepped["ln1_b"],
              prepped["w1"], prepped["b1"], prepped["w2"], prepped["b2"],
              prepped["ln2_g"], prepped["ln2_b"],
              prepped["wcls"], prepped["bcls"])

    kernel = functools.partial(_fused_bert_kernel, n_layers=L, batch=B, seq=S,
                               n_heads=nH, head_dim=dH, eps=1e-12)

    # Footprint-derived VMEM limit + cost estimate (advisory).
    in_bytes = sum(int(a.size) * a.dtype.itemsize for a in inputs)
    out_bytes = B * _CLS_PAD * 4
    flops_layer = (2 * BS * H * (3 * H)        # fused QKV
                   + 4 * B * nH * S * S * dH   # scores + context
                   + 2 * BS * H * H            # output projection
                   + 4 * BS * H * F)           # FFN (two matmuls)
    cost = pl.CostEstimate(
        flops=L * flops_layer + 2 * B * H * _CLS_PAD,
        transcendentals=L * (B * nH * S * S + BS * F),  # softmax exp + GELU tanh
        bytes_accessed=in_bytes + out_bytes)

    logits_padded = pl.pallas_call(
        kernel,
        out_shape=jax.ShapeDtypeStruct((B, _CLS_PAD), jnp.float32),
        grid=(1,),
        in_specs=[_full_spec(a.shape) for a in inputs],
        out_specs=_full_spec((B, _CLS_PAD)),
        scratch_shapes=[pltpu.VMEM((B, S, H), jnp.float32)],   # per-layer ctx
        compiler_params=pltpu.CompilerParams(
            dimension_semantics=("arbitrary",),
            vmem_limit_bytes=int(2 * (in_bytes + out_bytes)) + (16 << 20)),
        cost_estimate=cost,
    )(*inputs)

    snli_output = logits_padded[:, :NC]
    # dropout_emb is identity in eval mode.
    # TODO(synk): torch.cuda.empty_cache() / .to(device) have no Pallas analogue.
    return (snli_output, None, None, None)


if __name__ == "__main__":
    key = jax.random.PRNGKey(0)
    pkey, tkey = jax.random.split(key)
    params = init_params(pkey, CFG)
    prepped = prepare_params(params, CFG)   # one-time weight packing

    B, S = 2, 8
    snli_token_ids = jax.random.randint(tkey, (B, S), 0, CFG["vocab"], dtype=jnp.int32)
    snli_seg_ids = jnp.concatenate(
        [jnp.zeros((B, S // 2), jnp.int32), jnp.ones((B, S // 2), jnp.int32)], axis=1)
    snli_mask_ids = jnp.ones((B, S), jnp.int32).at[:, -1].set(0)  # last token padded

    out = multi_task_bert_forward(prepped, snli_token_ids, snli_seg_ids, snli_mask_ids)
    snli_logits = jax.block_until_ready(out[0])
    assert snli_logits.shape == (B, CFG["n_snli_classes"])
    assert out[1] is None and out[2] is None and out[3] is None
    print("KERNEL_OK")
</pallas_src>

<mosaic_0001>
module attributes {stable_mosaic.version = 11 : i64} {
  func.func @_fused_bert_kernel(%arg0: i32, %arg1: memref<16x64xf32, #tpu.memory_space<vmem>>, %arg2: memref<2x8xf32, #tpu.memory_space<vmem>>, %arg3: memref<1x64xf32, #tpu.memory_space<vmem>>, %arg4: memref<1x64xf32, #tpu.memory_space<vmem>>, %arg5: memref<2x64x192xbf16, #tpu.memory_space<vmem>>, %arg6: memref<2x1x192xf32, #tpu.memory_space<vmem>>, %arg7: memref<2x64x64xbf16, #tpu.memory_space<vmem>>, %arg8: memref<2x1x64xf32, #tpu.memory_space<vmem>>, %arg9: memref<2x1x64xf32, #tpu.memory_space<vmem>>, %arg10: memref<2x1x64xf32, #tpu.memory_space<vmem>>, %arg11: memref<2x64x256xbf16, #tpu.memory_space<vmem>>, %arg12: memref<2x1x256xf32, #tpu.memory_space<vmem>>, %arg13: memref<2x256x64xbf16, #tpu.memory_space<vmem>>, %arg14: memref<2x1x64xf32, #tpu.memory_space<vmem>>, %arg15: memref<2x1x64xf32, #tpu.memory_space<vmem>>, %arg16: memref<2x1x64xf32, #tpu.memory_space<vmem>>, %arg17: memref<64x128xbf16, #tpu.memory_space<vmem>>, %arg18: memref<1x128xf32, #tpu.memory_space<vmem>>, %arg19: memref<2x128xf32, #tpu.memory_space<vmem>>, %arg20: memref<2x8x64xf32, #tpu.memory_space<vmem>>) attributes {dimension_semantics = [#tpu.dimension_semantics<arbitrary>], iteration_bounds = array<i64: 1>, scalar_prefetch = 0 : i64, scratch_operands = 1 : i64, tpu.core_type = #tpu.core_type<tc>, window_params = [{pipeline_mode = #tpu.pipeline_mode<synchronous>, transform_indices = @transform_0, window_bounds = array<i64: 16, 64>}, {pipeline_mode = #tpu.pipeline_mode<synchronous>, transform_indices = @transform_1, window_bounds = array<i64: 2, 8>}, {pipeline_mode = #tpu.pipeline_mode<synchronous>, transform_indices = @transform_2, window_bounds = array<i64: 1, 64>}, {pipeline_mode = #tpu.pipeline_mode<synchronous>, transform_indices = @transform_3, window_bounds = array<i64: 1, 64>}, {pipeline_mode = #tpu.pipeline_mode<synchronous>, transform_indices = @transform_4, window_bounds = array<i64: 2, 64, 192>}, {pipeline_mode = #tpu.pipeline_mode<synchronous>, transform_indices = @transform_5, window_bounds = array<i64: 2, 1, 192>}, {pipeline_mode = #tpu.pipeline_mode<synchronous>, transform_indices = @transform_6, window_bounds = array<i64: 2, 64, 64>}, {pipeline_mode = #tpu.pipeline_mode<synchronous>, transform_indices = @transform_7, window_bounds = array<i64: 2, 1, 64>}, {pipeline_mode = #tpu.pipeline_mode<synchronous>, transform_indices = @transform_8, window_bounds = array<i64: 2, 1, 64>}, {pipeline_mode = #tpu.pipeline_mode<synchronous>, transform_indices = @transform_9, window_bounds = array<i64: 2, 1, 64>}, {pipeline_mode = #tpu.pipeline_mode<synchronous>, transform_indices = @transform_10, window_bounds = array<i64: 2, 64, 256>}, {pipeline_mode = #tpu.pipeline_mode<synchronous>, transform_indices = @transform_11, window_bounds = array<i64: 2, 1, 256>}, {pipeline_mode = #tpu.pipeline_mode<synchronous>, transform_indices = @transform_12, window_bounds = array<i64: 2, 256, 64>}, {pipeline_mode = #tpu.pipeline_mode<synchronous>, transform_indices = @transform_13, window_bounds = array<i64: 2, 1, 64>}, {pipeline_mode = #tpu.pipeline_mode<synchronous>, transform_indices = @transform_14, window_bounds = array<i64: 2, 1, 64>}, {pipeline_mode = #tpu.pipeline_mode<synchronous>, transform_indices = @transform_15, window_bounds = array<i64: 2, 1, 64>}, {pipeline_mode = #tpu.pipeline_mode<synchronous>, transform_indices = @transform_16, window_bounds = array<i64: 64, 128>}, {pipeline_mode = #tpu.pipeline_mode<synchronous>, transform_indices = @transform_17, window_bounds = array<i64: 1, 128>}, {pipeline_mode = #tpu.pipeline_mode<synchronous>, transform_indices = @transform_18, window_bounds = array<i64: 2, 128>}]} {
    %c0 = arith.constant 0 : index
    %c0_0 = arith.constant 0 : index
    %0 = vector.load %arg2[%c0, %c0_0] : memref<2x8xf32, #tpu.memory_space<vmem>>, vector<2x8xf32>
    %1 = vector.shape_cast %0 : vector<2x8xf32> to vector<2x1x8xf32>
    %2 = vector.shape_cast %1 : vector<2x1x8xf32> to vector<2x1x8xf32>
    %3 = vector.broadcast %2 : vector<2x1x8xf32> to vector<2x8x8xf32>
    %c0_1 = arith.constant 0 : index
    %c0_2 = arith.constant 0 : index
    %4 = vector.load %arg1[%c0_1, %c0_2] : memref<16x64xf32, #tpu.memory_space<vmem>>, vector<16x64xf32>
    %c0_3 = arith.constant 0 : index
    %c0_4 = arith.constant 0 : index
    %5 = vector.load %arg3[%c0_3, %c0_4] : memref<1x64xf32, #tpu.memory_space<vmem>>, vector<1x64xf32>
    %c0_5 = arith.constant 0 : index
    %c0_6 = arith.constant 0 : index
    %6 = vector.load %arg4[%c0_5, %c0_6] : memref<1x64xf32, #tpu.memory_space<vmem>>, vector<1x64xf32>
    %cst = arith.constant dense<0.000000e+00> : vector<16xf32>
    %7 = vector.multi_reduction <add>, %4, %cst [1] : vector<16x64xf32> to vector<16xf32>
    %8 = vector.shape_cast %7 : vector<16xf32> to vector<16x1xf32>
    %cst_7 = arith.constant 6.400000e+01 : f32
    %9 = vector.broadcast %cst_7 : f32 to vector<16x1xf32>
    %10 = arith.divf %8, %9 : vector<16x1xf32>
    %11 = vector.broadcast %10 : vector<16x1xf32> to vector<16x64xf32>
    %12 = arith.subf %4, %11 : vector<16x64xf32>
    %13 = arith.mulf %12, %12 : vector<16x64xf32>
    %cst_8 = arith.constant dense<0.000000e+00> : vector<16xf32>
    %14 = vector.multi_reduction <add>, %13, %cst_8 [1] : vector<16x64xf32> to vector<16xf32>
    %15 = vector.shape_cast %14 : vector<16xf32> to vector<16x1xf32>
    %cst_9 = arith.constant 6.400000e+01 : f32
    %16 = vector.broadcast %cst_9 : f32 to vector<16x1xf32>
    %17 = arith.divf %15, %16 : vector<16x1xf32>
    %18 = vector.broadcast %10 : vector<16x1xf32> to vector<16x64xf32>
    %19 = arith.subf %4, %18 : vector<16x64xf32>
    %cst_10 = arith.constant 9.99999996E-13 : f32
    %20 = vector.broadcast %cst_10 : f32 to vector<16x1xf32>
    %21 = arith.addf %17, %20 : vector<16x1xf32>
    %22 = math.rsqrt %21 : vector<16x1xf32>
    %23 = vector.broadcast %22 : vector<16x1xf32> to vector<16x64xf32>
    %24 = arith.mulf %19, %23 : vector<16x64xf32>
    %25 = vector.broadcast %5 : vector<1x64xf32> to vector<16x64xf32>
    %26 = arith.mulf %24, %25 : vector<16x64xf32>
    %27 = vector.broadcast %6 : vector<1x64xf32> to vector<16x64xf32>
    %28 = arith.addf %26, %27 : vector<16x64xf32>
    %29 = arith.truncf %28 : vector<16x64xf32> to vector<16x64xbf16>
    %c0_11 = arith.constant 0 : index
    %c0_12 = arith.constant 0 : index
    %c0_13 = arith.constant 0 : index
    %30 = vector.load %arg5[%c0_11, %c0_12, %c0_13] : memref<2x64x192xbf16, #tpu.memory_space<vmem>>, vector<1x64x192xbf16>
    %31 = vector.shape_cast %30 : vector<1x64x192xbf16> to vector<64x192xbf16>
    %cst_14 = arith.constant dense<0.000000e+00> : vector<16x192xf32>
    %32 = tpu.matmul %29, %31, %cst_14 {dimension_numbers = #tpu.dot_dimension_numbers<[1], [0], [0], [1], [0, 0, 1, 1], [], []>} : vector<16x64xbf16>, vector<64x192xbf16>, vector<16x192xf32> -> vector<16x192xf32>
    %c0_15 = arith.constant 0 : index
    %c0_16 = arith.constant 0 : index
    %c0_17 = arith.constant 0 : index
    %33 = vector.load %arg6[%c0_15, %c0_16, %c0_17] : memref<2x1x192xf32, #tpu.memory_space<vmem>>, vector<1x1x192xf32>
    %34 = vector.shape_cast %33 : vector<1x1x192xf32> to vector<1x192xf32>
    %35 = vector.broadcast %34 : vector<1x192xf32> to vector<16x192xf32>
    %36 = arith.addf %32, %35 : vector<16x192xf32>
    %37 = vector.shape_cast %36 : vector<16x192xf32> to vector<2x8x192xf32>
    %38 = arith.truncf %37 : vector<2x8x192xf32> to vector<2x8x192xbf16>
    %39 = vector.extract_strided_slice %38 {offsets = [0, 0, 0], sizes = [2, 8, 16], strides = [1, 1, 1]} : vector<2x8x192xbf16> to vector<2x8x16xbf16>
    %40 = vector.extract_strided_slice %38 {offsets = [0, 0, 64], sizes = [2, 8, 16], strides = [1, 1, 1]} : vector<2x8x192xbf16> to vector<2x8x16xbf16>
    %41 = vector.extract_strided_slice %38 {offsets = [0, 0, 128], sizes = [2, 8, 16], strides = [1, 1, 1]} : vector<2x8x192xbf16> to vector<2x8x16xbf16>
    "tpu.trace_start"() <{level = 10 : i32, message = "bqd,bkd->bqk"}> : () -> ()
    %cst_18 = arith.constant dense<0.000000e+00> : vector<2x8x8xf32>
    %42 = tpu.matmul %39, %40, %cst_18 {dimension_numbers = #tpu.dot_dimension_numbers<[2], [2], [1], [1], [0, 0, 0, 1, 1, 1], [0], [0]>} : vector<2x8x16xbf16>, vector<2x8x16xbf16>, vector<2x8x8xf32> -> vector<2x8x8xf32>
    "tpu.trace_stop"() : () -> ()
    %43 = arith.addf %42, %3 : vector<2x8x8xf32>
    %cst_19 = arith.constant dense<0xFF800000> : vector<2x8xf32>
    %44 = vector.multi_reduction <maximumf>, %43, %cst_19 [2] : vector<2x8x8xf32> to vector<2x8xf32>
    %45 = vector.shape_cast %44 : vector<2x8xf32> to vector<2x8x1xf32>
    %46 = vector.broadcast %45 : vector<2x8x1xf32> to vector<2x8x8xf32>
    %47 = arith.subf %43, %46 : vector<2x8x8xf32>
    %48 = math.exp %47 : vector<2x8x8xf32>
    %cst_20 = arith.constant dense<0.000000e+00> : vector<2x8xf32>
    %49 = vector.multi_reduction <add>, %48, %cst_20 [2] : vector<2x8x8xf32> to vector<2x8xf32>
    %50 = vector.shape_cast %49 : vector<2x8xf32> to vector<2x8x1xf32>
    %51 = tpu.reciprocal %50 {approx = true} : vector<2x8x1xf32> -> vector<2x8x1xf32>
    %52 = vector.broadcast %51 : vector<2x8x1xf32> to vector<2x8x8xf32>
    %53 = arith.mulf %48, %52 : vector<2x8x8xf32>
    %54 = arith.truncf %53 : vector<2x8x8xf32> to vector<2x8x8xbf16>
    "tpu.trace_start"() <{level = 10 : i32, message = "bqk,bkd->bqd"}> : () -> ()
    %cst_21 = arith.constant dense<0.000000e+00> : vector<2x8x16xf32>
    %55 = tpu.matmul %54, %41, %cst_21 {dimension_numbers = #tpu.dot_dimension_numbers<[2], [1], [1], [2], [0, 0, 0, 1, 1, 2], [0], [0]>} : vector<2x8x8xbf16>, vector<2x8x16xbf16>, vector<2x8x16xf32> -> vector<2x8x16xf32>
    "tpu.trace_stop"() : () -> ()
    %c0_22 = arith.constant 0 : index
    %c0_23 = arith.constant 0 : index
    %c0_24 = arith.constant 0 : index
    %56 = vector.load %arg20[%c0_22, %c0_23, %c0_24] : memref<2x8x64xf32, #tpu.memory_space<vmem>>, vector<2x8x16xf32>
    tpu.vector_store %arg20[%c0_22, %c0_23, %c0_24], %55 {strides = array<i32>} : memref<2x8x64xf32, #tpu.memory_space<vmem>>, vector<2x8x16xf32>,
    %57 = vector.extract_strided_slice %38 {offsets = [0, 0, 16], sizes = [2, 8, 16], strides = [1, 1, 1]} : vector<2x8x192xbf16> to vector<2x8x16xbf16>
    %58 = vector.extract_strided_slice %38 {offsets = [0, 0, 80], sizes = [2, 8, 16], strides = [1, 1, 1]} : vector<2x8x192xbf16> to vector<2x8x16xbf16>
    %59 = vector.extract_strided_slice %38 {offsets = [0, 0, 144], sizes = [2, 8, 16], strides = [1, 1, 1]} : vector<2x8x192xbf16> to vector<2x8x16xbf16>
    "tpu.trace_start"() <{level = 10 : i32, message = "bqd,bkd->bqk"}> : () -> ()
    %cst_25 = arith.constant dense<0.000000e+00> : vector<2x8x8xf32>
    %60 = tpu.matmul %57, %58, %cst_25 {dimension_numbers = #tpu.dot_dimension_numbers<[2], [2], [1], [1], [0, 0, 0, 1, 1, 1], [0], [0]>} : vector<2x8x16xbf16>, vector<2x8x16xbf16>, vector<2x8x8xf32> -> vector<2x8x8xf32>
    "tpu.trace_stop"() : () -> ()
    %61 = arith.addf %60, %3 : vector<2x8x8xf32>
    %cst_26 = arith.constant dense<0xFF800000> : vector<2x8xf32>
    %62 = vector.multi_reduction <maximumf>, %61, %cst_26 [2] : vector<2x8x8xf32> to vector<2x8xf32>
    %63 = vector.shape_cast %62 : vector<2x8xf32> to vector<2x8x1xf32>
    %64 = vector.broadcast %63 : vector<2x8x1xf32> to vector<2x8x8xf32>
    %65 = arith.subf %61, %64 : vector<2x8x8xf32>
    %66 = math.exp %65 : vector<2x8x8xf32>
    %cst_27 = arith.constant dense<0.000000e+00> : vector<2x8xf32>
    %67 = vector.multi_reduction <add>, %66, %cst_27 [2] : vector<2x8x8xf32> to vector<2x8xf32>
    %68 = vector.shape_cast %67 : vector<2x8xf32> to vector<2x8x1xf32>
    %69 = tpu.reciprocal %68 {approx = true} : vector<2x8x1xf32> -> vector<2x8x1xf32>
    %70 = vector.broadcast %69 : vector<2x8x1xf32> to vector<2x8x8xf32>
    %71 = arith.mulf %66, %70 : vector<2x8x8xf32>
    %72 = arith.truncf %71 : vector<2x8x8xf32> to vector<2x8x8xbf16>
    "tpu.trace_start"() <{level = 10 : i32, message = "bqk,bkd->bqd"}> : () -> ()
    %cst_28 = arith.constant dense<0.000000e+00> : vector<2x8x16xf32>
    %73 = tpu.matmul %72, %59, %cst_28 {dimension_numbers = #tpu.dot_dimension_numbers<[2], [1], [1], [2], [0, 0, 0, 1, 1, 2], [0], [0]>} : vector<2x8x8xbf16>, vector<2x8x16xbf16>, vector<2x8x16xf32> -> vector<2x8x16xf32>
    "tpu.trace_stop"() : () -> ()
    %c0_29 = arith.constant 0 : index
    %c0_30 = arith.constant 0 : index
    %c16 = arith.constant 16 : index
    %74 = vector.load %arg20[%c0_29, %c0_30, %c16] : memref<2x8x64xf32, #tpu.memory_space<vmem>>, vector<2x8x16xf32>
    tpu.vector_store %arg20[%c0_29, %c0_30, %c16], %73 {strides = array<i32>} : memref<2x8x64xf32, #tpu.memory_space<vmem>>, vector<2x8x16xf32>,
    %75 = vector.extract_strided_slice %38 {offsets = [0, 0, 32], sizes = [2, 8, 16], strides = [1, 1, 1]} : vector<2x8x192xbf16> to vector<2x8x16xbf16>
    %76 = vector.extract_strided_slice %38 {offsets = [0, 0, 96], sizes = [2, 8, 16], strides = [1, 1, 1]} : vector<2x8x192xbf16> to vector<2x8x16xbf16>
    %77 = vector.extract_strided_slice %38 {offsets = [0, 0, 160], sizes = [2, 8, 16], strides = [1, 1, 1]} : vector<2x8x192xbf16> to vector<2x8x16xbf16>
    "tpu.trace_start"() <{level = 10 : i32, message = "bqd,bkd->bqk"}> : () -> ()
    %cst_31 = arith.constant dense<0.000000e+00> : vector<2x8x8xf32>
    %78 = tpu.matmul %75, %76, %cst_31 {dimension_numbers = #tpu.dot_dimension_numbers<[2], [2], [1], [1], [0, 0, 0, 1, 1, 1], [0], [0]>} : vector<2x8x16xbf16>, vector<2x8x16xbf16>, vector<2x8x8xf32> -> vector<2x8x8xf32>
    "tpu.trace_stop"() : () -> ()
    %79 = arith.addf %78, %3 : vector<2x8x8xf32>
    %cst_32 = arith.constant dense<0xFF800000> : vector<2x8xf32>
    %80 = vector.multi_reduction <maximumf>, %79, %cst_32 [2] : vector<2x8x8xf32> to vector<2x8xf32>
    %81 = vector.shape_cast %80 : vector<2x8xf32> to vector<2x8x1xf32>
    %82 = vector.broadcast %81 : vector<2x8x1xf32> to vector<2x8x8xf32>
    %83 = arith.subf %79, %82 : vector<2x8x8xf32>
    %84 = math.exp %83 : vector<2x8x8xf32>
    %cst_33 = arith.constant dense<0.000000e+00> : vector<2x8xf32>
    %85 = vector.multi_reduction <add>, %84, %cst_33 [2] : vector<2x8x8xf32> to vector<2x8xf32>
    %86 = vector.shape_cast %85 : vector<2x8xf32> to vector<2x8x1xf32>
    %87 = tpu.reciprocal %86 {approx = true} : vector<2x8x1xf32> -> vector<2x8x1xf32>
    %88 = vector.broadcast %87 : vector<2x8x1xf32> to vector<2x8x8xf32>
    %89 = arith.mulf %84, %88 : vector<2x8x8xf32>
    %90 = arith.truncf %89 : vector<2x8x8xf32> to vector<2x8x8xbf16>
    "tpu.trace_start"() <{level = 10 : i32, message = "bqk,bkd->bqd"}> : () -> ()
    %cst_34 = arith.constant dense<0.000000e+00> : vector<2x8x16xf32>
    %91 = tpu.matmul %90, %77, %cst_34 {dimension_numbers = #tpu.dot_dimension_numbers<[2], [1], [1], [2], [0, 0, 0, 1, 1, 2], [0], [0]>} : vector<2x8x8xbf16>, vector<2x8x16xbf16>, vector<2x8x16xf32> -> vector<2x8x16xf32>
    "tpu.trace_stop"() : () -> ()
    %c0_35 = arith.constant 0 : index
    %c0_36 = arith.constant 0 : index
    %c32 = arith.constant 32 : index
    %92 = vector.load %arg20[%c0_35, %c0_36, %c32] : memref<2x8x64xf32, #tpu.memory_space<vmem>>, vector<2x8x16xf32>
    tpu.vector_store %arg20[%c0_35, %c0_36, %c32], %91 {strides = array<i32>} : memref<2x8x64xf32, #tpu.memory_space<vmem>>, vector<2x8x16xf32>,
    %93 = vector.extract_strided_slice %38 {offsets = [0, 0, 48], sizes = [2, 8, 16], strides = [1, 1, 1]} : vector<2x8x192xbf16> to vector<2x8x16xbf16>
    %94 = vector.extract_strided_slice %38 {offsets = [0, 0, 112], sizes = [2, 8, 16], strides = [1, 1, 1]} : vector<2x8x192xbf16> to vector<2x8x16xbf16>
    %95 = vector.extract_strided_slice %38 {offsets = [0, 0, 176], sizes = [2, 8, 16], strides = [1, 1, 1]} : vector<2x8x192xbf16> to vector<2x8x16xbf16>
    "tpu.trace_start"() <{level = 10 : i32, message = "bqd,bkd->bqk"}> : () -> ()
    %cst_37 = arith.constant dense<0.000000e+00> : vector<2x8x8xf32>
    %96 = tpu.matmul %93, %94, %cst_37 {dimension_numbers = #tpu.dot_dimension_numbers<[2], [2], [1], [1], [0, 0, 0, 1, 1, 1], [0], [0]>} : vector<2x8x16xbf16>, vector<2x8x16xbf16>, vector<2x8x8xf32> -> vector<2x8x8xf32>
    "tpu.trace_stop"() : () -> ()
    %97 = arith.addf %96, %3 : vector<2x8x8xf32>
    %cst_38 = arith.constant dense<0xFF800000> : vector<2x8xf32>
    %98 = vector.multi_reduction <maximumf>, %97, %cst_38 [2] : vector<2x8x8xf32> to vector<2x8xf32>
    %99 = vector.shape_cast %98 : vector<2x8xf32> to vector<2x8x1xf32>
    %100 = vector.broadcast %99 : vector<2x8x1xf32> to vector<2x8x8xf32>
    %101 = arith.subf %97, %100 : vector<2x8x8xf32>
    %102 = math.exp %101 : vector<2x8x8xf32>
    %cst_39 = arith.constant dense<0.000000e+00> : vector<2x8xf32>
    %103 = vector.multi_reduction <add>, %102, %cst_39 [2] : vector<2x8x8xf32> to vector<2x8xf32>
    %104 = vector.shape_cast %103 : vector<2x8xf32> to vector<2x8x1xf32>
    %105 = tpu.reciprocal %104 {approx = true} : vector<2x8x1xf32> -> vector<2x8x1xf32>
    %106 = vector.broadcast %105 : vector<2x8x1xf32> to vector<2x8x8xf32>
    %107 = arith.mulf %102, %106 : vector<2x8x8xf32>
    %108 = arith.truncf %107 : vector<2x8x8xf32> to vector<2x8x8xbf16>
    "tpu.trace_start"() <{level = 10 : i32, message = "bqk,bkd->bqd"}> : () -> ()
    %cst_40 = arith.constant dense<0.000000e+00> : vector<2x8x16xf32>
    %109 = tpu.matmul %108, %95, %cst_40 {dimension_numbers = #tpu.dot_dimension_numbers<[2], [1], [1], [2], [0, 0, 0, 1, 1, 2], [0], [0]>} : vector<2x8x8xbf16>, vector<2x8x16xbf16>, vector<2x8x16xf32> -> vector<2x8x16xf32>
    "tpu.trace_stop"() : () -> ()
    %c0_41 = arith.constant 0 : index
    %c0_42 = arith.constant 0 : index
    %c48 = arith.constant 48 : index
    %110 = vector.load %arg20[%c0_41, %c0_42, %c48] : memref<2x8x64xf32, #tpu.memory_space<vmem>>, vector<2x8x16xf32>
    tpu.vector_store %arg20[%c0_41, %c0_42, %c48], %109 {strides = array<i32>} : memref<2x8x64xf32, #tpu.memory_space<vmem>>, vector<2x8x16xf32>,
    %c0_43 = arith.constant 0 : index
    %c0_44 = arith.constant 0 : index
    %c0_45 = arith.constant 0 : index
    %111 = vector.load %arg20[%c0_43, %c0_44, %c0_45] : memref<2x8x64xf32, #tpu.memory_space<vmem>>, vector<2x8x64xf32>
    %112 = vector.shape_cast %111 : vector<2x8x64xf32> to vector<16x64xf32>
    %113 = arith.truncf %112 : vector<16x64xf32> to vector<16x64xbf16>
    %c0_46 = arith.constant 0 : index
    %c0_47 = arith.constant 0 : index
    %c0_48 = arith.constant 0 : index
    %114 = vector.load %arg7[%c0_46, %c0_47, %c0_48] : memref<2x64x64xbf16, #tpu.memory_space<vmem>>, vector<1x64x64xbf16>
    %115 = vector.shape_cast %114 : vector<1x64x64xbf16> to vector<64x64xbf16>
    %cst_49 = arith.constant dense<0.000000e+00> : vector<16x64xf32>
    %116 = tpu.matmul %113, %115, %cst_49 {dimension_numbers = #tpu.dot_dimension_numbers<[1], [0], [0], [1], [0, 0, 1, 1], [], []>} : vector<16x64xbf16>, vector<64x64xbf16>, vector<16x64xf32> -> vector<16x64xf32>
    %c0_50 = arith.constant 0 : index
    %c0_51 = arith.constant 0 : index
    %c0_52 = arith.constant 0 : index
    %117 = vector.load %arg8[%c0_50, %c0_51, %c0_52] : memref<2x1x64xf32, #tpu.memory_space<vmem>>, vector<1x1x64xf32>
    %118 = vector.shape_cast %117 : vector<1x1x64xf32> to vector<1x64xf32>
    %119 = vector.broadcast %118 : vector<1x64xf32> to vector<16x64xf32>
    %120 = arith.addf %116, %119 : vector<16x64xf32>
    %121 = arith.addf %28, %120 : vector<16x64xf32>
    %c0_53 = arith.constant 0 : index
    %c0_54 = arith.constant 0 : index
    %c0_55 = arith.constant 0 : index
    %122 = vector.load %arg9[%c0_53, %c0_54, %c0_55] : memref<2x1x64xf32, #tpu.memory_space<vmem>>, vector<1x1x64xf32>
    %123 = vector.shape_cast %122 : vector<1x1x64xf32> to vector<1x64xf32>
    %c0_56 = arith.constant 0 : index
    %c0_57 = arith.constant 0 : index
    %c0_58 = arith.constant 0 : index
    %124 = vector.load %arg10[%c0_56, %c0_57, %c0_58] : memref<2x1x64xf32, #tpu.memory_space<vmem>>, vector<1x1x64xf32>
    %125 = vector.shape_cast %124 : vector<1x1x64xf32> to vector<1x64xf32>
    %cst_59 = arith.constant dense<0.000000e+00> : vector<16xf32>
    %126 = vector.multi_reduction <add>, %121, %cst_59 [1] : vector<16x64xf32> to vector<16xf32>
    %127 = vector.shape_cast %126 : vector<16xf32> to vector<16x1xf32>
    %cst_60 = arith.constant 6.400000e+01 : f32
    %128 = vector.broadcast %cst_60 : f32 to vector<16x1xf32>
    %129 = arith.divf %127, %128 : vector<16x1xf32>
    %130 = vector.broadcast %129 : vector<16x1xf32> to vector<16x64xf32>
    %131 = arith.subf %121, %130 : vector<16x64xf32>
    %132 = arith.mulf %131, %131 : vector<16x64xf32>
    %cst_61 = arith.constant dense<0.000000e+00> : vector<16xf32>
    %133 = vector.multi_reduction <add>, %132, %cst_61 [1] : vector<16x64xf32> to vector<16xf32>
    %134 = vector.shape_cast %133 : vector<16xf32> to vector<16x1xf32>
    %cst_62 = arith.constant 6.400000e+01 : f32
    %135 = vector.broadcast %cst_62 : f32 to vector<16x1xf32>
    %136 = arith.divf %134, %135 : vector<16x1xf32>
    %137 = vector.broadcast %129 : vector<16x1xf32> to vector<16x64xf32>
    %138 = arith.subf %121, %137 : vector<16x64xf32>
    %cst_63 = arith.constant 9.99999996E-13 : f32
    %139 = vector.broadcast %cst_63 : f32 to vector<16x1xf32>
    %140 = arith.addf %136, %139 : vector<16x1xf32>
    %141 = math.rsqrt %140 : vector<16x1xf32>
    %142 = vector.broadcast %141 : vector<16x1xf32> to vector<16x64xf32>
    %143 = arith.mulf %138, %142 : vector<16x64xf32>
    %144 = vector.broadcast %123 : vector<1x64xf32> to vector<16x64xf32>
    %145 = arith.mulf %143, %144 : vector<16x64xf32>
    %146 = vector.broadcast %125 : vector<1x64xf32> to vector<16x64xf32>
    %147 = arith.addf %145, %146 : vector<16x64xf32>
    %148 = arith.truncf %147 : vector<16x64xf32> to vector<16x64xbf16>
    %c0_64 = arith.constant 0 : index
    %c0_65 = arith.constant 0 : index
    %c0_66 = arith.constant 0 : index
    %149 = vector.load %arg11[%c0_64, %c0_65, %c0_66] : memref<2x64x256xbf16, #tpu.memory_space<vmem>>, vector<1x64x256xbf16>
    %150 = vector.shape_cast %149 : vector<1x64x256xbf16> to vector<64x256xbf16>
    %cst_67 = arith.constant dense<0.000000e+00> : vector<16x256xf32>
    %151 = tpu.matmul %148, %150, %cst_67 {dimension_numbers = #tpu.dot_dimension_numbers<[1], [0], [0], [1], [0, 0, 1, 1], [], []>} : vector<16x64xbf16>, vector<64x256xbf16>, vector<16x256xf32> -> vector<16x256xf32>
    %c0_68 = arith.constant 0 : index
    %c0_69 = arith.constant 0 : index
    %c0_70 = arith.constant 0 : index
    %152 = vector.load %arg12[%c0_68, %c0_69, %c0_70] : memref<2x1x256xf32, #tpu.memory_space<vmem>>, vector<1x1x256xf32>
    %153 = vector.shape_cast %152 : vector<1x1x256xf32> to vector<1x256xf32>
    %154 = vector.broadcast %153 : vector<1x256xf32> to vector<16x256xf32>
    %155 = arith.addf %151, %154 : vector<16x256xf32>
    %cst_71 = arith.constant 5.000000e-01 : f32
    %156 = vector.broadcast %cst_71 : f32 to vector<16x256xf32>
    %157 = arith.mulf %156, %155 : vector<16x256xf32>
    %cst_72 = arith.constant 4.471500e-02 : f32
    %158 = vector.broadcast %cst_72 : f32 to vector<16x256xf32>
    %159 = arith.mulf %158, %155 : vector<16x256xf32>
    %160 = arith.mulf %159, %155 : vector<16x256xf32>
    %161 = arith.mulf %160, %155 : vector<16x256xf32>
    %162 = arith.addf %155, %161 : vector<16x256xf32>
    %cst_73 = arith.constant 0.797884583 : f32
    %163 = vector.broadcast %cst_73 : f32 to vector<16x256xf32>
    %164 = arith.mulf %163, %162 : vector<16x256xf32>
    %165 = math.tanh %164 : vector<16x256xf32>
    %cst_74 = arith.constant 1.000000e+00 : f32
    %166 = vector.broadcast %cst_74 : f32 to vector<16x256xf32>
    %167 = arith.addf %166, %165 : vector<16x256xf32>
    %168 = arith.mulf %157, %167 : vector<16x256xf32>
    %169 = arith.truncf %168 : vector<16x256xf32> to vector<16x256xbf16>
    %c0_75 = arith.constant 0 : index
    %c0_76 = arith.constant 0 : index
    %c0_77 = arith.constant 0 : index
    %170 = vector.load %arg13[%c0_75, %c0_76, %c0_77] : memref<2x256x64xbf16, #tpu.memory_space<vmem>>, vector<1x256x64xbf16>
    %171 = vector.shape_cast %170 : vector<1x256x64xbf16> to vector<256x64xbf16>
    %cst_78 = arith.constant dense<0.000000e+00> : vector<16x64xf32>
    %172 = tpu.matmul %169, %171, %cst_78 {dimension_numbers = #tpu.dot_dimension_numbers<[1], [0], [0], [1], [0, 0, 1, 1], [], []>} : vector<16x256xbf16>, vector<256x64xbf16>, vector<16x64xf32> -> vector<16x64xf32>
    %c0_79 = arith.constant 0 : index
    %c0_80 = arith.constant 0 : index
    %c0_81 = arith.constant 0 : index
    %173 = vector.load %arg14[%c0_79, %c0_80, %c0_81] : memref<2x1x64xf32, #tpu.memory_space<vmem>>, vector<1x1x64xf32>
    %174 = vector.shape_cast %173 : vector<1x1x64xf32> to vector<1x64xf32>
    %175 = vector.broadcast %174 : vector<1x64xf32> to vector<16x64xf32>
    %176 = arith.addf %172, %175 : vector<16x64xf32>
    %177 = arith.addf %147, %176 : vector<16x64xf32>
    %c0_82 = arith.constant 0 : index
    %c0_83 = arith.constant 0 : index
    %c0_84 = arith.constant 0 : index
    %178 = vector.load %arg15[%c0_82, %c0_83, %c0_84] : memref<2x1x64xf32, #tpu.memory_space<vmem>>, vector<1x1x64xf32>
    %179 = vector.shape_cast %178 : vector<1x1x64xf32> to vector<1x64xf32>
    %c0_85 = arith.constant 0 : index
    %c0_86 = arith.constant 0 : index
    %c0_87 = arith.constant 0 : index
    %180 = vector.load %arg16[%c0_85, %c0_86, %c0_87] : memref<2x1x64xf32, #tpu.memory_space<vmem>>, vector<1x1x64xf32>
    %181 = vector.shape_cast %180 : vector<1x1x64xf32> to vector<1x64xf32>
    %cst_88 = arith.constant dense<0.000000e+00> : vector<16xf32>
    %182 = vector.multi_reduction <add>, %177, %cst_88 [1] : vector<16x64xf32> to vector<16xf32>
    %183 = vector.shape_cast %182 : vector<16xf32> to vector<16x1xf32>
    %cst_89 = arith.constant 6.400000e+01 : f32
    %184 = vector.broadcast %cst_89 : f32 to vector<16x1xf32>
    %185 = arith.divf %183, %184 : vector<16x1xf32>
    %186 = vector.broadcast %185 : vector<16x1xf32> to vector<16x64xf32>
    %187 = arith.subf %177, %186 : vector<16x64xf32>
    %188 = arith.mulf %187, %187 : vector<16x64xf32>
    %cst_90 = arith.constant dense<0.000000e+00> : vector<16xf32>
    %189 = vector.multi_reduction <add>, %188, %cst_90 [1] : vector<16x64xf32> to vector<16xf32>
    %190 = vector.shape_cast %189 : vector<16xf32> to vector<16x1xf32>
    %cst_91 = arith.constant 6.400000e+01 : f32
    %191 = vector.broadcast %cst_91 : f32 to vector<16x1xf32>
    %192 = arith.divf %190, %191 : vector<16x1xf32>
    %193 = vector.broadcast %185 : vector<16x1xf32> to vector<16x64xf32>
    %194 = arith.subf %177, %193 : vector<16x64xf32>
    %cst_92 = arith.constant 9.99999996E-13 : f32
    %195 = vector.broadcast %cst_92 : f32 to vector<16x1xf32>
    %196 = arith.addf %192, %195 : vector<16x1xf32>
    %197 = math.rsqrt %196 : vector<16x1xf32>
    %198 = vector.broadcast %197 : vector<16x1xf32> to vector<16x64xf32>
    %199 = arith.mulf %194, %198 : vector<16x64xf32>
    %200 = vector.broadcast %179 : vector<1x64xf32> to vector<16x64xf32>
    %201 = arith.mulf %199, %200 : vector<16x64xf32>
    %202 = vector.broadcast %181 : vector<1x64xf32> to vector<16x64xf32>
    %203 = arith.addf %201, %202 : vector<16x64xf32>
    %204 = arith.truncf %203 : vector<16x64xf32> to vector<16x64xbf16>
    %c1 = arith.constant 1 : index
    %c0_93 = arith.constant 0 : index
    %c0_94 = arith.constant 0 : index
    %205 = vector.load %arg5[%c1, %c0_93, %c0_94] : memref<2x64x192xbf16, #tpu.memory_space<vmem>>, vector<1x64x192xbf16>
    %206 = vector.shape_cast %205 : vector<1x64x192xbf16> to vector<64x192xbf16>
    %cst_95 = arith.constant dense<0.000000e+00> : vector<16x192xf32>
    %207 = tpu.matmul %204, %206, %cst_95 {dimension_numbers = #tpu.dot_dimension_numbers<[1], [0], [0], [1], [0, 0, 1, 1], [], []>} : vector<16x64xbf16>, vector<64x192xbf16>, vector<16x192xf32> -> vector<16x192xf32>
    %c1_96 = arith.constant 1 : index
    %c0_97 = arith.constant 0 : index
    %c0_98 = arith.constant 0 : index
    %208 = vector.load %arg6[%c1_96, %c0_97, %c0_98] : memref<2x1x192xf32, #tpu.memory_space<vmem>>, vector<1x1x192xf32>
    %209 = vector.shape_cast %208 : vector<1x1x192xf32> to vector<1x192xf32>
    %210 = vector.broadcast %209 : vector<1x192xf32> to vector<16x192xf32>
    %211 = arith.addf %207, %210 : vector<16x192xf32>
    %212 = vector.shape_cast %211 : vector<16x192xf32> to vector<2x8x192xf32>
    %213 = arith.truncf %212 : vector<2x8x192xf32> to vector<2x8x192xbf16>
    %214 = vector.extract_strided_slice %213 {offsets = [0, 0, 0], sizes = [2, 8, 16], strides = [1, 1, 1]} : vector<2x8x192xbf16> to vector<2x8x16xbf16>
    %215 = vector.extract_strided_slice %213 {offsets = [0, 0, 64], sizes = [2, 8, 16], strides = [1, 1, 1]} : vector<2x8x192xbf16> to vector<2x8x16xbf16>
    %216 = vector.extract_strided_slice %213 {offsets = [0, 0, 128], sizes = [2, 8, 16], strides = [1, 1, 1]} : vector<2x8x192xbf16> to vector<2x8x16xbf16>
    "tpu.trace_start"() <{level = 10 : i32, message = "bqd,bkd->bqk"}> : () -> ()
    %cst_99 = arith.constant dense<0.000000e+00> : vector<2x8x8xf32>
    %217 = tpu.matmul %214, %215, %cst_99 {dimension_numbers = #tpu.dot_dimension_numbers<[2], [2], [1], [1], [0, 0, 0, 1, 1, 1], [0], [0]>} : vector<2x8x16xbf16>, vector<2x8x16xbf16>, vector<2x8x8xf32> -> vector<2x8x8xf32>
    "tpu.trace_stop"() : () -> ()
    %218 = arith.addf %217, %3 : vector<2x8x8xf32>
    %cst_100 = arith.constant dense<0xFF800000> : vector<2x8xf32>
    %219 = vector.multi_reduction <maximumf>, %218, %cst_100 [2] : vector<2x8x8xf32> to vector<2x8xf32>
    %220 = vector.shape_cast %219 : vector<2x8xf32> to vector<2x8x1xf32>
    %221 = vector.broadcast %220 : vector<2x8x1xf32> to vector<2x8x8xf32>
    %222 = arith.subf %218, %221 : vector<2x8x8xf32>
    %223 = math.exp %222 : vector<2x8x8xf32>
    %cst_101 = arith.constant dense<0.000000e+00> : vector<2x8xf32>
    %224 = vector.multi_reduction <add>, %223, %cst_101 [2] : vector<2x8x8xf32> to vector<2x8xf32>
    %225 = vector.shape_cast %224 : vector<2x8xf32> to vector<2x8x1xf32>
    %226 = tpu.reciprocal %225 {approx = true} : vector<2x8x1xf32> -> vector<2x8x1xf32>
    %227 = vector.broadcast %226 : vector<2x8x1xf32> to vector<2x8x8xf32>
    %228 = arith.mulf %223, %227 : vector<2x8x8xf32>
    %229 = arith.truncf %228 : vector<2x8x8xf32> to vector<2x8x8xbf16>
    "tpu.trace_start"() <{level = 10 : i32, message = "bqk,bkd->bqd"}> : () -> ()
    %cst_102 = arith.constant dense<0.000000e+00> : vector<2x8x16xf32>
    %230 = tpu.matmul %229, %216, %cst_102 {dimension_numbers = #tpu.dot_dimension_numbers<[2], [1], [1], [2], [0, 0, 0, 1, 1, 2], [0], [0]>} : vector<2x8x8xbf16>, vector<2x8x16xbf16>, vector<2x8x16xf32> -> vector<2x8x16xf32>
    "tpu.trace_stop"() : () -> ()
    %c0_103 = arith.constant 0 : index
    %c0_104 = arith.constant 0 : index
    %c0_105 = arith.constant 0 : index
    %231 = vector.load %arg20[%c0_103, %c0_104, %c0_105] : memref<2x8x64xf32, #tpu.memory_space<vmem>>, vector<2x8x16xf32>
    tpu.vector_store %arg20[%c0_103, %c0_104, %c0_105], %230 {strides = array<i32>} : memref<2x8x64xf32, #tpu.memory_space<vmem>>, vector<2x8x16xf32>,
    %232 = vector.extract_strided_slice %213 {offsets = [0, 0, 16], sizes = [2, 8, 16], strides = [1, 1, 1]} : vector<2x8x192xbf16> to vector<2x8x16xbf16>
    %233 = vector.extract_strided_slice %213 {offsets = [0, 0, 80], sizes = [2, 8, 16], strides = [1, 1, 1]} : vector<2x8x192xbf16> to vector<2x8x16xbf16>
    %234 = vector.extract_strided_slice %213 {offsets = [0, 0, 144], sizes = [2, 8, 16], strides = [1, 1, 1]} : vector<2x8x192xbf16> to vector<2x8x16xbf16>
    "tpu.trace_start"() <{level = 10 : i32, message = "bqd,bkd->bqk"}> : () -> ()
    %cst_106 = arith.constant dense<0.000000e+00> : vector<2x8x8xf32>
    %235 = tpu.matmul %232, %233, %cst_106 {dimension_numbers = #tpu.dot_dimension_numbers<[2], [2], [1], [1], [0, 0, 0, 1, 1, 1], [0], [0]>} : vector<2x8x16xbf16>, vector<2x8x16xbf16>, vector<2x8x8xf32> -> vector<2x8x8xf32>
    "tpu.trace_stop"() : () -> ()
    %236 = arith.addf %235, %3 : vector<2x8x8xf32>
    %cst_107 = arith.constant dense<0xFF800000> : vector<2x8xf32>
    %237 = vector.multi_reduction <maximumf>, %236, %cst_107 [2] : vector<2x8x8xf32> to vector<2x8xf32>
    %238 = vector.shape_cast %237 : vector<2x8xf32> to vector<2x8x1xf32>
    %239 = vector.broadcast %238 : vector<2x8x1xf32> to vector<2x8x8xf32>
    %240 = arith.subf %236, %239 : vector<2x8x8xf32>
    %241 = math.exp %240 : vector<2x8x8xf32>
    %cst_108 = arith.constant dense<0.000000e+00> : vector<2x8xf32>
    %242 = vector.multi_reduction <add>, %241, %cst_108 [2] : vector<2x8x8xf32> to vector<2x8xf32>
    %243 = vector.shape_cast %242 : vector<2x8xf32> to vector<2x8x1xf32>
    %244 = tpu.reciprocal %243 {approx = true} : vector<2x8x1xf32> -> vector<2x8x1xf32>
    %245 = vector.broadcast %244 : vector<2x8x1xf32> to vector<2x8x8xf32>
    %246 = arith.mulf %241, %245 : vector<2x8x8xf32>
    %247 = arith.truncf %246 : vector<2x8x8xf32> to vector<2x8x8xbf16>
    "tpu.trace_start"() <{level = 10 : i32, message = "bqk,bkd->bqd"}> : () -> ()
    %cst_109 = arith.constant dense<0.000000e+00> : vector<2x8x16xf32>
    %248 = tpu.matmul %247, %234, %cst_109 {dimension_numbers = #tpu.dot_dimension_numbers<[2], [1], [1], [2], [0, 0, 0, 1, 1, 2], [0], [0]>} : vector<2x8x8xbf16>, vector<2x8x16xbf16>, vector<2x8x16xf32> -> vector<2x8x16xf32>
    "tpu.trace_stop"() : () -> ()
    %c0_110 = arith.constant 0 : index
    %c0_111 = arith.constant 0 : index
    %c16_112 = arith.constant 16 : index
    %249 = vector.load %arg20[%c0_110, %c0_111, %c16_112] : memref<2x8x64xf32, #tpu.memory_space<vmem>>, vector<2x8x16xf32>
    tpu.vector_store %arg20[%c0_110, %c0_111, %c16_112], %248 {strides = array<i32>} : memref<2x8x64xf32, #tpu.memory_space<vmem>>, vector<2x8x16xf32>,
    %250 = vector.extract_strided_slice %213 {offsets = [0, 0, 32], sizes = [2, 8, 16], strides = [1, 1, 1]} : vector<2x8x192xbf16> to vector<2x8x16xbf16>
    %251 = vector.extract_strided_slice %213 {offsets = [0, 0, 96], sizes = [2, 8, 16], strides = [1, 1, 1]} : vector<2x8x192xbf16> to vector<2x8x16xbf16>
    %252 = vector.extract_strided_slice %213 {offsets = [0, 0, 160], sizes = [2, 8, 16], strides = [1, 1, 1]} : vector<2x8x192xbf16> to vector<2x8x16xbf16>
    "tpu.trace_start"() <{level = 10 : i32, message = "bqd,bkd->bqk"}> : () -> ()
    %cst_113 = arith.constant dense<0.000000e+00> : vector<2x8x8xf32>
    %253 = tpu.matmul %250, %251, %cst_113 {dimension_numbers = #tpu.dot_dimension_numbers<[2], [2], [1], [1], [0, 0, 0, 1, 1, 1], [0], [0]>} : vector<2x8x16xbf16>, vector<2x8x16xbf16>, vector<2x8x8xf32> -> vector<2x8x8xf32>
    "tpu.trace_stop"() : () -> ()
    %254 = arith.addf %253, %3 : vector<2x8x8xf32>
    %cst_114 = arith.constant dense<0xFF800000> : vector<2x8xf32>
    %255 = vector.multi_reduction <maximumf>, %254, %cst_114 [2] : vector<2x8x8xf32> to vector<2x8xf32>
    %256 = vector.shape_cast %255 : vector<2x8xf32> to vector<2x8x1xf32>
    %257 = vector.broadcast %256 : vector<2x8x1xf32> to vector<2x8x8xf32>
    %258 = arith.subf %254, %257 : vector<2x8x8xf32>
    %259 = math.exp %258 : vector<2x8x8xf32>
    %cst_115 = arith.constant dense<0.000000e+00> : vector<2x8xf32>
    %260 = vector.multi_reduction <add>, %259, %cst_115 [2] : vector<2x8x8xf32> to vector<2x8xf32>
    %261 = vector.shape_cast %260 : vector<2x8xf32> to vector<2x8x1xf32>
    %262 = tpu.reciprocal %261 {approx = true} : vector<2x8x1xf32> -> vector<2x8x1xf32>
    %263 = vector.broadcast %262 : vector<2x8x1xf32> to vector<2x8x8xf32>
    %264 = arith.mulf %259, %263 : vector<2x8x8xf32>
    %265 = arith.truncf %264 : vector<2x8x8xf32> to vector<2x8x8xbf16>
    "tpu.trace_start"() <{level = 10 : i32, message = "bqk,bkd->bqd"}> : () -> ()
    %cst_116 = arith.constant dense<0.000000e+00> : vector<2x8x16xf32>
    %266 = tpu.matmul %265, %252, %cst_116 {dimension_numbers = #tpu.dot_dimension_numbers<[2], [1], [1], [2], [0, 0, 0, 1, 1, 2], [0], [0]>} : vector<2x8x8xbf16>, vector<2x8x16xbf16>, vector<2x8x16xf32> -> vector<2x8x16xf32>
    "tpu.trace_stop"() : () -> ()
    %c0_117 = arith.constant 0 : index
    %c0_118 = arith.constant 0 : index
    %c32_119 = arith.constant 32 : index
    %267 = vector.load %arg20[%c0_117, %c0_118, %c32_119] : memref<2x8x64xf32, #tpu.memory_space<vmem>>, vector<2x8x16xf32>
    tpu.vector_store %arg20[%c0_117, %c0_118, %c32_119], %266 {strides = array<i32>} : memref<2x8x64xf32, #tpu.memory_space<vmem>>, vector<2x8x16xf32>,
    %268 = vector.extract_strided_slice %213 {offsets = [0, 0, 48], sizes = [2, 8, 16], strides = [1, 1, 1]} : vector<2x8x192xbf16> to vector<2x8x16xbf16>
    %269 = vector.extract_strided_slice %213 {offsets = [0, 0, 112], sizes = [2, 8, 16], strides = [1, 1, 1]} : vector<2x8x192xbf16> to vector<2x8x16xbf16>
    %270 = vector.extract_strided_slice %213 {offsets = [0, 0, 176], sizes = [2, 8, 16], strides = [1, 1, 1]} : vector<2x8x192xbf16> to vector<2x8x16xbf16>
    "tpu.trace_start"() <{level = 10 : i32, message = "bqd,bkd->bqk"}> : () -> ()
    %cst_120 = arith.constant dense<0.000000e+00> : vector<2x8x8xf32>
    %271 = tpu.matmul %268, %269, %cst_120 {dimension_numbers = #tpu.dot_dimension_numbers<[2], [2], [1], [1], [0, 0, 0, 1, 1, 1], [0], [0]>} : vector<2x8x16xbf16>, vector<2x8x16xbf16>, vector<2x8x8xf32> -> vector<2x8x8xf32>
    "tpu.trace_stop"() : () -> ()
    %272 = arith.addf %271, %3 : vector<2x8x8xf32>
    %cst_121 = arith.constant dense<0xFF800000> : vector<2x8xf32>
    %273 = vector.multi_reduction <maximumf>, %272, %cst_121 [2] : vector<2x8x8xf32> to vector<2x8xf32>
    %274 = vector.shape_cast %273 : vector<2x8xf32> to vector<2x8x1xf32>
    %275 = vector.broadcast %274 : vector<2x8x1xf32> to vector<2x8x8xf32>
    %276 = arith.subf %272, %275 : vector<2x8x8xf32>
    %277 = math.exp %276 : vector<2x8x8xf32>
    %cst_122 = arith.constant dense<0.000000e+00> : vector<2x8xf32>
    %278 = vector.multi_reduction <add>, %277, %cst_122 [2] : vector<2x8x8xf32> to vector<2x8xf32>
    %279 = vector.shape_cast %278 : vector<2x8xf32> to vector<2x8x1xf32>
    %280 = tpu.reciprocal %279 {approx = true} : vector<2x8x1xf32> -> vector<2x8x1xf32>
    %281 = vector.broadcast %280 : vector<2x8x1xf32> to vector<2x8x8xf32>
    %282 = arith.mulf %277, %281 : vector<2x8x8xf32>
    %283 = arith.truncf %282 : vector<2x8x8xf32> to vector<2x8x8xbf16>
    "tpu.trace_start"() <{level = 10 : i32, message = "bqk,bkd->bqd"}> : () -> ()
    %cst_123 = arith.constant dense<0.000000e+00> : vector<2x8x16xf32>
    %284 = tpu.matmul %283, %270, %cst_123 {dimension_numbers = #tpu.dot_dimension_numbers<[2], [1], [1], [2], [0, 0, 0, 1, 1, 2], [0], [0]>} : vector<2x8x8xbf16>, vector<2x8x16xbf16>, vector<2x8x16xf32> -> vector<2x8x16xf32>
    "tpu.trace_stop"() : () -> ()
    %c0_124 = arith.constant 0 : index
    %c0_125 = arith.constant 0 : index
    %c48_126 = arith.constant 48 : index
    %285 = vector.load %arg20[%c0_124, %c0_125, %c48_126] : memref<2x8x64xf32, #tpu.memory_space<vmem>>, vector<2x8x16xf32>
    tpu.vector_store %arg20[%c0_124, %c0_125, %c48_126], %284 {strides = array<i32>} : memref<2x8x64xf32, #tpu.memory_space<vmem>>, vector<2x8x16xf32>,
    %c0_127 = arith.constant 0 : index
    %c0_128 = arith.constant 0 : index
    %c0_129 = arith.constant 0 : index
    %286 = vector.load %arg20[%c0_127, %c0_128, %c0_129] : memref<2x8x64xf32, #tpu.memory_space<vmem>>, vector<2x8x64xf32>
    %287 = vector.shape_cast %286 : vector<2x8x64xf32> to vector<16x64xf32>
    %288 = arith.truncf %287 : vector<16x64xf32> to vector<16x64xbf16>
    %c1_130 = arith.constant 1 : index
    %c0_131 = arith.constant 0 : index
    %c0_132 = arith.constant 0 : index
    %289 = vector.load %arg7[%c1_130, %c0_131, %c0_132] : memref<2x64x64xbf16, #tpu.memory_space<vmem>>, vector<1x64x64xbf16>
    %290 = vector.shape_cast %289 : vector<1x64x64xbf16> to vector<64x64xbf16>
    %cst_133 = arith.constant dense<0.000000e+00> : vector<16x64xf32>
    %291 = tpu.matmul %288, %290, %cst_133 {dimension_numbers = #tpu.dot_dimension_numbers<[1], [0], [0], [1], [0, 0, 1, 1], [], []>} : vector<16x64xbf16>, vector<64x64xbf16>, vector<16x64xf32> -> vector<16x64xf32>
    %c1_134 = arith.constant 1 : index
    %c0_135 = arith.constant 0 : index
    %c0_136 = arith.constant 0 : index
    %292 = vector.load %arg8[%c1_134, %c0_135, %c0_136] : memref<2x1x64xf32, #tpu.memory_space<vmem>>, vector<1x1x64xf32>
    %293 = vector.shape_cast %292 : vector<1x1x64xf32> to vector<1x64xf32>
    %294 = vector.broadcast %293 : vector<1x64xf32> to vector<16x64xf32>
    %295 = arith.addf %291, %294 : vector<16x64xf32>
    %296 = arith.addf %203, %295 : vector<16x64xf32>
    %c1_137 = arith.constant 1 : index
    %c0_138 = arith.constant 0 : index
    %c0_139 = arith.constant 0 : index
    %297 = vector.load %arg9[%c1_137, %c0_138, %c0_139] : memref<2x1x64xf32, #tpu.memory_space<vmem>>, vector<1x1x64xf32>
    %298 = vector.shape_cast %297 : vector<1x1x64xf32> to vector<1x64xf32>
    %c1_140 = arith.constant 1 : index
    %c0_141 = arith.constant 0 : index
    %c0_142 = arith.constant 0 : index
    %299 = vector.load %arg10[%c1_140, %c0_141, %c0_142] : memref<2x1x64xf32, #tpu.memory_space<vmem>>, vector<1x1x64xf32>
    %300 = vector.shape_cast %299 : vector<1x1x64xf32> to vector<1x64xf32>
    %cst_143 = arith.constant dense<0.000000e+00> : vector<16xf32>
    %301 = vector.multi_reduction <add>, %296, %cst_143 [1] : vector<16x64xf32> to vector<16xf32>
    %302 = vector.shape_cast %301 : vector<16xf32> to vector<16x1xf32>
    %cst_144 = arith.constant 6.400000e+01 : f32
    %303 = vector.broadcast %cst_144 : f32 to vector<16x1xf32>
    %304 = arith.divf %302, %303 : vector<16x1xf32>
    %305 = vector.broadcast %304 : vector<16x1xf32> to vector<16x64xf32>
    %306 = arith.subf %296, %305 : vector<16x64xf32>
    %307 = arith.mulf %306, %306 : vector<16x64xf32>
    %cst_145 = arith.constant dense<0.000000e+00> : vector<16xf32>
    %308 = vector.multi_reduction <add>, %307, %cst_145 [1] : vector<16x64xf32> to vector<16xf32>
    %309 = vector.shape_cast %308 : vector<16xf32> to vector<16x1xf32>
    %cst_146 = arith.constant 6.400000e+01 : f32
    %310 = vector.broadcast %cst_146 : f32 to vector<16x1xf32>
    %311 = arith.divf %309, %310 : vector<16x1xf32>
    %312 = vector.broadcast %304 : vector<16x1xf32> to vector<16x64xf32>
    %313 = arith.subf %296, %312 : vector<16x64xf32>
    %cst_147 = arith.constant 9.99999996E-13 : f32
    %314 = vector.broadcast %cst_147 : f32 to vector<16x1xf32>
    %315 = arith.addf %311, %314 : vector<16x1xf32>
    %316 = math.rsqrt %315 : vector<16x1xf32>
    %317 = vector.broadcast %316 : vector<16x1xf32> to vector<16x64xf32>
    %318 = arith.mulf %313, %317 : vector<16x64xf32>
    %319 = vector.broadcast %298 : vector<1x64xf32> to vector<16x64xf32>
    %320 = arith.mulf %318, %319 : vector<16x64xf32>
    %321 = vector.broadcast %300 : vector<1x64xf32> to vector<16x64xf32>
    %322 = arith.addf %320, %321 : vector<16x64xf32>
    %323 = arith.truncf %322 : vector<16x64xf32> to vector<16x64xbf16>
    %c1_148 = arith.constant 1 : index
    %c0_149 = arith.constant 0 : index
    %c0_150 = arith.constant 0 : index
    %324 = vector.load %arg11[%c1_148, %c0_149, %c0_150] : memref<2x64x256xbf16, #tpu.memory_space<vmem>>, vector<1x64x256xbf16>
    %325 = vector.shape_cast %324 : vector<1x64x256xbf16> to vector<64x256xbf16>
    %cst_151 = arith.constant dense<0.000000e+00> : vector<16x256xf32>
    %326 = tpu.matmul %323, %325, %cst_151 {dimension_numbers = #tpu.dot_dimension_numbers<[1], [0], [0], [1], [0, 0, 1, 1], [], []>} : vector<16x64xbf16>, vector<64x256xbf16>, vector<16x256xf32> -> vector<16x256xf32>
    %c1_152 = arith.constant 1 : index
    %c0_153 = arith.constant 0 : index
    %c0_154 = arith.constant 0 : index
    %327 = vector.load %arg12[%c1_152, %c0_153, %c0_154] : memref<2x1x256xf32, #tpu.memory_space<vmem>>, vector<1x1x256xf32>
    %328 = vector.shape_cast %327 : vector<1x1x256xf32> to vector<1x256xf32>
    %329 = vector.broadcast %328 : vector<1x256xf32> to vector<16x256xf32>
    %330 = arith.addf %326, %329 : vector<16x256xf32>
    %cst_155 = arith.constant 5.000000e-01 : f32
    %331 = vector.broadcast %cst_155 : f32 to vector<16x256xf32>
    %332 = arith.mulf %331, %330 : vector<16x256xf32>
    %cst_156 = arith.constant 4.471500e-02 : f32
    %333 = vector.broadcast %cst_156 : f32 to vector<16x256xf32>
    %334 = arith.mulf %333, %330 : vector<16x256xf32>
    %335 = arith.mulf %334, %330 : vector<16x256xf32>
    %336 = arith.mulf %335, %330 : vector<16x256xf32>
    %337 = arith.addf %330, %336 : vector<16x256xf32>
    %cst_157 = arith.constant 0.797884583 : f32
    %338 = vector.broadcast %cst_157 : f32 to vector<16x256xf32>
    %339 = arith.mulf %338, %337 : vector<16x256xf32>
    %340 = math.tanh %339 : vector<16x256xf32>
    %cst_158 = arith.constant 1.000000e+00 : f32
    %341 = vector.broadcast %cst_158 : f32 to vector<16x256xf32>
    %342 = arith.addf %341, %340 : vector<16x256xf32>
    %343 = arith.mulf %332, %342 : vector<16x256xf32>
    %344 = arith.truncf %343 : vector<16x256xf32> to vector<16x256xbf16>
    %c1_159 = arith.constant 1 : index
    %c0_160 = arith.constant 0 : index
    %c0_161 = arith.constant 0 : index
    %345 = vector.load %arg13[%c1_159, %c0_160, %c0_161] : memref<2x256x64xbf16, #tpu.memory_space<vmem>>, vector<1x256x64xbf16>
    %346 = vector.shape_cast %345 : vector<1x256x64xbf16> to vector<256x64xbf16>
    %cst_162 = arith.constant dense<0.000000e+00> : vector<16x64xf32>
    %347 = tpu.matmul %344, %346, %cst_162 {dimension_numbers = #tpu.dot_dimension_numbers<[1], [0], [0], [1], [0, 0, 1, 1], [], []>} : vector<16x256xbf16>, vector<256x64xbf16>, vector<16x64xf32> -> vector<16x64xf32>
    %c1_163 = arith.constant 1 : index
    %c0_164 = arith.constant 0 : index
    %c0_165 = arith.constant 0 : index
    %348 = vector.load %arg14[%c1_163, %c0_164, %c0_165] : memref<2x1x64xf32, #tpu.memory_space<vmem>>, vector<1x1x64xf32>
    %349 = vector.shape_cast %348 : vector<1x1x64xf32> to vector<1x64xf32>
    %350 = vector.broadcast %349 : vector<1x64xf32> to vector<16x64xf32>
    %351 = arith.addf %347, %350 : vector<16x64xf32>
    %352 = arith.addf %322, %351 : vector<16x64xf32>
    %c1_166 = arith.constant 1 : index
    %c0_167 = arith.constant 0 : index
    %c0_168 = arith.constant 0 : index
    %353 = vector.load %arg15[%c1_166, %c0_167, %c0_168] : memref<2x1x64xf32, #tpu.memory_space<vmem>>, vector<1x1x64xf32>
    %354 = vector.shape_cast %353 : vector<1x1x64xf32> to vector<1x64xf32>
    %c1_169 = arith.constant 1 : index
    %c0_170 = arith.constant 0 : index
    %c0_171 = arith.constant 0 : index
    %355 = vector.load %arg16[%c1_169, %c0_170, %c0_171] : memref<2x1x64xf32, #tpu.memory_space<vmem>>, vector<1x1x64xf32>
    %356 = vector.shape_cast %355 : vector<1x1x64xf32> to vector<1x64xf32>
    %cst_172 = arith.constant dense<0.000000e+00> : vector<16xf32>
    %357 = vector.multi_reduction <add>, %352, %cst_172 [1] : vector<16x64xf32> to vector<16xf32>
    %358 = vector.shape_cast %357 : vector<16xf32> to vector<16x1xf32>
    %cst_173 = arith.constant 6.400000e+01 : f32
    %359 = vector.broadcast %cst_173 : f32 to vector<16x1xf32>
    %360 = arith.divf %358, %359 : vector<16x1xf32>
    %361 = vector.broadcast %360 : vector<16x1xf32> to vector<16x64xf32>
    %362 = arith.subf %352, %361 : vector<16x64xf32>
    %363 = arith.mulf %362, %362 : vector<16x64xf32>
    %cst_174 = arith.constant dense<0.000000e+00> : vector<16xf32>
    %364 = vector.multi_reduction <add>, %363, %cst_174 [1] : vector<16x64xf32> to vector<16xf32>
    %365 = vector.shape_cast %364 : vector<16xf32> to vector<16x1xf32>
    %cst_175 = arith.constant 6.400000e+01 : f32
    %366 = vector.broadcast %cst_175 : f32 to vector<16x1xf32>
    %367 = arith.divf %365, %366 : vector<16x1xf32>
    %368 = vector.broadcast %360 : vector<16x1xf32> to vector<16x64xf32>
    %369 = arith.subf %352, %368 : vector<16x64xf32>
    %cst_176 = arith.constant 9.99999996E-13 : f32
    %370 = vector.broadcast %cst_176 : f32 to vector<16x1xf32>
    %371 = arith.addf %367, %370 : vector<16x1xf32>
    %372 = math.rsqrt %371 : vector<16x1xf32>
    %373 = vector.broadcast %372 : vector<16x1xf32> to vector<16x64xf32>
    %374 = arith.mulf %369, %373 : vector<16x64xf32>
    %375 = vector.broadcast %354 : vector<1x64xf32> to vector<16x64xf32>
    %376 = arith.mulf %374, %375 : vector<16x64xf32>
    %377 = vector.broadcast %356 : vector<1x64xf32> to vector<16x64xf32>
    %378 = arith.addf %376, %377 : vector<16x64xf32>
    %379 = vector.shape_cast %378 : vector<16x64xf32> to vector<2x8x64xf32>
    %380 = vector.extract_strided_slice %379 {offsets = [0, 0, 0], sizes = [2, 1, 64], strides = [1, 1, 1]} : vector<2x8x64xf32> to vector<2x1x64xf32>
    %381 = vector.shape_cast %380 : vector<2x1x64xf32> to vector<2x64xf32>
    %382 = arith.truncf %381 : vector<2x64xf32> to vector<2x64xbf16>
    %c0_177 = arith.constant 0 : index
    %c0_178 = arith.constant 0 : index
    %383 = vector.load %arg17[%c0_177, %c0_178] : memref<64x128xbf16, #tpu.memory_space<vmem>>, vector<64x128xbf16>
    %cst_179 = arith.constant dense<0.000000e+00> : vector<2x128xf32>
    %384 = tpu.matmul %382, %383, %cst_179 {dimension_numbers = #tpu.dot_dimension_numbers<[1], [0], [0], [1], [0, 0, 1, 1], [], []>} : vector<2x64xbf16>, vector<64x128xbf16>, vector<2x128xf32> -> vector<2x128xf32>
    %c0_180 = arith.constant 0 : index
    %c0_181 = arith.constant 0 : index
    %385 = vector.load %arg18[%c0_180, %c0_181] : memref<1x128xf32, #tpu.memory_space<vmem>>, vector<1x128xf32>
    %386 = vector.broadcast %385 : vector<1x128xf32> to vector<2x128xf32>
    %387 = arith.addf %384, %386 : vector<2x128xf32>
    %c0_182 = arith.constant 0 : index
    %c0_183 = arith.constant 0 : index
    %388 = vector.load %arg19[%c0_182, %c0_183] : memref<2x128xf32, #tpu.memory_space<vmem>>, vector<2x128xf32>
    tpu.vector_store %arg19[%c0_182, %c0_183], %387 {strides = array<i32>} : memref<2x128xf32, #tpu.memory_space<vmem>>, vector<2x128xf32>,
    return
  }
  func.func @transform_0(%arg0: i32) -> (i32, i32) {
    %c0_i32 = arith.constant 0 : i32
    %c0_i32_0 = arith.constant 0 : i32
    %c0_i32_1 = arith.constant 0 : i32
    return %c0_i32, %c0_i32_0 : i32, i32
  }
  func.func @transform_1(%arg0: i32) -> (i32, i32) {
    %c0_i32 = arith.constant 0 : i32
    %c0_i32_0 = arith.constant 0 : i32
    %c0_i32_1 = arith.constant 0 : i32
    return %c0_i32, %c0_i32_0 : i32, i32
  }
  func.func @transform_2(%arg0: i32) -> (i32, i32) {
    %c0_i32 = arith.constant 0 : i32
    %c0_i32_0 = arith.constant 0 : i32
    %c0_i32_1 = arith.constant 0 : i32
    return %c0_i32, %c0_i32_0 : i32, i32
  }
  func.func @transform_3(%arg0: i32) -> (i32, i32) {
    %c0_i32 = arith.constant 0 : i32
    %c0_i32_0 = arith.constant 0 : i32
    %c0_i32_1 = arith.constant 0 : i32
    return %c0_i32, %c0_i32_0 : i32, i32
  }
  func.func @transform_4(%arg0: i32) -> (i32, i32, i32) {
    %c0_i32 = arith.constant 0 : i32
    %c0_i32_0 = arith.constant 0 : i32
    %c0_i32_1 = arith.constant 0 : i32
    %c0_i32_2 = arith.constant 0 : i32
    return %c0_i32, %c0_i32_0, %c0_i32_1 : i32, i32, i32
  }
  func.func @transform_5(%arg0: i32) -> (i32, i32, i32) {
    %c0_i32 = arith.constant 0 : i32
    %c0_i32_0 = arith.constant 0 : i32
    %c0_i32_1 = arith.constant 0 : i32
    %c0_i32_2 = arith.constant 0 : i32
    return %c0_i32, %c0_i32_0, %c0_i32_1 : i32, i32, i32
  }
  func.func @transform_6(%arg0: i32) -> (i32, i32, i32) {
    %c0_i32 = arith.constant 0 : i32
    %c0_i32_0 = arith.constant 0 : i32
    %c0_i32_1 = arith.constant 0 : i32
    %c0_i32_2 = arith.constant 0 : i32
    return %c0_i32, %c0_i32_0, %c0_i32_1 : i32, i32, i32
  }
  func.func @transform_7(%arg0: i32) -> (i32, i32, i32) {
    %c0_i32 = arith.constant 0 : i32
    %c0_i32_0 = arith.constant 0 : i32
    %c0_i32_1 = arith.constant 0 : i32
    %c0_i32_2 = arith.constant 0 : i32
    return %c0_i32, %c0_i32_0, %c0_i32_1 : i32, i32, i32
  }
  func.func @transform_8(%arg0: i32) -> (i32, i32, i32) {
    %c0_i32 = arith.constant 0 : i32
    %c0_i32_0 = arith.constant 0 : i32
    %c0_i32_1 = arith.constant 0 : i32
    %c0_i32_2 = arith.constant 0 : i32
    return %c0_i32, %c0_i32_0, %c0_i32_1 : i32, i32, i32
  }
  func.func @transform_9(%arg0: i32) -> (i32, i32, i32) {
    %c0_i32 = arith.constant 0 : i32
    %c0_i32_0 = arith.constant 0 : i32
    %c0_i32_1 = arith.constant 0 : i32
    %c0_i32_2 = arith.constant 0 : i32
    return %c0_i32, %c0_i32_0, %c0_i32_1 : i32, i32, i32
  }
  func.func @transform_10(%arg0: i32) -> (i32, i32, i32) {
    %c0_i32 = arith.constant 0 : i32
    %c0_i32_0 = arith.constant 0 : i32
    %c0_i32_1 = arith.constant 0 : i32
    %c0_i32_2 = arith.constant 0 : i32
    return %c0_i32, %c0_i32_0, %c0_i32_1 : i32, i32, i32
  }
  func.func @transform_11(%arg0: i32) -> (i32, i32, i32) {
    %c0_i32 = arith.constant 0 : i32
    %c0_i32_0 = arith.constant 0 : i32
    %c0_i32_1 = arith.constant 0 : i32
    %c0_i32_2 = arith.constant 0 : i32
    return %c0_i32, %c0_i32_0, %c0_i32_1 : i32, i32, i32
  }
  func.func @transform_12(%arg0: i32) -> (i32, i32, i32) {
    %c0_i32 = arith.constant 0 : i32
    %c0_i32_0 = arith.constant 0 : i32
    %c0_i32_1 = arith.constant 0 : i32
    %c0_i32_2 = arith.constant 0 : i32
    return %c0_i32, %c0_i32_0, %c0_i32_1 : i32, i32, i32
  }
  func.func @transform_13(%arg0: i32) -> (i32, i32, i32) {
    %c0_i32 = arith.constant 0 : i32
    %c0_i32_0 = arith.constant 0 : i32
    %c0_i32_1 = arith.constant 0 : i32
    %c0_i32_2 = arith.constant 0 : i32
    return %c0_i32, %c0_i32_0, %c0_i32_1 : i32, i32, i32
  }
  func.func @transform_14(%arg0: i32) -> (i32, i32, i32) {
    %c0_i32 = arith.constant 0 : i32
    %c0_i32_0 = arith.constant 0 : i32
    %c0_i32_1 = arith.constant 0 : i32
    %c0_i32_2 = arith.constant 0 : i32
    return %c0_i32, %c0_i32_0, %c0_i32_1 : i32, i32, i32
  }
  func.func @transform_15(%arg0: i32) -> (i32, i32, i32) {
    %c0_i32 = arith.constant 0 : i32
    %c0_i32_0 = arith.constant 0 : i32
    %c0_i32_1 = arith.constant 0 : i32
    %c0_i32_2 = arith.constant 0 : i32
    return %c0_i32, %c0_i32_0, %c0_i32_1 : i32, i32, i32
  }
  func.func @transform_16(%arg0: i32) -> (i32, i32) {
    %c0_i32 = arith.constant 0 : i32
    %c0_i32_0 = arith.constant 0 : i32
    %c0_i32_1 = arith.constant 0 : i32
    return %c0_i32, %c0_i32_0 : i32, i32
  }
  func.func @transform_17(%arg0: i32) -> (i32, i32) {
    %c0_i32 = arith.constant 0 : i32
    %c0_i32_0 = arith.constant 0 : i32
    %c0_i32_1 = arith.constant 0 : i32
    return %c0_i32, %c0_i32_0 : i32, i32
  }
  func.func @transform_18(%arg0: i32) -> (i32, i32) {
    %c0_i32 = arith.constant 0 : i32
    %c0_i32_0 = arith.constant 0 : i32
    %c0_i32_1 = arith.constant 0 : i32
    return %c0_i32, %c0_i32_0 : i32, i32
  }
}

</mosaic_0001>

<bundles_post_ra>
// kernel: tpu_custom_call.1
= control target key start
LH: loop header
LB: loop body
LE: loop exit
PB: predicated region body
PF: predicated region fallthrough
CT: control target
= control target key end

     0   :  { %s4994_s0 = inlined_call_operand.vmem [shape: f32[16,64], index: 0, kind: input, shape index: {}]   ;;  %s4995_s1 = inlined_call_operand.vmem [shape: f32[2,8], index: 1, kind: input, shape index: {}]   ;;  %s4996_s2 = inlined_call_operand.vmem [shape: f32[1,64], index: 2, kind: input, shape index: {}]   ;;  %s4997_s3 = inlined_call_operand.hbm [shape: f32[1,64], index: 3, kind: input, shape index: {}]   ;;  %s4998_s4 = inlined_call_operand.vmem [shape: bf16[2,64,192], index: 4, kind: input, shape index: {}]   ;;  %s4999_s5 = inlined_call_operand.vmem [shape: f32[2,1,192], index: 5, kind: input, shape index: {}]   ;;  %s5000_s6 = inlined_call_operand.vmem [shape: bf16[2,64,64], index: 6, kind: input, shape index: {}]   ;;  %s5001_s7 = inlined_call_operand.vmem [shape: f32[2,1,64], index: 7, kind: input, shape index: {}]   ;;  %s5002_s8 = inlined_call_operand.vmem [shape: f32[2,1,64], index: 8, kind: input, shape index: {}]   ;;  %s5003_s9 = inlined_call_operand.vmem [shape: f32[2,1,64], index: 9, kind: input, shape index: {}]   ;;  %s5004_s10 = inlined_call_operand.vmem [shape: bf16[2,64,256], index: 10, kind: input, shape index: {}]   ;;  %s5005_s11 = inlined_call_operand.vmem [shape: f32[2,1,256], index: 11, kind: input, shape index: {}]   ;;  %s5006_s12 = inlined_call_operand.vmem [shape: bf16[2,256,64], index: 12, kind: input, shape index: {}]   ;;  %s5007_s13 = inlined_call_operand.vmem [shape: f32[2,1,64], index: 13, kind: input, shape index: {}]   ;;  %s5008_s14 = inlined_call_operand.vmem [shape: f32[2,1,64], index: 14, kind: input, shape index: {}]   ;;  %s5009_s15 = inlined_call_operand.vmem [shape: f32[2,1,64], index: 15, kind: input, shape index: {}]   ;;  %s5010_s16 = inlined_call_operand.vmem [shape: bf16[64,128], index: 16, kind: input, shape index: {}]   ;;  %s5011_s17 = inlined_call_operand.vmem [shape: f32[1,128], index: 17, kind: input, shape index: {}]   ;;  %s5012_s18 = inlined_call_operand.hbm [shape: f32[2,128], index: 18, kind: output, shape index: {}]  }
   0x1   :  { %5016 = sst [smem:[#allocation9_spill]] %s4994_s0 }
   0x2   :  { %5017 = sst [smem:[#allocation10_spill]] %s4995_s1 }
   0x3   :  { %5018 = sst [smem:[#allocation11_spill]] %s4996_s2 }
   0x4   :  { %23 = vsyncpa [#allocation4], 0 }
   0x5   :  { %24 = vsyncpa [#allocation5], 0  ;;  %s4116_s27 = smov [#allocation3]   ;;  %s4068_s0 = scalar_lea.hbm %s4997_s3, 16 }
   0x6   :  { %s37_s28 = sshll.u32 %s4116_s27, 4  ;;  %p4069_p0 = scmp.ne.s32.totalorder %s4997_s3, %s4068_s0  ;;  %s38_s28 = int_to_ptr.vmem [resolvable:$true] %s37_s28 }
   0x7   :  { %p4072_p1 = scmp.lt.u32.totalorder %s4068_s0, %s4997_s3 }
   0x9   :  { %p4074_p2 = pnand %p4072_p1, %p4069_p0 }
   0xb   :  { %4077 = shalt.err (!%p4074_p2)
}
   0xc   :  { %s4078_s22 = scalar_lea.vmem %s38_s28, 16  ;;  %s4082_s2 = scalar_lea.vmem %s38_s28, 32 }
   0xd   :  { %p4079_p3 = scmp.ne.s32.totalorder %s38_s28, %s4078_s22  ;;  %p4083_p4 = scmp.lt.s32.totalorder %s38_s28, %s38_s28 }
   0xe   :  { %p4084_p5 = scmp.lt.s32.totalorder %s4082_s2, %s4078_s22 }
  0x10   :  { %p4085_p6 = por %p4084_p5, %p4083_p4 }
  0x12   :  { %p4086_p7 = pnand %p4085_p6, %p4079_p3 }
  0x14   :  { %4089 = shalt.err (!%p4086_p7)
}
  0x15   :  { %40 = dma.hbm_to_vmem [thread:$0]  %s4997_s3, 16, %s38_s28, [#allocation4]  }
  0x16   :  { %4112 = dma.done.wait [#allocation4], 16  }
  0x17   :  { %4113 = vsyncadd [#allocation4], 4294967280  ;;  %vm111_vm0 = vcmask 523264   ;;  %s5019_s27 = sld [smem:[#allocation9_spill]]  ;;  %v3876_v14 = vld [vmem:[%s4998_s4 + $0x4] ss:$8 sps:$4 sm:$0xff]   ;;  %v86_v40 = vlaneseq }
  0x18   :  { %v3878_v15 = vld [vmem:[%s4998_s4] ss:$8 sps:$4 sm:$0xff]   ;;  %v3879_v16 = vld [vmem:[%s4998_s4 + $0x14] ss:$8 sps:$4 sm:$0xff]   ;;  %219 = vmatprep.subr.bf16.mxu0 %v3876_v14  ;;  %v3881_v17 = vld [vmem:[%s4998_s4 + $0x10] ss:$8 sps:$4 sm:$0xff]  }
  0x19   :  { %220 = vmatpush1.bf16.msra.mxu0 %v3878_v15  ;;  %v4117_v18 = vmov 0   ;;  %v3882_v19 = vld [vmem:[%s4998_s4 + $0x24] ss:$8 sps:$4 sm:$0xff]   ;;  %v3884_v20 = vld [vmem:[%s4998_s4 + $0x20] ss:$8 sps:$4 sm:$0xff]   ;;  %s5020_s0 = sld [smem:[#allocation11_spill]] }
  0x1a   :  { %251 = vmatprep.mubr.bf16.mxu0 %v4117_v18  ;;  %221 = vmatprep.subr.bf16.mxu0 %v3879_v16  ;;  %v3885_v21 = vld [vmem:[%s4998_s4 + $0x34] ss:$8 sps:$4 sm:$0xff]   ;;  %v3887_v22 = vld [vmem:[%s4998_s4 + $0x30] ss:$8 sps:$4 sm:$0xff]   ;;  %v87_v41 = vshrl.u32 %v86_v40, 7  ;;  %v4118_v42 = vmov 0.0  }
  0x1b   :  { %v3319_v35 = vld [vmem:[#allocation3] ss:$0 sm:$0xff]  ;;  %3635 = vmatprep.subr.bf16.mxu1 %v4118_v42  ;;  %v164_v44 = vld [vmem:[%s4999_s5] sm:$0x3]  ;;  %vm4119_vm1 = vmmov 0   ;;  %s4120_s20 = smov 64  }
  0x1c   :  { %v4283_v43 = vsub.s32 0, %v87_v41  ;;  %3637 = vmatprep.mubr.msk.bf16.mxu1 %vm4119_vm1, %v4118_v42  ;;  %v4293_v46 = vsub.s32 1, %v87_v41  ;;  %vm269_vm2 = vcmask 130048   ;;  %vm393_vm3 = vcmask 1043456   ;;  %s5021_s2 = sld [smem:[#allocation10_spill]]  ;;  %s4122_s23 = smov 48  }
  0x1d   :  { %v107_v0 = vld [vmem:[%s5019_s27] sm:$0xff]  ;;  %v108_v1 = vld [vmem:[%s5019_s27 + $0x8] sm:$0xff]  ;;  %222 = vmatpush1.bf16.msra.mxu0 %v3881_v17  ;;  %vm365_vm4 = vcmask 64512   ;;  %s4123_s24 = smov 112   ;;  %s4124_s25 = smov 32   ;;  %vm715_vm5 = vcmask 261248  }
  0x1e   :  { %v112_v2 = vsel %vm111_vm0, %v107_v0, 0.0  ;;  %v115_v3 = vsel %vm111_vm0, %v108_v1, 0.0  ;;  %223 = vmatprep.subr.bf16.mxu0 %v3882_v19  ;;  %v169_v45 = vrot.slane %v164_v44, %v4283_v43  ;;  %v173_v50 = vrot.slane %v164_v44, %v4293_v46  ;;  %s4125_s26 = smov 96   ;;  %s4126_s27 = smov 16  }
  0x1f   :  { %113 = vadd.xlane.f32.xlu0 %v112_v2  ;;  %v3318_v31 = vld [vmem:[%s5020_s0] ss:$0 sm:$0xff]  ;;  %s5014_s29 = smov 80   ;;  %vm946_vm6 = vcmask 392448   ;;  %vm1177_vm7 = vcmask 523648   ;;  %vm3231_vm8 = vcmask 1041409  }
  0x21   :  { %224 = vmatpush1.bf16.msra.mxu0 %v3884_v20 }
  0x22   :  { %225 = vmatprep.subr.bf16.mxu0 %v3885_v21 }
  0x23   :  { %116 = vadd.xlane.f32.xlu0 %v115_v3 }
  0x25   :  { %226 = vmatpush1.bf16.msra.mxu0 %v3887_v22 }
  0x26   :  { %3659 = vmatprep.subr.bf16.mxu0 %v4118_v42 }
  0xac   :  { %v114_v4 = vpop.xlane.xlu0 %113 }
  0xad   :  { %v119_v5 = vmul.f32 0.015625, %v114_v4  ;;  %v3317_v4 = vld.sshfl [vmem:[%s5021_s2] sm:$0x11 pattern:$0x75316420] }
  0xaf   :  { %v121_v6 = vsub.f32 %v107_v0, %v119_v5  ;;  %v4121_v0 = vmov 1966171168  }
  0xb0   :  { %v117_v7 = vpop.xlane.xlu0 %116 }
  0xb1   :  { %v120_v8 = vmul.f32 0.015625, %v117_v7  ;;  %v123_v9 = vmul.f32 %v121_v6, %v121_v6 }
  0xb3   :  { %v122_v10 = vsub.f32 %v108_v1, %v120_v8  ;;  %v125_v11 = vsel %vm111_vm0, %v123_v9, 0.0  ;;  %v84_v1 = vunpack.c.l.s4 %v4121_v0 }
  0xb4   :  { %126 = vadd.xlane.f32.xlu1 %v125_v11 }
  0xb5   :  { %v124_v12 = vmul.f32 %v122_v10, %v122_v10  ;;  %v85_v2 = vunpack.c.0.s8 %v84_v1 }
  0xb7   :  { %v128_v13 = vsel %vm111_vm0, %v124_v12, 0.0  ;;  %v88_v3 = vsub.s32 %v85_v2, %v87_v41 }
  0xb8   :  { %129 = vadd.xlane.f32.xlu1 %v128_v13 }
  0xb9   :  { %v89_v5 = vrot.slane %v3317_v4, %v88_v3 }
  0xbb   :  { %v4327_v7 = vrot.slane %v89_v5, %v4283_v43 }
 0x141   :  { %v127_v23 = vpop.xlane.xlu1 %126 }
 0x142   :  { %v131_v24 = vmul.f32 0.015625, %v127_v23 }
 0x144   :  { %v133_v25 = vadd.f32 1e-12, %v131_v24 }
 0x145   :  { %v130_v26 = vpop.xlane.xlu1 %129 }
 0x146   :  { %3968 = vrsqrt.f32 %v133_v25  ;;  %v132_v27 = vmul.f32 0.015625, %v130_v26 }
 0x148   :  { %v134_v28 = vadd.f32 1e-12, %v132_v27 }
 0x14a   :  { %3970 = vrsqrt.f32 %v134_v28 }
 0x150   :  { %v3969_v29 = vpop.eup %3968 }
 0x151   :  { %v137_v30 = vmul.f32 %v3969_v29, %v121_v6  ;;  %v82_v6 = vcombine.high %v3317_v4, %v3317_v4 }
 0x153   :  { %v145_v34 = vmul.f32 %v3318_v31, %v137_v30  ;;  %v96_v9 = vrot.slane %v82_v6, %v88_v3 }
 0x154   :  { %v3971_v32 = vpop.eup %3970 }
 0x155   :  { %v138_v33 = vmul.f32 %v3971_v32, %v122_v10  ;;  %v4274_v37 = vadd.f32 %v3319_v35, %v145_v34  ;;  %v4332_v15 = vrot.slane %v96_v9, %v4283_v43 }
 0x157   :  { %v146_v36 = vmul.f32 %v3318_v31, %v138_v33 }
 0x159   :  { %v4276_v38 = vadd.f32 %v3319_v35, %v146_v36 }
 0x15b   :  { %v155_v39 = vpack.c.bf16 %v4276_v38, %v4274_v37 }
 0x15d   :  { %3328 = vmatmul.mubr.msk.bf16.vlgmr.msra.gmra.mrb[0].mxu0 %vm111_vm0, %v155_v39 }
 0x15e   :  { %3661 = vmatprep.mubr.msk.bf16.mxu0 %vm4119_vm1, %v4118_v42 }
 0x230   :  { %v253_v47 = vpop.f32.mrb[0].mxu0 }
 0x231   :  { %v254_v48 = vadd.f32 %v253_v47, %v169_v45  ;;  %v255_v49 = vpop.f32.mrb[1].mxu0 }
 0x232   :  { %v257_v51 = vpop.f32.mrb[2].mxu0  ;;  %v256_v60 = vadd.f32 %v255_v49, %v173_v50 }
 0x233   :  { %v4296_v52 = vpack.c.bf16 %v254_v48, %v254_v48  ;;  %v258_v53 = vadd.f32 %v257_v51, %v169_v45  ;;  %v259_v54 = vpop.f32.mrb[3].mxu0 }
 0x234   :  { %v4298_v55 = vadd.f32 %v259_v54, %v173_v50  ;;  %v4314_v62 = vpack.c.bf16 %v256_v60, %v256_v60 }
 0x235   :  { %v4300_v56 = vpack.c.bf16 %v258_v53, %v258_v53  ;;  %267 = vrot.lane.b32.xlu0 %v4296_v52, %s4120_s20 }
 0x236   :  { %v395_v63 = vsel %vm393_vm3, %v4314_v62, 0  ;;  %v4350_v41 = vpack.c.bf16 %v4298_v55, %v4298_v55 }
 0x237   :  { %317 = vrot.lane.b32.xlu1 %v4300_v56, %s4120_s20 }
 0x238   :  { %v441_v48 = vsel %vm393_vm3, %v4350_v41, 0 }
 0x2a7   :  { %v268_v57 = vpop.permute.xlu0 %267 }
 0x2a8   :  { %v274_v58 = vsel %vm269_vm2, %v268_v57, 0 }
 0x2a9   :  { %3636 = vmatpush3.bf16.xpose.msra.mxu1 %v274_v58  ;;  %v318_v59 = vpop.permute.xlu1 %317 }
 0x2aa   :  { %3641 = vmatprep.subr.bf16.mxu1 %v4118_v42  ;;  %v323_v61 = vsel %vm269_vm2, %v318_v59, 0 }
 0x2b0   :  { %3638 = vmatmul.mubr.msk.bf16.vlgmr.msra.gmra.mrb[0].mxu1 %vm269_vm2, %v4296_v52 }
 0x2b1   :  { %3642 = vmatpush3.bf16.xpose.msra.mxu1 %v323_v61  ;;  %3643 = vmatprep.mubr.msk.bf16.mxu1 %vm4119_vm1, %v4118_v42 }
 0x2b2   :  { %3647 = vmatprep.subr.bf16.mxu1 %v4118_v42 }
 0x2b8   :  { %3644 = vmatmul.mubr.msk.bf16.vlgmr.msra.gmra.mrb[4].mxu1 %vm269_vm2, %v4300_v56 }
 0x2b9   :  { %3648 = vmatpush3.bf16.msra.mxu1 %v395_v63  ;;  %3649 = vmatprep.mubr.msk.bf16.mxu1 %vm4119_vm1, %v4118_v42 }
 0x2ba   :  { %3653 = vmatprep.subr.bf16.mxu1 %v4118_v42 }
 0x383   :  { %v310_v8 = vpop.f32.mrb[0].mxu1 }
 0x384   :  { %v311_v10 = vadd.f32 %v310_v8, %v4327_v7  ;;  %v3639_v11 = vpop.f32.mrb[1].mxu1 }
 0x385   :  { %v313_v12 = vpop.f32.mrb[2].mxu1 }
 0x386   :  { %v3640_v13 = vpop.f32.mrb[3].mxu1  ;;  %v366_v14 = vsel %vm365_vm4, %v311_v10, -inf }
 0x387   :  { %367 = vmax.xlane.f32.xlu1 %v366_v14 }
 0x38b   :  { %v359_v16 = vpop.f32.mrb[4].mxu1 }
 0x38c   :  { %v360_v17 = vadd.f32 %v359_v16, %v4332_v15  ;;  %v3645_v19 = vpop.f32.mrb[5].mxu1 }
 0x38d   :  { %v362_v20 = vpop.f32.mrb[6].mxu1 }
 0x38e   :  { %v3646_v21 = vpop.f32.mrb[7].mxu1  ;;  %v369_v22 = vsel %vm365_vm4, %v360_v17, -inf }
 0x38f   :  { %370 = vmax.xlane.f32.xlu0 %v369_v22 }
 0x398   :  { %537 = vrot.lane.b32.xlu1 %v4300_v56, %s4122_s23 }
 0x414   :  { %v368_v23 = vpop.xlane.xlu1 %367 }
 0x415   :  { %v372_v24 = vsub.f32 %v311_v10, %v368_v23 }
 0x417   :  { %v374_v25 = vmul.f32 1.442695, %v372_v24 }
 0x418   :  { %v538_v34 = vpop.permute.xlu1 %537 }
 0x419   :  { %3972 = vpow2.f32 %v374_v25  ;;  %v543_v53 = vsel %vm269_vm2, %v538_v34, 0 }
 0x41c   :  { %v371_v26 = vpop.xlane.xlu0 %370 }
 0x41d   :  { %v373_v27 = vsub.f32 %v360_v17, %v371_v26 }
 0x41f   :  { %v376_v28 = vmul.f32 1.442695, %v373_v27 }
 0x421   :  { %3974 = vpow2.f32 %v376_v28 }
 0x423   :  { %v3973_v29 = vpop.eup %3972 }
 0x424   :  { %v378_v30 = vsel %vm365_vm4, %v3973_v29, 0.0 }
 0x425   :  { %379 = vadd.xlane.f32.xlu0 %v378_v30 }
 0x42b   :  { %v3975_v31 = vpop.eup %3974 }
 0x42c   :  { %v381_v32 = vsel %vm365_vm4, %v3975_v31, 0.0 }
 0x42d   :  { %382 = vadd.xlane.f32.xlu1 %v381_v32 }
 0x43b   :  { %487 = vrot.lane.b32.xlu0 %v4296_v52, %s4122_s23 }
 0x43e   :  { %485 = vrot.lane.b32.xlu1 %v4296_v52, %s4123_s24 }
 0x442   :  { %535 = vrot.lane.b32.xlu1 %v4300_v56, %s4123_s24 }
 0x4b2   :  { %v380_v33 = vpop.xlane.xlu0 %379 }
 0x4b3   :  { %3976 = vrcp.f32 %v380_v33 }
 0x4b6   :  { %v488_v35 = vpop.permute.xlu0 %487 }
 0x4b7   :  { %v493_v36 = vsel %vm269_vm2, %v488_v35, 0 }
 0x4b8   :  { %3660 = vmatpush3.bf16.xpose.msra.mxu0 %v493_v36 }
 0x4b9   :  { %3671 = vmatprep.subr.bf16.mxu0 %v4118_v42 }
 0x4ba   :  { %v383_v39 = vpop.xlane.xlu1 %382 }
 0x4bb   :  { %3978 = vrcp.f32 %v383_v39 }
 0x4bd   :  { %v3977_v40 = vpop.eup %3976 }
 0x4be   :  { %v386_v44 = vmul.f32 %v3977_v40, %v3973_v29  ;;  %v486_v45 = vpop.permute.xlu1 %485 }
 0x4bf   :  { %3662 = vmatmul.mubr.msk.bf16.vlgmr.msra.gmra.mrb[4].mxu0 %vm269_vm2, %v486_v45 }
 0x4c0   :  { %v388_v47 = vpack.c.bf16 %v386_v44, %v386_v44  ;;  %3673 = vmatprep.mubr.msk.bf16.mxu0 %vm4119_vm1, %v4118_v42 }
 0x4c2   :  { %3650 = vmatmul.mubr.msk.bf16.vlgmr.msra.gmra.mrb[8].mxu1 %vm365_vm4, %v388_v47  ;;  %v536_v54 = vpop.permute.xlu1 %535 }
 0x4c3   :  { %3654 = vmatpush3.bf16.msra.mxu1 %v441_v48  ;;  %3655 = vmatprep.mubr.msk.bf16.mxu1 %vm4119_vm1, %v4118_v42 }
 0x4c4   :  { %3665 = vmatprep.subr.bf16.mxu1 %v4118_v42 }
 0x4c5   :  { %v3979_v49 = vpop.eup %3978 }
 0x4c6   :  { %v387_v50 = vmul.f32 %v3979_v49, %v3975_v31 }
 0x4c8   :  { %v389_v51 = vpack.c.bf16 %v387_v50, %v387_v50 }
 0x4ca   :  { %3656 = vmatmul.mubr.msk.bf16.vlgmr.msra.gmra.mrb[12].mxu1 %vm365_vm4, %v389_v51 }
 0x4cb   :  { %3667 = vmatprep.mubr.msk.bf16.mxu1 %vm4119_vm1, %v4118_v42 }
 0x4cc   :  { %3666 = vmatpush3.bf16.xpose.msra.mxu1 %v543_v53 }
 0x4cd   :  { %3677 = vmatprep.subr.bf16.mxu1 %v4118_v42 }
 0x4d3   :  { %3668 = vmatmul.mubr.msk.bf16.vlgmr.msra.gmra.mrb[16].mxu1 %vm269_vm2, %v536_v54 }
 0x4d4   :  { %3679 = vmatprep.mubr.msk.bf16.mxu1 %vm4119_vm1, %v4118_v42 }
 0x592   :  { %v529_v55 = vpop.f32.mrb[4].mxu0 }
 0x593   :  { %v530_v57 = vadd.f32 %v529_v55, %v4327_v7  ;;  %v3663_v58 = vpop.f32.mrb[5].mxu0 }
 0x594   :  { %v532_v59 = vpop.f32.mrb[6].mxu0 }
 0x595   :  { %v431_v60 = vpop.f32.mrb[8].mxu1  ;;  %v3664_v61 = vpop.f32.mrb[7].mxu0  ;;  %v585_v63 = vsel %vm365_vm4, %v530_v57, -inf }
 0x596   :  { %483 = vst.msk [vmem:[#allocation2] sm:$0xff] %vm269_vm2, %v431_v60  ;;  %v3651_v0 = vpop.f32.mrb[9].mxu1  ;;  %586 = vmax.xlane.f32.xlu0 %v585_v63 }
 0x597   :  { %v434_v1 = vpop.f32.mrb[10].mxu1 }
 0x598   :  { %v3652_v2 = vpop.f32.mrb[11].mxu1 }
 0x59d   :  { %v477_v3 = vpop.f32.mrb[12].mxu1 }
 0x59e   :  { %484 = vst.msk [vmem:[#allocation2 + $0x8] sm:$0xff] %vm269_vm2, %v477_v3  ;;  %v3657_v4 = vpop.f32.mrb[13].mxu1 }
 0x59f   :  { %v480_v5 = vpop.f32.mrb[14].mxu1 }
 0x5a0   :  { %v3658_v6 = vpop.f32.mrb[15].mxu1 }
 0x5a6   :  { %v579_v8 = vpop.f32.mrb[16].mxu1 }
 0x5a7   :  { %v580_v9 = vadd.f32 %v579_v8, %v4332_v15  ;;  %v3669_v10 = vpop.f32.mrb[17].mxu1 }
 0x5a8   :  { %v582_v11 = vpop.f32.mrb[18].mxu1 }
 0x5a9   :  { %v3670_v12 = vpop.f32.mrb[19].mxu1  ;;  %v588_v13 = vsel %vm365_vm4, %v580_v9, -inf }
 0x5aa   :  { %589 = vmax.xlane.f32.xlu1 %v588_v13 }
 0x5bb   :  { %659 = vrot.lane.b32.xlu1 %v4350_v41, %s4123_s24 }
 0x5bf   :  { %720 = vrot.lane.b32.xlu1 %v4296_v52, %s4124_s25 }
 0x5c3   :  { %770 = vrot.lane.b32.xlu1 %v4300_v56, %s4124_s25 }
 0x5c7   :  { %768 = vrot.lane.b32.xlu1 %v4300_v56, %s4125_s26 }
 0x623   :  { %v587_v14 = vpop.xlane.xlu0 %586 }
 0x624   :  { %v591_v16 = vsub.f32 %v530_v57, %v587_v14 }
 0x626   :  { %v593_v17 = vmul.f32 1.442695, %v591_v16 }
 0x628   :  { %3980 = vpow2.f32 %v593_v17 }
 0x632   :  { %v3981_v19 = vpop.eup %3980 }
 0x633   :  { %v597_v20 = vsel %vm365_vm4, %v3981_v19, 0.0 }
 0x634   :  { %598 = vadd.xlane.f32.xlu0 %v597_v20 }
 0x637   :  { %v590_v21 = vpop.xlane.xlu1 %589 }
 0x638   :  { %v592_v22 = vsub.f32 %v580_v9, %v590_v21 }
 0x63a   :  { %v595_v23 = vmul.f32 1.442695, %v592_v22 }
 0x63b   :  { %v660_v24 = vpop.permute.xlu1 %659 }
 0x63c   :  { %3982 = vpow2.f32 %v595_v23  ;;  %v665_v25 = vsel %vm393_vm3, %v660_v24, 0 }
 0x63d   :  { %3678 = vmatpush3.bf16.msra.mxu1 %v665_v25 }
 0x63e   :  { %3689 = vmatprep.subr.bf16.mxu1 %v4118_v42 }
 0x63f   :  { %v721_v34 = vpop.permute.xlu1 %720 }
 0x640   :  { %v726_v44 = vsel %vm269_vm2, %v721_v34, 0 }
 0x643   :  { %v771_v40 = vpop.permute.xlu1 %770 }
 0x644   :  { %v776_v47 = vsel %vm269_vm2, %v771_v40, 0 }
 0x646   :  { %v3983_v26 = vpop.eup %3982 }
 0x647   :  { %v600_v27 = vsel %vm365_vm4, %v3983_v26, 0.0  ;;  %v769_v49 = vpop.permute.xlu1 %768 }
 0x648   :  { %601 = vadd.xlane.f32.xlu0 %v600_v27 }
 0x65e   :  { %610 = vrot.lane.b32.xlu0 %v4314_v62, %s4123_s24 }
 0x662   :  { %718 = vrot.lane.b32.xlu0 %v4296_v52, %s4125_s26 }
 0x6c1   :  { %v599_v28 = vpop.xlane.xlu0 %598 }
 0x6c2   :  { %3984 = vrcp.f32 %v599_v28 }
 0x6cc   :  { %v3985_v29 = vpop.eup %3984 }
 0x6cd   :  { %v605_v31 = vmul.f32 %v3985_v29, %v3981_v19 }
 0x6cf   :  { %v607_v35 = vpack.c.bf16 %v605_v31, %v605_v31 }
 0x6d5   :  { %v602_v30 = vpop.xlane.xlu0 %601 }
 0x6d6   :  { %3986 = vrcp.f32 %v602_v30 }
 0x6d9   :  { %v611_v32 = vpop.permute.xlu0 %610 }
 0x6da   :  { %v616_v33 = vsel %vm393_vm3, %v611_v32, 0 }
 0x6db   :  { %3672 = vmatpush3.bf16.msra.mxu0 %v616_v33 }
 0x6dc   :  { %3683 = vmatprep.subr.bf16.mxu0 %v4118_v42 }
 0x6dd   :  { %v719_v48 = vpop.permute.xlu0 %718 }
 0x6de   :  { %3674 = vmatmul.mubr.msk.bf16.vlgmr.msra.gmra.mrb[8].mxu0 %vm365_vm4, %v607_v35 }
 0x6df   :  { %3685 = vmatprep.mubr.msk.bf16.mxu0 %vm4119_vm1, %v4118_v42 }
 0x6e0   :  { %v3987_v36 = vpop.eup %3986 }
 0x6e1   :  { %v606_v39 = vmul.f32 %v3987_v36, %v3983_v26 }
 0x6e3   :  { %v608_v45 = vpack.c.bf16 %v606_v39, %v606_v39 }
 0x6e4   :  { %3684 = vmatpush3.bf16.xpose.msra.mxu0 %v726_v44 }
 0x6e5   :  { %3680 = vmatmul.mubr.msk.bf16.vlgmr.msra.gmra.mrb[20].mxu1 %vm365_vm4, %v608_v45  ;;  %3695 = vmatprep.subr.bf16.mxu0 %v4118_v42 }
 0x6e6   :  { %3690 = vmatpush3.bf16.xpose.msra.mxu1 %v776_v47  ;;  %3691 = vmatprep.mubr.msk.bf16.mxu1 %vm4119_vm1, %v4118_v42 }
 0x6e7   :  { %3701 = vmatprep.subr.bf16.mxu1 %v4118_v42 }
 0x6eb   :  { %3686 = vmatmul.mubr.msk.bf16.vlgmr.msra.gmra.mrb[12].mxu0 %vm269_vm2, %v719_v48 }
 0x6ec   :  { %3697 = vmatprep.mubr.msk.bf16.mxu0 %vm4119_vm1, %v4118_v42 }
 0x6ed   :  { %3692 = vmatmul.mubr.msk.bf16.vlgmr.msra.gmra.mrb[24].mxu1 %vm269_vm2, %v769_v49 }
 0x6ee   :  { %3703 = vmatprep.mubr.msk.bf16.mxu1 %vm4119_vm1, %v4118_v42 }
 0x7b1   :  { %v4409_v50 = vpop.f32.mrb[8].mxu0 }
 0x7b2   :  { %v3675_v51 = vpop.f32.mrb[9].mxu0 }
 0x7b3   :  { %v655_v53 = vpop.f32.mrb[10].mxu0 }
 0x7b4   :  { %v3676_v54 = vpop.f32.mrb[11].mxu0 }
 0x7b8   :  { %v4411_v55 = vpop.f32.mrb[20].mxu1 }
 0x7b9   :  { %v3681_v57 = vpop.f32.mrb[21].mxu1 }
 0x7ba   :  { %v704_v58 = vpop.f32.mrb[22].mxu1 }
 0x7bb   :  { %v3682_v59 = vpop.f32.mrb[23].mxu1 }
 0x7be   :  { %v762_v60 = vpop.f32.mrb[12].mxu0 }
 0x7bf   :  { %v763_v61 = vadd.f32 %v762_v60, %v4327_v7  ;;  %v3687_v63 = vpop.f32.mrb[13].mxu0 }
 0x7c0   :  { %v765_v0 = vpop.f32.mrb[14].mxu0  ;;  %v812_v1 = vpop.f32.mrb[24].mxu1 }
 0x7c1   :  { %v813_v2 = vadd.f32 %v812_v1, %v4332_v15  ;;  %v3688_v3 = vpop.f32.mrb[15].mxu0  ;;  %v3693_v4 = vpop.f32.mrb[25].mxu1  ;;  %v818_v5 = vsel %vm365_vm4, %v763_v61, -inf }
 0x7c2   :  { %v815_v6 = vpop.f32.mrb[26].mxu1  ;;  %819 = vmax.xlane.f32.xlu0 %v818_v5 }
 0x7c3   :  { %v3694_v8 = vpop.f32.mrb[27].mxu1  ;;  %v821_v9 = vsel %vm365_vm4, %v813_v2, -inf }
 0x7c4   :  { %822 = vmax.xlane.f32.xlu1 %v821_v9 }
 0x7d5   :  { %890 = vrot.lane.b32.xlu1 %v4350_v41, %s4125_s26 }
 0x7d9   :  { %951 = vrot.lane.b32.xlu1 %v4296_v52, %s4126_s27 }
 0x7dd   :  { %1001 = vrot.lane.b32.xlu1 %v4300_v56, %s4126_s27 }
 0x7e1   :  { %999 = vrot.lane.b32.xlu1 %v4300_v56, %s5014_s29 }
 0x84f   :  { %v820_v10 = vpop.xlane.xlu0 %819 }
 0x850   :  { %v824_v11 = vsub.f32 %v763_v61, %v820_v10 }
 0x851   :  { %v823_v12 = vpop.xlane.xlu1 %822 }
 0x852   :  { %v826_v13 = vmul.f32 1.442695, %v824_v11  ;;  %v825_v14 = vsub.f32 %v813_v2, %v823_v12 }
 0x854   :  { %3988 = vpow2.f32 %v826_v13  ;;  %v828_v16 = vmul.f32 1.442695, %v825_v14 }
 0x855   :  { %v891_v17 = vpop.permute.xlu1 %890 }
 0x856   :  { %3990 = vpow2.f32 %v828_v16  ;;  %v896_v19 = vsel %vm393_vm3, %v891_v17, 0 }
 0x857   :  { %3702 = vmatpush3.bf16.msra.mxu1 %v896_v19 }
 0x858   :  { %3713 = vmatprep.subr.bf16.mxu1 %v4118_v42 }
 0x859   :  { %v952_v28 = vpop.permute.xlu1 %951 }
 0x85d   :  { %v1002_v33 = vpop.permute.xlu1 %1001 }
 0x85e   :  { %v3989_v20 = vpop.eup %3988  ;;  %v1007_v35 = vsel %vm269_vm2, %v1002_v33, 0 }
 0x85f   :  { %v830_v21 = vsel %vm365_vm4, %v3989_v20, 0.0 }
 0x860   :  { %v3991_v22 = vpop.eup %3990  ;;  %831 = vadd.xlane.f32.xlu0 %v830_v21 }
 0x861   :  { %v833_v56 = vsel %vm365_vm4, %v3991_v22, 0.0  ;;  %v1000_v39 = vpop.permute.xlu1 %999 }
 0x864   :  { %834 = vadd.xlane.f32.xlu0 %v833_v56 }
 0x87a   :  { %842 = vrot.lane.b32.xlu0 %v4314_v62, %s4125_s26 }
 0x87e   :  { %949 = vrot.lane.b32.xlu0 %v4296_v52, %s5014_s29  ;;  %v957_v52 = vsel %vm269_vm2, %v952_v28, 0 }
 0x8ed   :  { %v832_v23 = vpop.xlane.xlu0 %831 }
 0x8ee   :  { %3992 = vrcp.f32 %v832_v23 }
 0x8f1   :  { %v835_v24 = vpop.xlane.xlu0 %834 }
 0x8f2   :  { %3994 = vrcp.f32 %v835_v24 }
 0x8f5   :  { %v843_v25 = vpop.permute.xlu0 %842 }
 0x8f6   :  { %v848_v26 = vsel %vm393_vm3, %v843_v25, 0 }
 0x8f7   :  { %3696 = vmatpush3.bf16.msra.mxu0 %v848_v26 }
 0x8f8   :  { %v3993_v27 = vpop.eup %3992  ;;  %3707 = vmatprep.subr.bf16.mxu0 %v4118_v42 }
 0x8f9   :  { %v838_v29 = vmul.f32 %v3993_v27, %v3989_v20  ;;  %v950_v36 = vpop.permute.xlu0 %949 }
 0x8fb   :  { %v840_v30 = vpack.c.bf16 %v838_v29, %v838_v29  ;;  %v3888_v29 = vld [vmem:[%s5000_s6] sm:$0xff]  }
 0x8fc   :  { %v3995_v31 = vpop.eup %3994 }
 0x8fd   :  { %v839_v32 = vmul.f32 %v3995_v31, %v3991_v22  ;;  %3698 = vmatmul.mubr.msk.bf16.vlgmr.msra.gmra.mrb[16].mxu0 %vm365_vm4, %v840_v30  ;;  %v3889_v30 = vld [vmem:[%s5000_s6 + $0x8] sm:$0xff]   ;;  %v3890_v31 = vld [vmem:[%s5000_s6 + $0x10] sm:$0xff]  }
 0x8fe   :  { %3709 = vmatprep.mubr.msk.bf16.mxu0 %vm4119_vm1, %v4118_v42 }
 0x8ff   :  { %v841_v34 = vpack.c.bf16 %v839_v32, %v839_v32  ;;  %v3891_v32 = vld [vmem:[%s5000_s6 + $0x18] sm:$0xff]  }
 0x900   :  { %3708 = vmatpush3.bf16.xpose.msra.mxu0 %v957_v52 }
 0x901   :  { %3704 = vmatmul.mubr.msk.bf16.vlgmr.msra.gmra.mrb[28].mxu1 %vm365_vm4, %v841_v34  ;;  %3719 = vmatprep.subr.bf16.mxu0 %v4118_v42 }
 0x902   :  { %3714 = vmatpush3.bf16.xpose.msra.mxu1 %v1007_v35  ;;  %3715 = vmatprep.mubr.msk.bf16.mxu1 %vm4119_vm1, %v4118_v42 }
 0x903   :  { %3725 = vmatprep.subr.bf16.mxu1 %v4118_v42 }
 0x907   :  { %3710 = vmatmul.mubr.msk.bf16.vlgmr.msra.gmra.mrb[20].mxu0 %vm269_vm2, %v950_v36 }
 0x908   :  { %3721 = vmatprep.mubr.msk.bf16.mxu0 %vm4119_vm1, %v4118_v42 }
 0x909   :  { %3716 = vmatmul.mubr.msk.bf16.vlgmr.msra.gmra.mrb[32].mxu1 %vm269_vm2, %v1000_v39 }
 0x90a   :  { %3727 = vmatprep.mubr.msk.bf16.mxu1 %vm4119_vm1, %v4118_v42 }
 0x9d0   :  { %v884_v40 = vpop.f32.mrb[16].mxu0 }
 0x9d1   :  { %v3699_v44 = vpop.f32.mrb[17].mxu0 }
 0x9d2   :  { %v887_v45 = vpop.f32.mrb[18].mxu0 }
 0x9d3   :  { %v3700_v47 = vpop.f32.mrb[19].mxu0 }
 0x9d4   :  { %v932_v48 = vpop.f32.mrb[28].mxu1 }
 0x9d5   :  { %v3705_v49 = vpop.f32.mrb[29].mxu1 }
 0x9d6   :  { %v935_v51 = vpop.f32.mrb[30].mxu1 }
 0x9d7   :  { %v3706_v53 = vpop.f32.mrb[31].mxu1 }
 0x9d8   :  { %v3345_v53 = vld [vmem:[%s5001_s7] ss:$0 sm:$0xff] }
 0x9da   :  { %v993_v54 = vpop.f32.mrb[20].mxu0 }
 0x9db   :  { %v994_v57 = vadd.f32 %v993_v54, %v4327_v7  ;;  %v3711_v58 = vpop.f32.mrb[21].mxu0 }
 0x9dc   :  { %v996_v59 = vpop.f32.mrb[22].mxu0  ;;  %v1043_v60 = vpop.f32.mrb[32].mxu1 }
 0x9dd   :  { %v1044_v61 = vadd.f32 %v1043_v60, %v4332_v15  ;;  %v3712_v63 = vpop.f32.mrb[23].mxu0  ;;  %v3717_v0 = vpop.f32.mrb[33].mxu1  ;;  %v1049_v1 = vsel %vm365_vm4, %v994_v57, -inf }
 0x9de   :  { %v1046_v2 = vpop.f32.mrb[34].mxu1  ;;  %1050 = vmax.xlane.f32.xlu0 %v1049_v1 }
 0x9df   :  { %v3718_v3 = vpop.f32.mrb[35].mxu1  ;;  %v1052_v4 = vsel %vm365_vm4, %v1044_v61, -inf }
 0x9e0   :  { %1053 = vmax.xlane.f32.xlu1 %v1052_v4 }
 0x9f1   :  { %1121 = vrot.lane.b32.xlu1 %v4350_v41, %s5014_s29 }
 0x9f5   :  { %709 = vrot.lane.b32.xlu1 %v4409_v50, %s4126_s27 }
 0x9f9   :  { %711 = vrot.lane.b32.xlu1 %v4411_v55, %s4126_s27 }
 0x9fd   :  { %942 = vrot.lane.b32.xlu1 %v932_v48, %s4124_s25 }
 0xa6b   :  { %v1051_v5 = vpop.xlane.xlu0 %1050 }
 0xa6c   :  { %v1055_v6 = vsub.f32 %v994_v57, %v1051_v5 }
 0xa6d   :  { %v1054_v8 = vpop.xlane.xlu1 %1053 }
 0xa6e   :  { %v1057_v9 = vmul.f32 1.442695, %v1055_v6  ;;  %v1056_v10 = vsub.f32 %v1044_v61, %v1054_v8 }
 0xa70   :  { %3996 = vpow2.f32 %v1057_v9  ;;  %v1059_v11 = vmul.f32 1.442695, %v1056_v10 }
 0xa71   :  { %v1122_v12 = vpop.permute.xlu1 %1121 }
 0xa72   :  { %3998 = vpow2.f32 %v1059_v11  ;;  %v1127_v13 = vsel %vm393_vm3, %v1122_v12, 0 }
 0xa73   :  { %3726 = vmatpush3.bf16.msra.mxu1 %v1127_v13  ;;  %v3892_v13 = vld [vmem:[%s5004_s10] ss:$8 sps:$4 sm:$0xff]  }
 0xa75   :  { %v710_v41 = vpop.permute.xlu1 %709 }
 0xa76   :  { %716 = vst.msk [vmem:[#allocation2] sm:$0xff] %vm715_vm5, %v710_v41  ;;  %v3897_v41 = vld [vmem:[%s5004_s10 + $0x14] ss:$8 sps:$4 sm:$0xff]  }
 0xa79   :  { %v712_v50 = vpop.permute.xlu1 %711 }
 0xa7a   :  { %v3997_v55 = vpop.eup %3996  ;;  %717 = vst.msk [vmem:[#allocation2 + $0x8] sm:$0xff] %vm715_vm5, %v712_v50  ;;  %v3895_v50 = vld [vmem:[%s5004_s10 + $0x10] ss:$8 sps:$4 sm:$0xff]  }
 0xa7b   :  { %v1061_v14 = vsel %vm365_vm4, %v3997_v55, 0.0 }
 0xa7c   :  { %v3999_v16 = vpop.eup %3998  ;;  %1062 = vadd.xlane.f32.xlu0 %v1061_v14  ;;  %v3898_v14 = vld [vmem:[%s5004_s10 + $0x20] ss:$8 sps:$4 sm:$0xff]  }
 0xa7d   :  { %v943_v17 = vpop.permute.xlu1 %942  ;;  %v1064_v19 = vsel %vm365_vm4, %v3999_v16, 0.0 }
 0xa7e   :  { %948 = vst.msk [vmem:[#allocation2 + $0x8] sm:$0xff] %vm946_vm6, %v943_v17  ;;  %v3903_v17 = vld [vmem:[%s5004_s10 + $0x34] ss:$8 sps:$4 sm:$0xff]  }
 0xa80   :  { %1065 = vadd.xlane.f32.xlu0 %v1064_v19 }
 0xa96   :  { %1073 = vrot.lane.b32.xlu0 %v4314_v62, %s5014_s29 }
 0xa9a   :  { %940 = vrot.lane.b32.xlu0 %v884_v40, %s4124_s25 }
 0xb09   :  { %v1063_v20 = vpop.xlane.xlu0 %1062 }
 0xb0a   :  { %4000 = vrcp.f32 %v1063_v20 }
 0xb0d   :  { %v1066_v21 = vpop.xlane.xlu0 %1065 }
 0xb0e   :  { %4002 = vrcp.f32 %v1066_v21 }
 0xb11   :  { %v1074_v22 = vpop.permute.xlu0 %1073 }
 0xb12   :  { %v1079_v56 = vsel %vm393_vm3, %v1074_v22, 0 }
 0xb13   :  { %3720 = vmatpush3.bf16.msra.mxu0 %v1079_v56 }
 0xb14   :  { %v4001_v23 = vpop.eup %4000  ;;  %3731 = vmatprep.subr.bf16.mxu0 %v4118_v42 }
 0xb15   :  { %v1069_v24 = vmul.f32 %v4001_v23, %v3997_v55  ;;  %v941_v25 = vpop.permute.xlu0 %940  ;;  %v3900_v55 = vld [vmem:[%s5004_s10 + $0x24] ss:$8 sps:$4 sm:$0xff]  }
 0xb16   :  { %947 = vst.msk [vmem:[#allocation2] sm:$0xff] %vm946_vm6, %v941_v25 }
 0xb17   :  { %v1071_v26 = vpack.c.bf16 %v1069_v24, %v1069_v24 }
 0xb18   :  { %v4003_v27 = vpop.eup %4002 }
 0xb19   :  { %v1070_v62 = vmul.f32 %v4003_v27, %v3999_v16  ;;  %3722 = vmatmul.mubr.msk.bf16.vlgmr.msra.gmra.mrb[24].mxu0 %vm365_vm4, %v1071_v26  ;;  %v3901_v16 = vld [vmem:[%s5004_s10 + $0x30] ss:$8 sps:$4 sm:$0xff]   ;;  %v3351_v26 = vld [vmem:[%s5002_s8] ss:$0 sm:$0xff] }
 0xb1a   :  { %3739 = vmatprep.mubr.msk.bf16.mxu0 %vm4119_vm1, %v4118_v42  ;;  %3732 = vmatpush3.bf16.msra.mxu0 %v3888_v29  ;;  %v3352_v29 = vld [vmem:[%s5003_s9] ss:$0 sm:$0xff] }
 0xb1b   :  { %v1072_v28 = vpack.c.bf16 %v1070_v62, %v1070_v62  ;;  %3733 = vmatprep.subr.bf16.mxu0 %v4118_v42 }
 0xb1d   :  { %3728 = vmatmul.mubr.msk.bf16.vlgmr.msra.gmra.mrb[36].mxu1 %vm365_vm4, %v1072_v28 }
 0xb1e   :  { %1408 = vmatprep.mubr.bf16.mxu1 %v4117_v18  ;;  %3734 = vmatpush3.bf16.msra.mxu0 %v3889_v30 }
 0xb1f   :  { %3735 = vmatprep.subr.bf16.mxu0 %v4118_v42 }
 0xb22   :  { %3736 = vmatpush3.bf16.msra.mxu0 %v3890_v31 }
 0xb23   :  { %3737 = vmatprep.subr.bf16.mxu0 %v4118_v42 }
 0xb26   :  { %3738 = vmatpush3.bf16.msra.mxu0 %v3891_v32 }
 0xbec   :  { %v1115_v33 = vpop.f32.mrb[24].mxu0 }
 0xbed   :  { %1171 = vrot.lane.b32.xlu0 %v1115_v33, %s4122_s23  ;;  %v3723_v52 = vpop.f32.mrb[25].mxu0 }
 0xbee   :  { %v1118_v34 = vpop.f32.mrb[26].mxu0  ;;  %v3904_v52 = vld [vmem:[%s5006_s12 + $0x40] sm:$0xff]  }
 0xbef   :  { %v3724_v35 = vpop.f32.mrb[27].mxu0  ;;  %v3905_v34 = vld [vmem:[%s5006_s12] sm:$0xff]   ;;  %3549 = vmatprep.subr.bf16.mxu0 %v3904_v52 }
 0xbf0   :  { %v1163_v36 = vpop.f32.mrb[36].mxu1  ;;  %v3906_v35 = vld [vmem:[%s5006_s12 + $0x48] sm:$0xff]  }
 0xbf1   :  { %1173 = vrot.lane.b32.xlu1 %v1163_v36, %s4122_s23  ;;  %v3729_v39 = vpop.f32.mrb[37].mxu1  ;;  %v3907_v36 = vld [vmem:[%s5006_s12 + $0x8] sm:$0xff]  }
 0xbf2   :  { %v1166_v40 = vpop.f32.mrb[38].mxu1  ;;  %v3908_v39 = vld [vmem:[%s5006_s12 + $0x50] sm:$0xff]  }
 0xbf3   :  { %v3730_v44 = vpop.f32.mrb[39].mxu1  ;;  %v3909_v40 = vld [vmem:[%s5006_s12 + $0x10] sm:$0xff]  }
 0xbf4   :  { %v3910_v44 = vld [vmem:[%s5006_s12 + $0x58] sm:$0xff]  }
 0xc5f   :  { %v1172_v45 = vpop.permute.xlu0 %1171 }
 0xc60   :  { %1178 = vst.msk [vmem:[#allocation2] sm:$0xff] %vm1177_vm7, %v1172_v45  ;;  %v3911_v45 = vld [vmem:[%s5006_s12 + $0x18] sm:$0xff]  }
 0xc63   :  { %v1174_v47 = vpop.permute.xlu1 %1173 }
 0xc64   :  { %1179 = vst.msk [vmem:[#allocation2 + $0x8] sm:$0xff] %vm1177_vm7, %v1174_v47  ;;  %v3912_v47 = vld [vmem:[%s5006_s12 + $0x60] sm:$0xff]  }
 0xc67   :  { %v1180_v48 = vld [vmem:[#allocation2] sm:$0xff] }
 0xc6b   :  { %v1181_v49 = vld [vmem:[#allocation2 + $0x8] sm:$0xff] }
 0xc6c   :  { %v1182_v51 = vpack.c.bf16 %v1181_v49, %v1180_v48  ;;  %v3913_v48 = vld [vmem:[%s5006_s12 + $0x20] sm:$0xff]   ;;  %v3914_v49 = vld [vmem:[%s5006_s12 + $0x68] sm:$0xff]  }
 0xc6e   :  { %3740 = vmatmul.mubr.msk.bf16.vlgmr.msra.gmra.mrb[28].mxu0 %vm111_vm0, %v1182_v51  ;;  %v3915_v51 = vld [vmem:[%s5006_s12 + $0x28] sm:$0xff]  }
 0xc6f   :  { %3550 = vmatpush3.bf16.msra.mxu0 %v3905_v34 }
 0xc70   :  { %3551 = vmatprep.subr.bf16.mxu0 %v3906_v35 }
 0xc73   :  { %3552 = vmatpush3.bf16.msra.mxu0 %v3907_v36 }
 0xc74   :  { %3553 = vmatprep.subr.bf16.mxu0 %v3908_v39 }
 0xc77   :  { %3554 = vmatpush3.bf16.msra.mxu0 %v3909_v40 }
 0xc78   :  { %3555 = vmatprep.subr.bf16.mxu0 %v3910_v44 }
 0xc7b   :  { %3556 = vmatpush3.bf16.msra.mxu0 %v3911_v45 }
 0xc7c   :  { %3557 = vmatprep.subr.bf16.mxu0 %v3912_v47 }
 0xc7f   :  { %3558 = vmatpush3.bf16.msra.mxu0 %v3913_v48 }
 0xc80   :  { %3559 = vmatprep.subr.bf16.mxu0 %v3914_v49  ;;  %v3362_v49 = vld [vmem:[%s5007_s13] ss:$0 sm:$0xff] }
 0xc83   :  { %3560 = vmatpush3.bf16.msra.mxu0 %v3915_v51 }
 0xd41   :  { %v1259_v54 = vpop.f32.mrb[28].mxu0 }
 0xd42   :  { %v1260_v57 = vadd.f32 %v3345_v53, %v1259_v54  ;;  %v3741_v58 = vpop.f32.mrb[29].mxu0  ;;  %v3917_v54 = vld [vmem:[%s5006_s12 + $0x30] sm:$0xff]  }
 0xd43   :  { %v1262_v59 = vpop.f32.mrb[30].mxu0  ;;  %v3919_v58 = vld [vmem:[%s5006_s12 + $0x38] sm:$0xff]  }
 0xd44   :  { %v1263_v60 = vadd.f32 %v3345_v53, %v1262_v59  ;;  %v3742_v61 = vpop.f32.mrb[31].mxu0  ;;  %v1266_v63 = vadd.f32 %v1260_v57, %v4274_v37  ;;  %v3916_v53 = vld [vmem:[%s5006_s12 + $0x70] sm:$0xff]   ;;  %v3918_v57 = vld [vmem:[%s5006_s12 + $0x78] sm:$0xff]   ;;  %v1321_v59 = vld [vmem:[%s5005_s11] sm:$0x3] }
 0xd45   :  { %3561 = vmatprep.subr.bf16.mxu0 %v3916_v53  ;;  %v1330_v61 = vrot.slane %v1321_v59, %v4293_v46 }
 0xd46   :  { %v1270_v0 = vsel %vm111_vm0, %v1266_v63, 0.0  ;;  %v1267_v1 = vadd.f32 %v1263_v60, %v4276_v38  ;;  %v3894_v38 = vld [vmem:[%s5004_s10 + $0x4] ss:$8 sps:$4 sm:$0xff]   ;;  %3562 = vmatpush3.bf16.msra.mxu0 %v3917_v54  ;;  %v1326_v60 = vrot.slane %v1321_v59, %v4283_v43 }
 0xd47   :  { %1271 = vadd.xlane.f32.xlu0 %v1270_v0  ;;  %1376 = vmatprep.subr.bf16.mxu1 %v3894_v38 }
 0xd48   :  { %v1273_v2 = vsel %vm111_vm0, %v1267_v1, 0.0  ;;  %1377 = vmatpush1.bf16.msra.mxu1 %v3892_v13  ;;  %3563 = vmatprep.subr.bf16.mxu0 %v3918_v57 }
 0xd49   :  { %1274 = vadd.xlane.f32.xlu1 %v1273_v2  ;;  %1378 = vmatprep.subr.bf16.mxu1 %v3897_v41 }
 0xd4a   :  { %3564 = vmatpush3.bf16.msra.mxu0 %v3919_v58 }
 0xd4b   :  { %3755 = vmatprep.subr.bf16.mxu0 %v4118_v42 }
 0xd4c   :  { %1379 = vmatpush1.bf16.msra.mxu1 %v3895_v50 }
 0xd4d   :  { %1380 = vmatprep.subr.bf16.mxu1 %v3900_v55 }
 0xd50   :  { %1381 = vmatpush1.bf16.msra.mxu1 %v3898_v14 }
 0xd51   :  { %1382 = vmatprep.subr.bf16.mxu1 %v3903_v17 }
 0xd54   :  { %1383 = vmatpush1.bf16.msra.mxu1 %v3901_v16 }
 0xdd4   :  { %v1272_v3 = vpop.xlane.xlu0 %1271 }
 0xdd5   :  { %v1276_v4 = vmul.f32 0.015625, %v1272_v3 }
 0xdd6   :  { %v1275_v5 = vpop.xlane.xlu1 %1274 }
 0xdd7   :  { %v1278_v6 = vsub.f32 %v1266_v63, %v1276_v4  ;;  %v1277_v8 = vmul.f32 0.015625, %v1275_v5 }
 0xdd9   :  { %v1279_v9 = vsub.f32 %v1267_v1, %v1277_v8  ;;  %v1280_v10 = vmul.f32 %v1278_v6, %v1278_v6 }
 0xddb   :  { %v1282_v11 = vsel %vm111_vm0, %v1280_v10, 0.0  ;;  %v1281_v12 = vmul.f32 %v1279_v9, %v1279_v9 }
 0xddc   :  { %1283 = vadd.xlane.f32.xlu0 %v1282_v11 }
 0xddd   :  { %v1285_v37 = vsel %vm111_vm0, %v1281_v12, 0.0 }
 0xde0   :  { %1286 = vadd.xlane.f32.xlu0 %v1285_v37 }
 0xe69   :  { %v1284_v19 = vpop.xlane.xlu0 %1283 }
 0xe6a   :  { %v1288_v20 = vmul.f32 0.015625, %v1284_v19 }
 0xe6c   :  { %v1290_v21 = vadd.f32 1e-12, %v1288_v20 }
 0xe6d   :  { %v1287_v22 = vpop.xlane.xlu0 %1286 }
 0xe6e   :  { %4004 = vrsqrt.f32 %v1290_v21  ;;  %v1289_v56 = vmul.f32 0.015625, %v1287_v22 }
 0xe70   :  { %v1291_v23 = vadd.f32 1e-12, %v1289_v56 }
 0xe72   :  { %4006 = vrsqrt.f32 %v1291_v23 }
 0xe78   :  { %v4005_v24 = vpop.eup %4004 }
 0xe79   :  { %v1294_v25 = vmul.f32 %v4005_v24, %v1278_v6 }
 0xe7b   :  { %v1302_v62 = vmul.f32 %v3351_v26, %v1294_v25 }
 0xe7c   :  { %v4007_v27 = vpop.eup %4006 }
 0xe7d   :  { %v1295_v28 = vmul.f32 %v4007_v27, %v1279_v9  ;;  %v4538_v31 = vadd.f32 %v3352_v29, %v1302_v62 }
 0xe7f   :  { %v1303_v30 = vmul.f32 %v3351_v26, %v1295_v28 }
 0xe81   :  { %v4540_v32 = vadd.f32 %v3352_v29, %v1303_v30 }
 0xe83   :  { %v1312_v33 = vpack.c.bf16 %v4540_v32, %v4538_v31 }
 0xe85   :  { %3361 = vmatmul.mubr.msk.bf16.vlgmr.msra.gmra.mrb[40].mxu1 %vm111_vm0, %v1312_v33 }
 0xe86   :  { %1777 = vmatprep.mubr.bf16.mxu1 %v4117_v18 }
 0xf58   :  { %v1410_v63 = vpop.f32.mrb[40].mxu1 }
 0xf59   :  { %v1411_v0 = vadd.f32 %v1410_v63, %v1326_v60  ;;  %v1412_v1 = vpop.f32.mrb[41].mxu1 }
 0xf5a   :  { %v1413_v2 = vadd.f32 %v1412_v1, %v1330_v61  ;;  %v1414_v3 = vpop.f32.mrb[42].mxu1 }
 0xf5b   :  { %v1423_v4 = vmul.f32 0.044715, %v1411_v0  ;;  %v1415_v5 = vadd.f32 %v1414_v3, %v1326_v60  ;;  %v1416_v6 = vpop.f32.mrb[43].mxu1  ;;  %v1419_v29 = vmul.f32 0.5, %v1411_v0 }
 0xf5c   :  { %v1424_v8 = vmul.f32 0.044715, %v1413_v2  ;;  %v1417_v9 = vadd.f32 %v1416_v6, %v1330_v61  ;;  %v1420_v52 = vmul.f32 0.5, %v1413_v2 }
 0xf5d   :  { %v1427_v10 = vmul.f32 %v1423_v4, %v1411_v0  ;;  %v1425_v11 = vmul.f32 0.044715, %v1415_v5  ;;  %v1421_v30 = vmul.f32 0.5, %v1415_v5 }
 0xf5e   :  { %v1428_v12 = vmul.f32 %v1424_v8, %v1413_v2  ;;  %v1426_v37 = vmul.f32 0.044715, %v1417_v9  ;;  %v1422_v34 = vmul.f32 0.5, %v1417_v9 }
 0xf5f   :  { %v1431_v38 = vmul.f32 %v1427_v10, %v1411_v0  ;;  %v1429_v13 = vmul.f32 %v1425_v11, %v1415_v5 }
 0xf60   :  { %v1432_v41 = vmul.f32 %v1428_v12, %v1413_v2  ;;  %v1430_v50 = vmul.f32 %v1426_v37, %v1417_v9  ;;  %v3920_v12 = vld [vmem:[%s4998_s4 + $0x40] ss:$8 sps:$4 sm:$0xff]   ;;  %v3925_v37 = vld [vmem:[%s4998_s4 + $0x54] ss:$8 sps:$4 sm:$0xff]  }
 0xf61   :  { %v1435_v55 = vadd.f32 %v1431_v38, %v1411_v0  ;;  %v1433_v14 = vmul.f32 %v1429_v13, %v1415_v5  ;;  %v3923_v38 = vld [vmem:[%s4998_s4 + $0x50] ss:$8 sps:$4 sm:$0xff]   ;;  %v3928_v13 = vld [vmem:[%s4998_s4 + $0x64] ss:$8 sps:$4 sm:$0xff]  }
 0xf62   :  { %v1434_v16 = vmul.f32 %v1430_v50, %v1417_v9  ;;  %v1436_v17 = vadd.f32 %v1432_v41, %v1413_v2  ;;  %v3926_v41 = vld [vmem:[%s4998_s4 + $0x60] ss:$8 sps:$4 sm:$0xff]   ;;  %v3929_v50 = vld [vmem:[%s4998_s4 + $0x70] ss:$8 sps:$4 sm:$0xff]  }
 0xf63   :  { %v1439_v19 = vmul.f32 0.7978846, %v1435_v55  ;;  %v1437_v20 = vadd.f32 %v1433_v14, %v1415_v5  ;;  %v3931_v55 = vld [vmem:[%s4998_s4 + $0x74] ss:$8 sps:$4 sm:$0xff]  }
 0xf64   :  { %v1438_v21 = vadd.f32 %v1434_v16, %v1417_v9  ;;  %v1440_v22 = vmul.f32 0.7978846, %v1436_v17 }
 0xf65   :  { %4008 = vtanh.f32 %v1439_v19  ;;  %v1441_v56 = vmul.f32 0.7978846, %v1437_v20 }
 0xf66   :  { %v1442_v23 = vmul.f32 0.7978846, %v1438_v21  ;;  %4010 = vtanh.f32 %v1440_v22 }
 0xf67   :  { %4012 = vtanh.f32 %v1441_v56  ;;  %v3379_v56 = vld [vmem:[%s5008_s14] ss:$0 sm:$0xff] }
 0xf68   :  { %4014 = vtanh.f32 %v1442_v23 }
 0xf6f   :  { %v4009_v24 = vpop.eup %4008 }
 0xf70   :  { %v4011_v25 = vpop.eup %4010  ;;  %v1447_v26 = vadd.f32 1.0, %v4009_v24 }
 0xf71   :  { %v4013_v27 = vpop.eup %4012  ;;  %v1448_v62 = vadd.f32 1.0, %v4011_v25 }
 0xf72   :  { %v4015_v28 = vpop.eup %4014  ;;  %v1449_v33 = vadd.f32 1.0, %v4013_v27  ;;  %v1451_v36 = vmul.f32 %v1447_v26, %v1419_v29  ;;  %v3380_v27 = vld [vmem:[%s5009_s15] ss:$0 sm:$0xff] }
 0xf73   :  { %v1450_v35 = vadd.f32 1.0, %v4015_v28  ;;  %v1452_v40 = vmul.f32 %v1448_v62, %v1420_v52 }
 0xf74   :  { %v1453_v39 = vmul.f32 %v1449_v33, %v1421_v30  ;;  %v3389_v33 = vld [vmem:[%s4999_s5 + $0x2] sm:$0x3]  ;;  %s5022_s5 = smov 80  }
 0xf75   :  { %v1454_v44 = vmul.f32 %v1450_v35, %v1422_v34  ;;  %v1695_v52 = vrot.slane %v3389_v33, %v4283_v43  ;;  %v1699_v34 = vrot.slane %v3389_v33, %v4293_v46 }
 0xf76   :  { %v1455_v45 = vpack.c.bf16 %v1453_v39, %v1451_v36 }
 0xf77   :  { %v1456_v47 = vpack.c.bf16 %v1454_v44, %v1452_v40 }
 0xf79   :  { %1624 = vmatprep.mubr.bf16.mxu0 %v1456_v47 }
 0xf7a   :  { %1625 = vmatmul.mubr.bf16.vlgmr.msra.gmra.mrb[32].mxu0 %v1455_v45 }
 0xf7b   :  { %3757 = vmatprep.mubr.msk.bf16.mxu0 %vm4119_vm1, %v4118_v42 }
0x104d   :  { %v3565_v48 = vpop.f32.mrb[32].mxu0 }
0x104e   :  { %v3566_v51 = vpop.f32.mrb[33].mxu0 }
0x104f   :  { %v3567_v53 = vadd.f32 %v3566_v51, %v3565_v48  ;;  %v3568_v54 = vpop.f32.mrb[34].mxu0 }
0x1050   :  { %v3569_v57 = vpop.f32.mrb[35].mxu0 }
0x1051   :  { %v1627_v58 = vadd.f32 %v3567_v53, %v3362_v49  ;;  %v3570_v59 = vadd.f32 %v3569_v57, %v3568_v54 }
0x1053   :  { %v1630_v60 = vadd.f32 %v3570_v59, %v3362_v49  ;;  %v1633_v61 = vadd.f32 %v1627_v58, %v4538_v31 }
0x1055   :  { %v1637_v63 = vsel %vm111_vm0, %v1633_v61, 0.0  ;;  %v1634_v0 = vadd.f32 %v1630_v60, %v4540_v32  ;;  %v3922_v32 = vld [vmem:[%s4998_s4 + $0x44] ss:$8 sps:$4 sm:$0xff]  }
0x1056   :  { %1638 = vadd.xlane.f32.xlu0 %v1637_v63  ;;  %1745 = vmatprep.subr.bf16.mxu1 %v3922_v32 }
0x1057   :  { %v1640_v1 = vsel %vm111_vm0, %v1634_v0, 0.0  ;;  %1746 = vmatpush1.bf16.msra.mxu1 %v3920_v12 }
0x1058   :  { %1641 = vadd.xlane.f32.xlu1 %v1640_v1  ;;  %1747 = vmatprep.subr.bf16.mxu1 %v3925_v37 }
0x105b   :  { %1748 = vmatpush1.bf16.msra.mxu1 %v3923_v38 }
0x105c   :  { %1749 = vmatprep.subr.bf16.mxu1 %v3928_v13 }
0x105f   :  { %1750 = vmatpush1.bf16.msra.mxu1 %v3926_v41 }
0x1060   :  { %1751 = vmatprep.subr.bf16.mxu1 %v3931_v55 }
0x1063   :  { %1752 = vmatpush1.bf16.msra.mxu1 %v3929_v50 }
0x1064   :  { %3743 = vmatprep.subr.bf16.mxu1 %v4118_v42 }
0x10e3   :  { %v1639_v2 = vpop.xlane.xlu0 %1638 }
0x10e4   :  { %v1643_v3 = vmul.f32 0.015625, %v1639_v2 }
0x10e5   :  { %v1642_v4 = vpop.xlane.xlu1 %1641 }
0x10e6   :  { %v1645_v5 = vsub.f32 %v1633_v61, %v1643_v3  ;;  %v1644_v6 = vmul.f32 0.015625, %v1642_v4 }
0x10e8   :  { %v1646_v8 = vsub.f32 %v1634_v0, %v1644_v6  ;;  %v1647_v9 = vmul.f32 %v1645_v5, %v1645_v5 }
0x10ea   :  { %v1649_v10 = vsel %vm111_vm0, %v1647_v9, 0.0  ;;  %v1648_v11 = vmul.f32 %v1646_v8, %v1646_v8 }
0x10eb   :  { %1650 = vadd.xlane.f32.xlu0 %v1649_v10 }
0x10ec   :  { %v1652_v31 = vsel %vm111_vm0, %v1648_v11, 0.0 }
0x10ed   :  { %1653 = vadd.xlane.f32.xlu1 %v1652_v31 }
0x1178   :  { %v1651_v14 = vpop.xlane.xlu0 %1650 }
0x1179   :  { %v1655_v16 = vmul.f32 0.015625, %v1651_v14 }
0x117a   :  { %v1654_v17 = vpop.xlane.xlu1 %1653 }
0x117b   :  { %v1657_v19 = vadd.f32 1e-12, %v1655_v16  ;;  %v1656_v20 = vmul.f32 0.015625, %v1654_v17 }
0x117d   :  { %4016 = vrsqrt.f32 %v1657_v19  ;;  %v1658_v21 = vadd.f32 1e-12, %v1656_v20 }
0x117f   :  { %4018 = vrsqrt.f32 %v1658_v21 }
0x1187   :  { %v4017_v22 = vpop.eup %4016 }
0x1188   :  { %v1661_v23 = vmul.f32 %v4017_v22, %v1645_v5 }
0x1189   :  { %v4019_v24 = vpop.eup %4018 }
0x118a   :  { %v1669_v25 = vmul.f32 %v3379_v56, %v1661_v23  ;;  %v1662_v26 = vmul.f32 %v4019_v24, %v1646_v8 }
0x118c   :  { %v1670_v62 = vmul.f32 %v3379_v56, %v1662_v26  ;;  %v4642_v28 = vadd.f32 %v3380_v27, %v1669_v25 }
0x118e   :  { %v4644_v29 = vadd.f32 %v3380_v27, %v1670_v62 }
0x1190   :  { %v1679_v30 = vpack.c.bf16 %v4644_v29, %v4642_v28 }
0x1192   :  { %3398 = vmatmul.mubr.msk.bf16.vlgmr.msra.gmra.mrb[44].mxu1 %vm111_vm0, %v1679_v30 }
0x1193   :  { %3745 = vmatprep.mubr.msk.bf16.mxu1 %vm4119_vm1, %v4118_v42 }
0x1265   :  { %v1779_v35 = vpop.f32.mrb[44].mxu1 }
0x1266   :  { %v1780_v36 = vadd.f32 %v1779_v35, %v1695_v52  ;;  %v1781_v39 = vpop.f32.mrb[45].mxu1 }
0x1267   :  { %v1782_v40 = vadd.f32 %v1781_v39, %v1699_v34  ;;  %v1783_v44 = vpop.f32.mrb[46].mxu1 }
0x1268   :  { %v4656_v45 = vpack.c.bf16 %v1780_v36, %v1780_v36  ;;  %v1784_v47 = vadd.f32 %v1783_v44, %v1695_v52  ;;  %v1785_v48 = vpop.f32.mrb[47].mxu1 }
0x1269   :  { %v4658_v49 = vpack.c.bf16 %v1782_v40, %v1782_v40  ;;  %v1786_v51 = vadd.f32 %v1785_v48, %v1699_v34 }
0x126a   :  { %v4660_v53 = vpack.c.bf16 %v1784_v47, %v1784_v47  ;;  %1793 = vrot.lane.b32.xlu0 %v4656_v45, %s4120_s20 }
0x126b   :  { %v1918_v54 = vsel %vm393_vm3, %v4658_v49, 0  ;;  %v4677_v61 = vpack.c.bf16 %v1786_v51, %v1786_v51 }
0x126c   :  { %1842 = vrot.lane.b32.xlu1 %v4660_v53, %s4120_s20  ;;  %3756 = vmatpush3.bf16.msra.mxu0 %v1918_v54 }
0x126d   :  { %3767 = vmatprep.subr.bf16.mxu0 %v4118_v42  ;;  %v1964_v63 = vsel %vm393_vm3, %v4677_v61, 0 }
0x12dc   :  { %v1794_v57 = vpop.permute.xlu0 %1793 }
0x12dd   :  { %v1799_v58 = vsel %vm269_vm2, %v1794_v57, 0 }
0x12de   :  { %3744 = vmatpush3.bf16.xpose.msra.mxu1 %v1799_v58  ;;  %v1843_v59 = vpop.permute.xlu1 %1842 }
0x12df   :  { %3749 = vmatprep.subr.bf16.mxu1 %v4118_v42  ;;  %v1848_v60 = vsel %vm269_vm2, %v1843_v59, 0 }
0x12e5   :  { %3746 = vmatmul.mubr.msk.bf16.vlgmr.msra.gmra.mrb[48].mxu1 %vm269_vm2, %v4656_v45 }
0x12e6   :  { %3750 = vmatpush3.bf16.xpose.msra.mxu1 %v1848_v60  ;;  %3751 = vmatprep.mubr.msk.bf16.mxu1 %vm4119_vm1, %v4118_v42 }
0x12e7   :  { %3761 = vmatprep.subr.bf16.mxu1 %v4118_v42 }
0x12ed   :  { %3752 = vmatmul.mubr.msk.bf16.vlgmr.msra.gmra.mrb[52].mxu1 %vm269_vm2, %v4660_v53 }
0x12ee   :  { %3762 = vmatpush3.bf16.msra.mxu1 %v1964_v63  ;;  %3763 = vmatprep.mubr.msk.bf16.mxu1 %vm4119_vm1, %v4118_v42 }
0x12ef   :  { %3773 = vmatprep.subr.bf16.mxu1 %v4118_v42 }
0x13b8   :  { %v1835_v0 = vpop.f32.mrb[48].mxu1 }
0x13b9   :  { %v1836_v1 = vadd.f32 %v1835_v0, %v4327_v7  ;;  %v3747_v2 = vpop.f32.mrb[49].mxu1 }
0x13ba   :  { %v1838_v3 = vpop.f32.mrb[50].mxu1 }
0x13bb   :  { %v3748_v4 = vpop.f32.mrb[51].mxu1  ;;  %v1890_v5 = vsel %vm365_vm4, %v1836_v1, -inf }
0x13bc   :  { %1891 = vmax.xlane.f32.xlu1 %v1890_v5 }
0x13c0   :  { %v1884_v6 = vpop.f32.mrb[52].mxu1 }
0x13c1   :  { %v1885_v8 = vadd.f32 %v1884_v6, %v4332_v15  ;;  %v3753_v9 = vpop.f32.mrb[53].mxu1 }
0x13c2   :  { %v1887_v10 = vpop.f32.mrb[54].mxu1 }
0x13c3   :  { %v3754_v11 = vpop.f32.mrb[55].mxu1  ;;  %v1893_v31 = vsel %vm365_vm4, %v1885_v8, -inf }
0x13c4   :  { %1894 = vmax.xlane.f32.xlu0 %v1893_v31 }
0x13cd   :  { %2060 = vrot.lane.b32.xlu1 %v4660_v53, %s4122_s23 }
0x1449   :  { %v1892_v32 = vpop.xlane.xlu1 %1891 }
0x144a   :  { %v1896_v12 = vsub.f32 %v1836_v1, %v1892_v32 }
0x144c   :  { %v1898_v37 = vmul.f32 1.442695, %v1896_v12 }
0x144d   :  { %v2061_v19 = vpop.permute.xlu1 %2060 }
0x144e   :  { %4020 = vpow2.f32 %v1898_v37  ;;  %v2066_v30 = vsel %vm269_vm2, %v2061_v19, 0 }
0x1451   :  { %v1895_v38 = vpop.xlane.xlu0 %1894 }
0x1452   :  { %v1897_v13 = vsub.f32 %v1885_v8, %v1895_v38 }
0x1454   :  { %v1900_v41 = vmul.f32 1.442695, %v1897_v13 }
0x1456   :  { %4022 = vpow2.f32 %v1900_v41 }
0x1458   :  { %v4021_v50 = vpop.eup %4020 }
0x1459   :  { %v1902_v55 = vsel %vm365_vm4, %v4021_v50, 0.0 }
0x145a   :  { %1903 = vadd.xlane.f32.xlu0 %v1902_v55 }
0x1460   :  { %v4023_v14 = vpop.eup %4022 }
0x1461   :  { %v1905_v16 = vsel %vm365_vm4, %v4023_v14, 0.0 }
0x1462   :  { %1906 = vadd.xlane.f32.xlu1 %v1905_v16 }
0x1470   :  { %2010 = vrot.lane.b32.xlu0 %v4656_v45, %s4122_s23 }
0x1473   :  { %2008 = vrot.lane.b32.xlu1 %v4656_v45, %s4123_s24 }
0x1477   :  { %2058 = vrot.lane.b32.xlu1 %v4660_v53, %s4123_s24 }
0x14e7   :  { %v1904_v17 = vpop.xlane.xlu0 %1903 }
0x14e8   :  { %4024 = vrcp.f32 %v1904_v17 }
0x14eb   :  { %v2011_v56 = vpop.permute.xlu0 %2010 }
0x14ec   :  { %v2016_v24 = vsel %vm269_vm2, %v2011_v56, 0 }
0x14ef   :  { %v1907_v20 = vpop.xlane.xlu1 %1906 }
0x14f0   :  { %4026 = vrcp.f32 %v1907_v20 }
0x14f2   :  { %v4025_v21 = vpop.eup %4024 }
0x14f3   :  { %v1910_v22 = vmul.f32 %v4025_v21, %v4021_v50  ;;  %v2009_v62 = vpop.permute.xlu1 %2008 }
0x14f5   :  { %v1912_v23 = vpack.c.bf16 %v1910_v22, %v1910_v22 }
0x14f7   :  { %3758 = vmatmul.mubr.msk.bf16.vlgmr.msra.gmra.mrb[36].mxu0 %vm365_vm4, %v1912_v23  ;;  %v2059_v33 = vpop.permute.xlu1 %2058 }
0x14f8   :  { %3768 = vmatpush3.bf16.xpose.msra.mxu0 %v2016_v24  ;;  %3769 = vmatprep.mubr.msk.bf16.mxu0 %vm4119_vm1, %v4118_v42 }
0x14f9   :  { %3779 = vmatprep.subr.bf16.mxu0 %v4118_v42 }
0x14fa   :  { %v4027_v25 = vpop.eup %4026 }
0x14fb   :  { %v1911_v26 = vmul.f32 %v4027_v25, %v4023_v14 }
0x14fd   :  { %v1913_v27 = vpack.c.bf16 %v1911_v26, %v1911_v26 }
0x14ff   :  { %3764 = vmatmul.mubr.msk.bf16.vlgmr.msra.gmra.mrb[56].mxu1 %vm365_vm4, %v1913_v27  ;;  %3770 = vmatmul.mubr.msk.bf16.vlgmr.msra.gmra.mrb[40].mxu0 %vm269_vm2, %v2009_v62 }
0x1500   :  { %3774 = vmatpush3.bf16.xpose.msra.mxu1 %v2066_v30  ;;  %3775 = vmatprep.mubr.msk.bf16.mxu1 %vm4119_vm1, %v4118_v42 }
0x1501   :  { %3785 = vmatprep.subr.bf16.mxu1 %v4118_v42  ;;  %3781 = vmatprep.mubr.msk.bf16.mxu0 %vm4119_vm1, %v4118_v42 }
0x1507   :  { %3776 = vmatmul.mubr.msk.bf16.vlgmr.msra.gmra.mrb[60].mxu1 %vm269_vm2, %v2059_v33 }
0x1508   :  { %3787 = vmatprep.mubr.msk.bf16.mxu1 %vm4119_vm1, %v4118_v42 }
0x15ca   :  { %v1954_v52 = vpop.f32.mrb[36].mxu0 }
0x15cb   :  { %2006 = vst.msk [vmem:[#allocation2] sm:$0xff] %vm269_vm2, %v1954_v52  ;;  %v3759_v34 = vpop.f32.mrb[37].mxu0 }
0x15cc   :  { %v1957_v35 = vpop.f32.mrb[38].mxu0 }
0x15cd   :  { %v3760_v36 = vpop.f32.mrb[39].mxu0 }
0x15d2   :  { %v2000_v39 = vpop.f32.mrb[56].mxu1  ;;  %v2052_v40 = vpop.f32.mrb[40].mxu0 }
0x15d3   :  { %2007 = vst.msk [vmem:[#allocation2 + $0x8] sm:$0xff] %vm269_vm2, %v2000_v39  ;;  %v2053_v44 = vadd.f32 %v2052_v40, %v4327_v7  ;;  %v3765_v47 = vpop.f32.mrb[57].mxu1  ;;  %v3771_v48 = vpop.f32.mrb[41].mxu0 }
0x15d4   :  { %v2003_v51 = vpop.f32.mrb[58].mxu1  ;;  %v2055_v54 = vpop.f32.mrb[42].mxu0 }
0x15d5   :  { %v3766_v57 = vpop.f32.mrb[59].mxu1  ;;  %v3772_v58 = vpop.f32.mrb[43].mxu0  ;;  %v2108_v59 = vsel %vm365_vm4, %v2053_v44, -inf }
0x15d6   :  { %2109 = vmax.xlane.f32.xlu0 %v2108_v59 }
0x15da   :  { %v2102_v60 = vpop.f32.mrb[60].mxu1 }
0x15db   :  { %v2103_v63 = vadd.f32 %v2102_v60, %v4332_v15  ;;  %v3777_v0 = vpop.f32.mrb[61].mxu1 }
0x15dc   :  { %v2105_v1 = vpop.f32.mrb[62].mxu1 }
0x15dd   :  { %v3778_v2 = vpop.f32.mrb[63].mxu1  ;;  %v2111_v3 = vsel %vm365_vm4, %v2103_v63, -inf }
0x15de   :  { %2112 = vmax.xlane.f32.xlu1 %v2111_v3 }
0x15ef   :  { %2182 = vrot.lane.b32.xlu1 %v4677_v61, %s4123_s24 }
0x15f3   :  { %2242 = vrot.lane.b32.xlu1 %v4656_v45, %s4124_s25 }
0x15f7   :  { %2292 = vrot.lane.b32.xlu1 %v4660_v53, %s4124_s25 }
0x15fb   :  { %2290 = vrot.lane.b32.xlu1 %v4660_v53, %s4125_s26 }
0x1663   :  { %v2110_v4 = vpop.xlane.xlu0 %2109 }
0x1664   :  { %v2114_v5 = vsub.f32 %v2053_v44, %v2110_v4 }
0x1666   :  { %v2116_v6 = vmul.f32 1.442695, %v2114_v5 }
0x1668   :  { %4028 = vpow2.f32 %v2116_v6 }
0x166b   :  { %v2113_v8 = vpop.xlane.xlu1 %2112 }
0x166c   :  { %v2115_v9 = vsub.f32 %v2103_v63, %v2113_v8 }
0x166e   :  { %v2118_v10 = vmul.f32 1.442695, %v2115_v9 }
0x166f   :  { %v2183_v11 = vpop.permute.xlu1 %2182 }
0x1670   :  { %4030 = vpow2.f32 %v2118_v10  ;;  %v2188_v31 = vsel %vm393_vm3, %v2183_v11, 0 }
0x1671   :  { %3786 = vmatpush3.bf16.msra.mxu1 %v2188_v31 }
0x1672   :  { %v4029_v32 = vpop.eup %4028  ;;  %3797 = vmatprep.subr.bf16.mxu1 %v4118_v42 }
0x1673   :  { %v2120_v12 = vsel %vm365_vm4, %v4029_v32, 0.0  ;;  %v2243_v19 = vpop.permute.xlu1 %2242 }
0x1674   :  { %2121 = vadd.xlane.f32.xlu0 %v2120_v12  ;;  %v2248_v56 = vsel %vm269_vm2, %v2243_v19, 0 }
0x1677   :  { %v2293_v22 = vpop.permute.xlu1 %2292 }
0x1678   :  { %v2298_v24 = vsel %vm269_vm2, %v2293_v22, 0 }
0x167a   :  { %v4031_v37 = vpop.eup %4030 }
0x167b   :  { %v2123_v38 = vsel %vm365_vm4, %v4031_v37, 0.0  ;;  %v2291_v26 = vpop.permute.xlu1 %2290 }
0x167c   :  { %2124 = vadd.xlane.f32.xlu0 %v2123_v38 }
0x1692   :  { %2133 = vrot.lane.b32.xlu0 %v4658_v49, %s4123_s24 }
0x1696   :  { %2240 = vrot.lane.b32.xlu0 %v4656_v45, %s4125_s26 }
0x1701   :  { %v2122_v13 = vpop.xlane.xlu0 %2121 }
0x1702   :  { %4032 = vrcp.f32 %v2122_v13 }
0x1709   :  { %v2125_v41 = vpop.xlane.xlu0 %2124 }
0x170a   :  { %4034 = vrcp.f32 %v2125_v41 }
0x170c   :  { %v4033_v50 = vpop.eup %4032 }
0x170d   :  { %v2128_v55 = vmul.f32 %v4033_v50, %v4029_v32  ;;  %v2134_v14 = vpop.permute.xlu0 %2133 }
0x170e   :  { %v2139_v16 = vsel %vm393_vm3, %v2134_v14, 0 }
0x170f   :  { %3780 = vmatpush3.bf16.msra.mxu0 %v2139_v16  ;;  %v2130_v17 = vpack.c.bf16 %v2128_v55, %v2128_v55 }
0x1710   :  { %3791 = vmatprep.subr.bf16.mxu0 %v4118_v42 }
0x1711   :  { %v2241_v25 = vpop.permute.xlu0 %2240 }
0x1712   :  { %3782 = vmatmul.mubr.msk.bf16.vlgmr.msra.gmra.mrb[44].mxu0 %vm365_vm4, %v2130_v17 }
0x1713   :  { %3793 = vmatprep.mubr.msk.bf16.mxu0 %vm4119_vm1, %v4118_v42 }
0x1714   :  { %v4035_v20 = vpop.eup %4034 }
0x1715   :  { %v2129_v21 = vmul.f32 %v4035_v20, %v4031_v37 }
0x1717   :  { %v2131_v23 = vpack.c.bf16 %v2129_v21, %v2129_v21 }
0x1718   :  { %3792 = vmatpush3.bf16.xpose.msra.mxu0 %v2248_v56 }
0x1719   :  { %3788 = vmatmul.mubr.msk.bf16.vlgmr.msra.gmra.mrb[64].mxu1 %vm365_vm4, %v2131_v23  ;;  %3803 = vmatprep.subr.bf16.mxu0 %v4118_v42 }
0x171a   :  { %3798 = vmatpush3.bf16.xpose.msra.mxu1 %v2298_v24  ;;  %3799 = vmatprep.mubr.msk.bf16.mxu1 %vm4119_vm1, %v4118_v42 }
0x171b   :  { %3809 = vmatprep.subr.bf16.mxu1 %v4118_v42 }
0x171f   :  { %3794 = vmatmul.mubr.msk.bf16.vlgmr.msra.gmra.mrb[48].mxu0 %vm269_vm2, %v2241_v25 }
0x1720   :  { %3805 = vmatprep.mubr.msk.bf16.mxu0 %vm4119_vm1, %v4118_v42 }
0x1721   :  { %3800 = vmatmul.mubr.msk.bf16.vlgmr.msra.gmra.mrb[68].mxu1 %vm269_vm2, %v2291_v26 }
0x1722   :  { %3811 = vmatprep.mubr.msk.bf16.mxu1 %vm4119_vm1, %v4118_v42 }
0x17e5   :  { %v4756_v27 = vpop.f32.mrb[44].mxu0 }
0x17e6   :  { %v3783_v62 = vpop.f32.mrb[45].mxu0 }
0x17e7   :  { %v2178_v30 = vpop.f32.mrb[46].mxu0 }
0x17e8   :  { %v3784_v33 = vpop.f32.mrb[47].mxu0 }
0x17ec   :  { %v4758_v52 = vpop.f32.mrb[64].mxu1 }
0x17ed   :  { %v3789_v34 = vpop.f32.mrb[65].mxu1 }
0x17ee   :  { %v2227_v35 = vpop.f32.mrb[66].mxu1 }
0x17ef   :  { %v3790_v36 = vpop.f32.mrb[67].mxu1 }
0x17f2   :  { %v2284_v39 = vpop.f32.mrb[48].mxu0 }
0x17f3   :  { %v2285_v40 = vadd.f32 %v2284_v39, %v4327_v7  ;;  %v3795_v44 = vpop.f32.mrb[49].mxu0 }
0x17f4   :  { %v2287_v47 = vpop.f32.mrb[50].mxu0  ;;  %v2334_v48 = vpop.f32.mrb[68].mxu1 }
0x17f5   :  { %v2335_v51 = vadd.f32 %v2334_v48, %v4332_v15  ;;  %v3796_v54 = vpop.f32.mrb[51].mxu0  ;;  %v3801_v57 = vpop.f32.mrb[69].mxu1  ;;  %v2340_v58 = vsel %vm365_vm4, %v2285_v40, -inf }
0x17f6   :  { %2341 = vmax.xlane.f32.xlu0 %v2340_v58  ;;  %v2337_v59 = vpop.f32.mrb[70].mxu1 }
0x17f7   :  { %v3802_v60 = vpop.f32.mrb[71].mxu1  ;;  %v2343_v63 = vsel %vm365_vm4, %v2335_v51, -inf }
0x17f8   :  { %2344 = vmax.xlane.f32.xlu1 %v2343_v63 }
0x1809   :  { %2412 = vrot.lane.b32.xlu1 %v4677_v61, %s4125_s26 }
0x180d   :  { %2472 = vrot.lane.b32.xlu1 %v4656_v45, %s4126_s27 }
0x1811   :  { %2522 = vrot.lane.b32.xlu1 %v4660_v53, %s4126_s27 }
0x1815   :  { %2520 = vrot.lane.b32.xlu1 %v4660_v53, %s5022_s5 }
0x1883   :  { %v2342_v0 = vpop.xlane.xlu0 %2341 }
0x1884   :  { %v2346_v1 = vsub.f32 %v2285_v40, %v2342_v0 }
0x1885   :  { %v2345_v2 = vpop.xlane.xlu1 %2344 }
0x1886   :  { %v2348_v3 = vmul.f32 1.442695, %v2346_v1  ;;  %v2347_v4 = vsub.f32 %v2335_v51, %v2345_v2 }
0x1888   :  { %4036 = vpow2.f32 %v2348_v3  ;;  %v2350_v5 = vmul.f32 1.442695, %v2347_v4 }
0x1889   :  { %v2413_v6 = vpop.permute.xlu1 %2412 }
0x188a   :  { %4038 = vpow2.f32 %v2350_v5  ;;  %v2418_v8 = vsel %vm393_vm3, %v2413_v6, 0 }
0x188b   :  { %3810 = vmatpush3.bf16.msra.mxu1 %v2418_v8 }
0x188c   :  { %3821 = vmatprep.subr.bf16.mxu1 %v4118_v42 }
0x188d   :  { %v2473_v13 = vpop.permute.xlu1 %2472 }
0x1891   :  { %v2523_v16 = vpop.permute.xlu1 %2522 }
0x1892   :  { %v4037_v9 = vpop.eup %4036  ;;  %v2528_v19 = vsel %vm269_vm2, %v2523_v16, 0 }
0x1893   :  { %v2352_v10 = vsel %vm365_vm4, %v4037_v9, 0.0 }
0x1894   :  { %v4039_v11 = vpop.eup %4038  ;;  %2353 = vadd.xlane.f32.xlu0 %v2352_v10 }
0x1895   :  { %v2355_v53 = vsel %vm365_vm4, %v4039_v11, 0.0  ;;  %v2521_v21 = vpop.permute.xlu1 %2520 }
0x1898   :  { %2356 = vadd.xlane.f32.xlu0 %v2355_v53 }
0x18ae   :  { %2364 = vrot.lane.b32.xlu0 %v4658_v49, %s4125_s26 }
0x18b2   :  { %2470 = vrot.lane.b32.xlu0 %v4656_v45, %s5022_s5  ;;  %v2478_v45 = vsel %vm269_vm2, %v2473_v13, 0  ;;  %v3933_v13 = vld [vmem:[%s5000_s6 + $0x28] sm:$0xff]  }
0x1921   :  { %v2354_v31 = vpop.xlane.xlu0 %2353 }
0x1922   :  { %4040 = vrcp.f32 %v2354_v31 }
0x1925   :  { %v2357_v32 = vpop.xlane.xlu0 %2356 }
0x1926   :  { %4042 = vrcp.f32 %v2357_v32 }
0x1929   :  { %v2365_v12 = vpop.permute.xlu0 %2364 }
0x192a   :  { %v2370_v37 = vsel %vm393_vm3, %v2365_v12, 0 }
0x192b   :  { %3804 = vmatpush3.bf16.msra.mxu0 %v2370_v37 }
0x192c   :  { %v4041_v38 = vpop.eup %4040  ;;  %3815 = vmatprep.subr.bf16.mxu0 %v4118_v42 }
0x192d   :  { %v2360_v41 = vmul.f32 %v4041_v38, %v4037_v9  ;;  %v2471_v20 = vpop.permute.xlu0 %2470  ;;  %v3932_v38 = vld [vmem:[%s5000_s6 + $0x20] sm:$0xff]  }
0x192f   :  { %v2362_v50 = vpack.c.bf16 %v2360_v41, %v2360_v41  ;;  %v3934_v41 = vld [vmem:[%s5000_s6 + $0x30] sm:$0xff]  }
0x1930   :  { %v4043_v55 = vpop.eup %4042 }
0x1931   :  { %v2361_v14 = vmul.f32 %v4043_v55, %v4039_v11  ;;  %3806 = vmatmul.mubr.msk.bf16.vlgmr.msra.gmra.mrb[52].mxu0 %vm365_vm4, %v2362_v50 }
0x1932   :  { %3817 = vmatprep.mubr.msk.bf16.mxu0 %vm4119_vm1, %v4118_v42 }
0x1933   :  { %v2363_v17 = vpack.c.bf16 %v2361_v14, %v2361_v14 }
0x1934   :  { %3816 = vmatpush3.bf16.xpose.msra.mxu0 %v2478_v45 }
0x1935   :  { %3812 = vmatmul.mubr.msk.bf16.vlgmr.msra.gmra.mrb[72].mxu1 %vm365_vm4, %v2363_v17  ;;  %3827 = vmatprep.subr.bf16.mxu0 %v4118_v42 }
0x1936   :  { %3822 = vmatpush3.bf16.xpose.msra.mxu1 %v2528_v19  ;;  %3823 = vmatprep.mubr.msk.bf16.mxu1 %vm4119_vm1, %v4118_v42 }
0x1937   :  { %3833 = vmatprep.subr.bf16.mxu1 %v4118_v42 }
0x193b   :  { %3818 = vmatmul.mubr.msk.bf16.vlgmr.msra.gmra.mrb[56].mxu0 %vm269_vm2, %v2471_v20 }
0x193c   :  { %3829 = vmatprep.mubr.msk.bf16.mxu0 %vm4119_vm1, %v4118_v42 }
0x193d   :  { %3824 = vmatmul.mubr.msk.bf16.vlgmr.msra.gmra.mrb[76].mxu1 %vm269_vm2, %v2521_v21 }
0x193e   :  { %3835 = vmatprep.mubr.msk.bf16.mxu1 %vm4119_vm1, %v4118_v42 }
0x1a04   :  { %v2406_v22 = vpop.f32.mrb[52].mxu0 }
0x1a05   :  { %v3807_v56 = vpop.f32.mrb[53].mxu0 }
0x1a06   :  { %v2409_v23 = vpop.f32.mrb[54].mxu0 }
0x1a07   :  { %v3808_v24 = vpop.f32.mrb[55].mxu0 }
0x1a08   :  { %v2454_v25 = vpop.f32.mrb[72].mxu1 }
0x1a09   :  { %v3813_v26 = vpop.f32.mrb[73].mxu1 }
0x1a0a   :  { %v2457_v62 = vpop.f32.mrb[74].mxu1 }
0x1a0b   :  { %v3814_v30 = vpop.f32.mrb[75].mxu1 }
0x1a0e   :  { %v2514_v33 = vpop.f32.mrb[56].mxu0 }
0x1a0f   :  { %v2515_v34 = vadd.f32 %v2514_v33, %v4327_v7  ;;  %v3819_v35 = vpop.f32.mrb[57].mxu0 }
0x1a10   :  { %v2517_v36 = vpop.f32.mrb[58].mxu0  ;;  %v2564_v39 = vpop.f32.mrb[76].mxu1 }
0x1a11   :  { %v2565_v40 = vadd.f32 %v2564_v39, %v4332_v15  ;;  %v3820_v44 = vpop.f32.mrb[59].mxu0  ;;  %v3825_v47 = vpop.f32.mrb[77].mxu1  ;;  %v2570_v48 = vsel %vm365_vm4, %v2515_v34, -inf }
0x1a12   :  { %2571 = vmax.xlane.f32.xlu0 %v2570_v48  ;;  %v2567_v51 = vpop.f32.mrb[78].mxu1 }
0x1a13   :  { %v3826_v54 = vpop.f32.mrb[79].mxu1  ;;  %v2573_v57 = vsel %vm365_vm4, %v2565_v40, -inf }
0x1a14   :  { %2574 = vmax.xlane.f32.xlu1 %v2573_v57 }
0x1a25   :  { %2642 = vrot.lane.b32.xlu1 %v4677_v61, %s5022_s5 }
0x1a29   :  { %2232 = vrot.lane.b32.xlu1 %v4756_v27, %s4126_s27 }
0x1a2d   :  { %2234 = vrot.lane.b32.xlu1 %v4758_v52, %s4126_s27 }
0x1a31   :  { %2464 = vrot.lane.b32.xlu1 %v2454_v25, %s4124_s25  ;;  %v3424_v25 = vld [vmem:[%s5001_s7 + $0x1] ss:$0 sm:$0xff] }
0x1a9f   :  { %v2572_v7 = vpop.xlane.xlu0 %2571 }
0x1aa0   :  { %v2576_v15 = vsub.f32 %v2515_v34, %v2572_v7 }
0x1aa1   :  { %v2575_v58 = vpop.xlane.xlu1 %2574 }
0x1aa2   :  { %v2578_v59 = vmul.f32 1.442695, %v2576_v15  ;;  %v2577_v60 = vsub.f32 %v2565_v40, %v2575_v58 }
0x1aa4   :  { %4044 = vpow2.f32 %v2578_v59  ;;  %v2580_v63 = vmul.f32 1.442695, %v2577_v60  ;;  %v3936_v60 = vld [vmem:[%s5004_s10 + $0x40] ss:$8 sps:$4 sm:$0xff]  }
0x1aa5   :  { %v2643_v0 = vpop.permute.xlu1 %2642 }
0x1aa6   :  { %4046 = vpow2.f32 %v2580_v63  ;;  %v2648_v1 = vsel %vm393_vm3, %v2643_v0, 0  ;;  %v3941_v63 = vld [vmem:[%s5004_s10 + $0x54] ss:$8 sps:$4 sm:$0xff]   ;;  %v3939_v0 = vld [vmem:[%s5004_s10 + $0x50] ss:$8 sps:$4 sm:$0xff]  }
0x1aa7   :  { %3834 = vmatpush3.bf16.msra.mxu1 %v2648_v1  ;;  %v3944_v1 = vld [vmem:[%s5004_s10 + $0x64] ss:$8 sps:$4 sm:$0xff]  }
0x1aa9   :  { %v2233_v61 = vpop.permute.xlu1 %2232 }
0x1aaa   :  { %2238 = vst.msk [vmem:[#allocation2] sm:$0xff] %vm715_vm5, %v2233_v61  ;;  %v3942_v61 = vld [vmem:[%s5004_s10 + $0x60] ss:$8 sps:$4 sm:$0xff]  }
0x1aad   :  { %v2235_v27 = vpop.permute.xlu1 %2234 }
0x1aae   :  { %v4045_v2 = vpop.eup %4044  ;;  %2239 = vst.msk [vmem:[#allocation2 + $0x8] sm:$0xff] %vm715_vm5, %v2235_v27  ;;  %v3945_v27 = vld [vmem:[%s5004_s10 + $0x70] ss:$8 sps:$4 sm:$0xff]  }
0x1aaf   :  { %v2582_v52 = vsel %vm365_vm4, %v4045_v2, 0.0 }
0x1ab0   :  { %v4047_v3 = vpop.eup %4046  ;;  %2583 = vadd.xlane.f32.xlu0 %v2582_v52 }
0x1ab1   :  { %v2465_v4 = vpop.permute.xlu1 %2464  ;;  %v2585_v5 = vsel %vm365_vm4, %v4047_v3, 0.0 }
0x1ab2   :  { %2469 = vst.msk [vmem:[#allocation2 + $0x8] sm:$0xff] %vm946_vm6, %v2465_v4 }
0x1ab4   :  { %2586 = vadd.xlane.f32.xlu0 %v2585_v5 }
0x1aca   :  { %2594 = vrot.lane.b32.xlu0 %v4658_v49, %s5022_s5 }
0x1ace   :  { %2462 = vrot.lane.b32.xlu0 %v2406_v22, %s4124_s25 }
0x1b3d   :  { %v2584_v6 = vpop.xlane.xlu0 %2583 }
0x1b3e   :  { %4048 = vrcp.f32 %v2584_v6 }
0x1b41   :  { %v2587_v8 = vpop.xlane.xlu0 %2586 }
0x1b42   :  { %4050 = vrcp.f32 %v2587_v8 }
0x1b45   :  { %v2595_v9 = vpop.permute.xlu0 %2594 }
0x1b46   :  { %v2600_v10 = vsel %vm393_vm3, %v2595_v9, 0 }
0x1b47   :  { %3828 = vmatpush3.bf16.msra.mxu0 %v2600_v10 }
0x1b48   :  { %v4049_v11 = vpop.eup %4048  ;;  %3839 = vmatprep.subr.bf16.mxu0 %v4118_v42 }
0x1b49   :  { %v2590_v53 = vmul.f32 %v4049_v11, %v4045_v2  ;;  %v2463_v31 = vpop.permute.xlu0 %2462  ;;  %v3947_v2 = vld [vmem:[%s5004_s10 + $0x74] ss:$8 sps:$4 sm:$0xff]   ;;  %v3432_v11 = vld [vmem:[%s5002_s8 + $0x1] ss:$0 sm:$0xff] }
0x1b4a   :  { %2468 = vst.msk [vmem:[#allocation2] sm:$0xff] %vm946_vm6, %v2463_v31 }
0x1b4b   :  { %v2592_v32 = vpack.c.bf16 %v2590_v53, %v2590_v53 }
0x1b4c   :  { %v4051_v12 = vpop.eup %4050 }
0x1b4d   :  { %v2591_v49 = vmul.f32 %v4051_v12, %v4047_v3  ;;  %3830 = vmatmul.mubr.msk.bf16.vlgmr.msra.gmra.mrb[60].mxu0 %vm365_vm4, %v2592_v32  ;;  %v3433_v12 = vld [vmem:[%s5003_s9 + $0x1] ss:$0 sm:$0xff] }
0x1b4e   :  { %3847 = vmatprep.mubr.msk.bf16.mxu0 %vm4119_vm1, %v4118_v42  ;;  %3840 = vmatpush3.bf16.msra.mxu0 %v3932_v38 }
0x1b4f   :  { %v2593_v37 = vpack.c.bf16 %v2591_v49, %v2591_v49  ;;  %3841 = vmatprep.subr.bf16.mxu0 %v4118_v42 }
0x1b51   :  { %3836 = vmatmul.mubr.msk.bf16.vlgmr.msra.gmra.mrb[80].mxu1 %vm365_vm4, %v2593_v37 }
0x1b52   :  { %2934 = vmatprep.mubr.bf16.mxu1 %v4117_v18  ;;  %3842 = vmatpush3.bf16.msra.mxu0 %v3933_v13  ;;  %v3935_v18 = vld [vmem:[%s5000_s6 + $0x38] sm:$0xff]  }
0x1b53   :  { %3843 = vmatprep.subr.bf16.mxu0 %v4118_v42 }
0x1b56   :  { %3844 = vmatpush3.bf16.msra.mxu0 %v3934_v41  ;;  %v3948_v41 = vld [vmem:[%s5006_s12 + $0xc0] sm:$0xff]  }
0x1b57   :  { %3845 = vmatprep.subr.bf16.mxu0 %v4118_v42 }
0x1b5a   :  { %3846 = vmatpush3.bf16.msra.mxu0 %v3935_v18  ;;  %v3949_v18 = vld [vmem:[%s5006_s12 + $0x80] sm:$0xff]  }
0x1b5b   :  { %3608 = vmatprep.subr.bf16.mxu0 %v3948_v41 }
0x1c20   :  { %v2636_v50 = vpop.f32.mrb[60].mxu0 }
0x1c21   :  { %2692 = vrot.lane.b32.xlu0 %v2636_v50, %s4122_s23  ;;  %v3831_v55 = vpop.f32.mrb[61].mxu0  ;;  %v3950_v50 = vld [vmem:[%s5006_s12 + $0xc8] sm:$0xff]  }
0x1c22   :  { %v2639_v14 = vpop.f32.mrb[62].mxu0  ;;  %v3951_v55 = vld [vmem:[%s5006_s12 + $0x88] sm:$0xff]  }
0x1c23   :  { %v3832_v16 = vpop.f32.mrb[63].mxu0  ;;  %v3952_v14 = vld [vmem:[%s5006_s12 + $0xd0] sm:$0xff]  }
0x1c24   :  { %v2684_v45 = vpop.f32.mrb[80].mxu1  ;;  %v3953_v16 = vld [vmem:[%s5006_s12 + $0x90] sm:$0xff]  }
0x1c25   :  { %2694 = vrot.lane.b32.xlu1 %v2684_v45, %s4122_s23  ;;  %v3837_v17 = vpop.f32.mrb[81].mxu1  ;;  %v3954_v45 = vld [vmem:[%s5006_s12 + $0xd8] sm:$0xff]  }
0x1c26   :  { %v2687_v19 = vpop.f32.mrb[82].mxu1  ;;  %v3955_v17 = vld [vmem:[%s5006_s12 + $0x98] sm:$0xff]  }
0x1c27   :  { %v3838_v20 = vpop.f32.mrb[83].mxu1  ;;  %v3956_v19 = vld [vmem:[%s5006_s12 + $0xe0] sm:$0xff]  }
0x1c28   :  { %v3957_v20 = vld [vmem:[%s5006_s12 + $0xa0] sm:$0xff]  }
0x1c93   :  { %v2693_v21 = vpop.permute.xlu0 %2692 }
0x1c94   :  { %2698 = vst.msk [vmem:[#allocation2] sm:$0xff] %vm1177_vm7, %v2693_v21  ;;  %v3958_v21 = vld [vmem:[%s5006_s12 + $0xe8] sm:$0xff]  }
0x1c97   :  { %v2695_v22 = vpop.permute.xlu1 %2694 }
0x1c98   :  { %2699 = vst.msk [vmem:[#allocation2 + $0x8] sm:$0xff] %vm1177_vm7, %v2695_v22  ;;  %v3959_v22 = vld [vmem:[%s5006_s12 + $0xa8] sm:$0xff]  }
0x1c9b   :  { %v2700_v56 = vld [vmem:[#allocation2] sm:$0xff] }
0x1c9f   :  { %v2701_v23 = vld [vmem:[#allocation2 + $0x8] sm:$0xff] }
0x1ca0   :  { %v2702_v24 = vpack.c.bf16 %v2701_v23, %v2700_v56  ;;  %v3960_v56 = vld [vmem:[%s5006_s12 + $0xf0] sm:$0xff]  }
0x1ca1   :  { %v3961_v23 = vld [vmem:[%s5006_s12 + $0xb0] sm:$0xff]  }
0x1ca2   :  { %3848 = vmatmul.mubr.msk.bf16.vlgmr.msra.gmra.mrb[64].mxu0 %vm111_vm0, %v2702_v24  ;;  %v3962_v24 = vld [vmem:[%s5006_s12 + $0xf8] sm:$0xff]  }
0x1ca3   :  { %3609 = vmatpush3.bf16.msra.mxu0 %v3949_v18 }
0x1ca4   :  { %3610 = vmatprep.subr.bf16.mxu0 %v3950_v50 }
0x1ca7   :  { %3611 = vmatpush3.bf16.msra.mxu0 %v3951_v55 }
0x1ca8   :  { %3612 = vmatprep.subr.bf16.mxu0 %v3952_v14 }
0x1cab   :  { %3613 = vmatpush3.bf16.msra.mxu0 %v3953_v16  ;;  %v3485_v16 = vld [vmem:[%s5007_s13 + $0x1] ss:$0 sm:$0xff] }
0x1cac   :  { %3614 = vmatprep.subr.bf16.mxu0 %v3954_v45 }
0x1caf   :  { %3615 = vmatpush3.bf16.msra.mxu0 %v3955_v17 }
0x1cb0   :  { %3616 = vmatprep.subr.bf16.mxu0 %v3956_v19 }
0x1cb3   :  { %3617 = vmatpush3.bf16.msra.mxu0 %v3957_v20 }
0x1cb4   :  { %3618 = vmatprep.subr.bf16.mxu0 %v3958_v21 }
0x1cb7   :  { %3619 = vmatpush3.bf16.msra.mxu0 %v3959_v22 }
0x1cb8   :  { %3620 = vmatprep.subr.bf16.mxu0 %v3960_v56 }
0x1cbb   :  { %3621 = vmatpush3.bf16.msra.mxu0 %v3961_v23 }
0x1cbc   :  { %3622 = vmatprep.subr.bf16.mxu0 %v3962_v24 }
0x1d75   :  { %v2781_v26 = vpop.f32.mrb[64].mxu0 }
0x1d76   :  { %v2782_v62 = vadd.f32 %v3424_v25, %v2781_v26  ;;  %v3849_v30 = vpop.f32.mrb[65].mxu0  ;;  %v3442_v26 = vld [vmem:[%s5005_s11 + $0x2] sm:$0x3] }
0x1d77   :  { %v2784_v33 = vpop.f32.mrb[66].mxu0  ;;  %v2856_v30 = vrot.slane %v3442_v26, %v4293_v46 }
0x1d78   :  { %v2785_v34 = vadd.f32 %v3424_v25, %v2784_v33  ;;  %v3850_v35 = vpop.f32.mrb[67].mxu0  ;;  %v2788_v36 = vadd.f32 %v2782_v62, %v4642_v28  ;;  %v3963_v25 = vld [vmem:[%s5006_s12 + $0xb8] sm:$0xff]   ;;  %v2852_v62 = vrot.slane %v3442_v26, %v4283_v43 }
0x1d79   :  { %3623 = vmatpush3.bf16.msra.mxu0 %v3963_v25 }
0x1d7a   :  { %v2789_v39 = vadd.f32 %v2785_v34, %v4644_v29  ;;  %v2794_v40 = vsel %vm111_vm0, %v2788_v36, 0.0  ;;  %v3938_v29 = vld [vmem:[%s5004_s10 + $0x44] ss:$8 sps:$4 sm:$0xff]  }
0x1d7b   :  { %2795 = vadd.xlane.f32.xlu0 %v2794_v40  ;;  %2902 = vmatprep.subr.bf16.mxu1 %v3938_v29 }
0x1d7c   :  { %v2797_v44 = vsel %vm111_vm0, %v2789_v39, 0.0  ;;  %2903 = vmatpush1.bf16.msra.mxu1 %v3936_v60 }
0x1d7d   :  { %2798 = vadd.xlane.f32.xlu1 %v2797_v44  ;;  %2904 = vmatprep.subr.bf16.mxu1 %v3941_v63 }
0x1d80   :  { %2905 = vmatpush1.bf16.msra.mxu1 %v3939_v0 }
0x1d81   :  { %2906 = vmatprep.subr.bf16.mxu1 %v3944_v1 }
0x1d84   :  { %2907 = vmatpush1.bf16.msra.mxu1 %v3942_v61 }
0x1d85   :  { %2908 = vmatprep.subr.bf16.mxu1 %v3947_v2 }
0x1d88   :  { %2909 = vmatpush1.bf16.msra.mxu1 %v3945_v27 }
0x1d89   :  { %3851 = vmatprep.subr.bf16.mxu1 %v4118_v42 }
0x1e08   :  { %v2796_v47 = vpop.xlane.xlu0 %2795 }
0x1e09   :  { %v2800_v48 = vmul.f32 0.015625, %v2796_v47 }
0x1e0a   :  { %v2799_v51 = vpop.xlane.xlu1 %2798 }
0x1e0b   :  { %v2802_v54 = vsub.f32 %v2788_v36, %v2800_v48  ;;  %v2801_v57 = vmul.f32 0.015625, %v2799_v51 }
0x1e0d   :  { %v2803_v7 = vsub.f32 %v2789_v39, %v2801_v57  ;;  %v2804_v15 = vmul.f32 %v2802_v54, %v2802_v54 }
0x1e0f   :  { %v2806_v58 = vsel %vm111_vm0, %v2804_v15, 0.0  ;;  %v2805_v59 = vmul.f32 %v2803_v7, %v2803_v7 }
0x1e10   :  { %2807 = vadd.xlane.f32.xlu0 %v2806_v58 }
0x1e11   :  { %v2809_v28 = vsel %vm111_vm0, %v2805_v59, 0.0 }
0x1e14   :  { %2810 = vadd.xlane.f32.xlu0 %v2809_v28 }
0x1e9d   :  { %v2808_v52 = vpop.xlane.xlu0 %2807 }
0x1e9e   :  { %v2812_v3 = vmul.f32 0.015625, %v2808_v52 }
0x1ea0   :  { %v2814_v4 = vadd.f32 1e-12, %v2812_v3 }
0x1ea1   :  { %v2811_v5 = vpop.xlane.xlu0 %2810 }
0x1ea2   :  { %4052 = vrsqrt.f32 %v2814_v4  ;;  %v2813_v6 = vmul.f32 0.015625, %v2811_v5 }
0x1ea4   :  { %v2815_v8 = vadd.f32 1e-12, %v2813_v6 }
0x1ea6   :  { %4054 = vrsqrt.f32 %v2815_v8 }
0x1eac   :  { %v4053_v9 = vpop.eup %4052 }
0x1ead   :  { %v2818_v10 = vmul.f32 %v4053_v9, %v2802_v54 }
0x1eaf   :  { %v2826_v31 = vmul.f32 %v3432_v11, %v2818_v10 }
0x1eb0   :  { %v4055_v53 = vpop.eup %4054 }
0x1eb1   :  { %v2819_v32 = vmul.f32 %v4055_v53, %v2803_v7  ;;  %v4886_v37 = vadd.f32 %v3433_v12, %v2826_v31 }
0x1eb3   :  { %v2827_v49 = vmul.f32 %v3432_v11, %v2819_v32 }
0x1eb5   :  { %v4888_v38 = vadd.f32 %v3433_v12, %v2827_v49 }
0x1eb7   :  { %v2836_v13 = vpack.c.bf16 %v4888_v38, %v4886_v37 }
0x1eb9   :  { %3451 = vmatmul.mubr.msk.bf16.vlgmr.msra.gmra.mrb[84].mxu1 %vm111_vm0, %v2836_v13 }
0x1eba   :  { %3859 = vmatprep.mubr.msk.bf16.mxu1 %vm4119_vm1, %v4118_v42 }
0x1f8c   :  { %v2936_v33 = vpop.f32.mrb[84].mxu1 }
0x1f8d   :  { %v2937_v34 = vadd.f32 %v2936_v33, %v2852_v62  ;;  %v2938_v35 = vpop.f32.mrb[85].mxu1 }
0x1f8e   :  { %v2939_v36 = vadd.f32 %v2938_v35, %v2856_v30  ;;  %v2940_v39 = vpop.f32.mrb[86].mxu1 }
0x1f8f   :  { %v2949_v40 = vmul.f32 0.044715, %v2937_v34  ;;  %v2941_v44 = vadd.f32 %v2940_v39, %v2852_v62  ;;  %v2942_v47 = vpop.f32.mrb[87].mxu1  ;;  %v2945_v10 = vmul.f32 0.5, %v2937_v34 }
0x1f90   :  { %v2950_v48 = vmul.f32 0.044715, %v2939_v36  ;;  %v2943_v51 = vadd.f32 %v2942_v47, %v2856_v30  ;;  %v2946_v31 = vmul.f32 0.5, %v2939_v36  ;;  %v3965_v47 = vld [vmem:[%s5010_s16 + $0x8] sm:$0xff]  }
0x1f91   :  { %v2953_v54 = vmul.f32 %v2949_v40, %v2937_v34  ;;  %v2951_v57 = vmul.f32 0.044715, %v2941_v44  ;;  %v2947_v11 = vmul.f32 0.5, %v2941_v44 }
0x1f92   :  { %v2954_v7 = vmul.f32 %v2950_v48, %v2939_v36  ;;  %v2952_v15 = vmul.f32 0.044715, %v2943_v51  ;;  %v2948_v32 = vmul.f32 0.5, %v2943_v51  ;;  %v3966_v48 = vld [vmem:[%s5010_s16 + $0x10] sm:$0xff]  }
0x1f93   :  { %v2957_v58 = vmul.f32 %v2953_v54, %v2937_v34  ;;  %v2955_v59 = vmul.f32 %v2951_v57, %v2941_v44 }
0x1f94   :  { %v2958_v28 = vmul.f32 %v2954_v7, %v2939_v36  ;;  %v2956_v43 = vmul.f32 %v2952_v15, %v2943_v51 }
0x1f95   :  { %v2961_v29 = vadd.f32 %v2957_v58, %v2937_v34  ;;  %v2959_v46 = vmul.f32 %v2955_v59, %v2941_v44 }
0x1f96   :  { %v2960_v60 = vmul.f32 %v2956_v43, %v2943_v51  ;;  %v2962_v63 = vadd.f32 %v2958_v28, %v2939_v36  ;;  %v3504_v43 = vld [vmem:[%s5008_s14 + $0x1] ss:$0 sm:$0xff] }
0x1f97   :  { %v2965_v0 = vmul.f32 0.7978846, %v2961_v29  ;;  %v2963_v1 = vadd.f32 %v2959_v46, %v2941_v44 }
0x1f98   :  { %v2964_v61 = vadd.f32 %v2960_v60, %v2943_v51  ;;  %v2966_v27 = vmul.f32 0.7978846, %v2962_v63  ;;  %v3967_v51 = vld [vmem:[%s5010_s16 + $0x18] sm:$0xff]  }
0x1f99   :  { %4056 = vtanh.f32 %v2965_v0  ;;  %v2967_v2 = vmul.f32 0.7978846, %v2963_v1 }
0x1f9a   :  { %v2968_v52 = vmul.f32 0.7978846, %v2964_v61  ;;  %4058 = vtanh.f32 %v2966_v27 }
0x1f9b   :  { %4060 = vtanh.f32 %v2967_v2 }
0x1f9c   :  { %4062 = vtanh.f32 %v2968_v52 }
0x1fa3   :  { %v4057_v3 = vpop.eup %4056 }
0x1fa4   :  { %v4059_v4 = vpop.eup %4058  ;;  %v2973_v5 = vadd.f32 1.0, %v4057_v3 }
0x1fa5   :  { %v4061_v6 = vpop.eup %4060  ;;  %v2974_v8 = vadd.f32 1.0, %v4059_v4 }
0x1fa6   :  { %v4063_v9 = vpop.eup %4062  ;;  %v2975_v53 = vadd.f32 1.0, %v4061_v6  ;;  %v2977_v49 = vmul.f32 %v2973_v5, %v2945_v10 }
0x1fa7   :  { %v2976_v12 = vadd.f32 1.0, %v4063_v9  ;;  %v2978_v41 = vmul.f32 %v2974_v8, %v2946_v31  ;;  %v3506_v8 = vld [vmem:[%s5011_s17] ss:$0 sm:$0xff] }
0x1fa8   :  { %v2979_v13 = vmul.f32 %v2975_v53, %v2947_v11 }
0x1fa9   :  { %v2980_v18 = vmul.f32 %v2976_v12, %v2948_v32 }
0x1faa   :  { %v2981_v50 = vpack.c.bf16 %v2979_v13, %v2977_v49 }
0x1fab   :  { %v2982_v55 = vpack.c.bf16 %v2980_v18, %v2978_v41 }
0x1fad   :  { %3152 = vmatprep.mubr.bf16.mxu0 %v2982_v55 }
0x1fae   :  { %3153 = vmatmul.mubr.bf16.vlgmr.msra.gmra.mrb[68].mxu0 %v2981_v50 }
0x2081   :  { %v3624_v14 = vpop.f32.mrb[68].mxu0 }
0x2082   :  { %v3625_v45 = vpop.f32.mrb[69].mxu0 }
0x2083   :  { %v3626_v17 = vadd.f32 %v3625_v45, %v3624_v14  ;;  %v3627_v19 = vpop.f32.mrb[70].mxu0 }
0x2084   :  { %v3628_v20 = vpop.f32.mrb[71].mxu0 }
0x2085   :  { %v3155_v21 = vadd.f32 %v3626_v17, %v3485_v16  ;;  %v3629_v22 = vadd.f32 %v3628_v20, %v3627_v19 }
0x2087   :  { %v3158_v56 = vadd.f32 %v3629_v22, %v3485_v16  ;;  %v3161_v23 = vadd.f32 %v3155_v21, %v4886_v37 }
0x2089   :  { %v3167_v24 = vsel %vm111_vm0, %v3161_v23, 0.0  ;;  %v3162_v25 = vadd.f32 %v3158_v56, %v4888_v38  ;;  %v3964_v38 = vld [vmem:[%s5010_s16] sm:$0xff]  }
0x208a   :  { %3168 = vadd.xlane.f32.xlu1 %v3167_v24  ;;  %3852 = vmatpush3.bf16.msra.mxu1 %v3964_v38 }
0x208b   :  { %v3170_v26 = vsel %vm111_vm0, %v3162_v25, 0.0  ;;  %3853 = vmatprep.subr.bf16.mxu1 %v4118_v42 }
0x208c   :  { %3171 = vadd.xlane.f32.xlu0 %v3170_v26 }
0x208e   :  { %3854 = vmatpush3.bf16.msra.mxu1 %v3965_v47 }
0x208f   :  { %3855 = vmatprep.subr.bf16.mxu1 %v4118_v42 }
0x2092   :  { %3856 = vmatpush3.bf16.msra.mxu1 %v3966_v48 }
0x2093   :  { %3857 = vmatprep.subr.bf16.mxu1 %v4118_v42  ;;  %v3505_v42 = vld [vmem:[%s5009_s15 + $0x1] ss:$0 sm:$0xff]  ;;  %s4128_s15 = smov [#allocation6]  }
0x2094   :  { %s3308_s6 = sshll.u32 %s4128_s15, 4  ;;  %s3309_s6 = int_to_ptr.vmem [resolvable:$true] %s3308_s6 }
0x2095   :  { %s4090_s8 = scalar_lea.vmem %s3309_s6, 32  ;;  %p4095_p9 = scmp.lt.s32.totalorder %s3309_s6, %s3309_s6 }
0x2096   :  { %3858 = vmatpush3.bf16.msra.mxu1 %v3967_v51  ;;  %p4091_p8 = scmp.ne.s32.totalorder %s3309_s6, %s4090_s8  ;;  %p4096_p10 = scmp.lt.s32.totalorder %s4090_s8, %s4090_s8 }
0x2098   :  { %p4097_p11 = por %p4096_p10, %p4095_p9 }
0x209a   :  { %p4098_p12 = pnand %p4097_p11, %p4091_p8 }
0x2117   :  { %v3169_v62 = vpop.xlane.xlu1 %3168 }
0x2118   :  { %v3173_v30 = vmul.f32 0.015625, %v3169_v62 }
0x2119   :  { %v3172_v33 = vpop.xlane.xlu0 %3171 }
0x211a   :  { %v3175_v34 = vsub.f32 %v3161_v23, %v3173_v30  ;;  %v3174_v35 = vmul.f32 0.015625, %v3172_v33 }
0x211c   :  { %v3176_v36 = vsub.f32 %v3162_v25, %v3174_v35  ;;  %v3177_v39 = vmul.f32 %v3175_v34, %v3175_v34 }
0x211e   :  { %v3179_v40 = vsel %vm111_vm0, %v3177_v39, 0.0  ;;  %v3178_v44 = vmul.f32 %v3176_v36, %v3176_v36 }
0x211f   :  { %3180 = vadd.xlane.f32.xlu1 %v3179_v40 }
0x2120   :  { %v3182_v37 = vsel %vm111_vm0, %v3178_v44, 0.0 }
0x2121   :  { %3183 = vadd.xlane.f32.xlu0 %v3182_v37 }
0x21ac   :  { %v3181_v54 = vpop.xlane.xlu1 %3180 }
0x21ad   :  { %v3185_v57 = vmul.f32 0.015625, %v3181_v54 }
0x21ae   :  { %v3184_v7 = vpop.xlane.xlu0 %3183 }
0x21af   :  { %v3187_v15 = vadd.f32 1e-12, %v3185_v57  ;;  %v3186_v58 = vmul.f32 0.015625, %v3184_v7 }
0x21b1   :  { %4064 = vrsqrt.f32 %v3187_v15  ;;  %v3188_v59 = vadd.f32 1e-12, %v3186_v58 }
0x21b3   :  { %4066 = vrsqrt.f32 %v3188_v59 }
0x21bb   :  { %v4065_v28 = vpop.eup %4064 }
0x21bc   :  { %v3191_v29 = vmul.f32 %v4065_v28, %v3175_v34 }
0x21bd   :  { %v4067_v46 = vpop.eup %4066 }
0x21be   :  { %v3199_v60 = vmul.f32 %v3504_v43, %v3191_v29  ;;  %v3192_v63 = vmul.f32 %v4067_v46, %v3176_v36 }
0x21c0   :  { %v3207_v0 = vadd.f32 %v3505_v42, %v3199_v60  ;;  %v3200_v1 = vmul.f32 %v3504_v43, %v3192_v63 }
0x21c2   :  { %v3208_v61 = vadd.f32 %v3505_v42, %v3200_v1  ;;  %v3209_v27 = vpack.c.bf16 %v3207_v0, %v3207_v0 }
0x21c4   :  { %v3210_v2 = vpack.c.bf16 %v3208_v61, %v3208_v61  ;;  %v3228_v3 = vunpack.c.l.b16 %v3209_v27 }
0x21c6   :  { %v3229_v52 = vunpack.c.l.b16 %v3210_v2 }
0x21c8   :  { %v3230_v4 = vrot.slane %v3229_v52, 7 }
0x21ca   :  { %v3232_v5 = vsel %vm3231_vm8, %v3230_v4, %v3228_v3 }
0x21cb   :  { %v3233_v6 = vpack.c.b16 %v3232_v5, %v3232_v5 }
0x21cd   :  { %3860 = vmatmul.mubr.msk.bf16.vlgmr.msra.gmra.mrb[88].mxu1 %vm111_vm0, %v3233_v6 }
0x22a0   :  { %v3295_v9 = vpop.f32.mrb[88].mxu1 }
0x22a1   :  { %v3296_v10 = vadd.f32 %v3506_v8, %v3295_v9  ;;  %v3861_v11 = vpop.f32.mrb[89].mxu1 }
0x22a2   :  { %v3298_v53 = vpop.f32.mrb[90].mxu1 }
0x22a3   :  { %3301 = vst [vmem:[#allocation6] sm:$0x3] %v3296_v10  ;;  %v3862_v31 = vpop.f32.mrb[91].mxu1 }
0x22a4   :  { %4101 = shalt.err (!%p4098_p12)
}
0x22a5   :  { %s4102_s17 = scalar_lea.hbm %s5012_s18, 32 }
0x22a6   :  { %p4103_p13 = scmp.ne.s32.totalorder %s5012_s18, %s4102_s17  ;;  %p4106_p0 = scmp.lt.u32.totalorder %s4102_s17, %s5012_s18 }
0x22a8   :  { %p4108_p1 = pnand %p4106_p0, %p4103_p13 }
0x22aa   :  { %4111 = shalt.err (!%p4108_p1)
}
0x22ab   :  { %3311 = dma.vmem_to_hbm [thread:$0]  %s3309_s6, 32, %s5012_s18, [#allocation5]  }
0x22ac   :  { %4114 = dma.done.wait [#allocation5], 32  }
0x22ad   :  { %4115 = vsyncadd [#allocation5], 4294967264 }
0x22ae   :  { %3315 = vsyncpa [#allocation4], 1 }
0x22af   :  { %3316 = vsyncpa [#allocation5], 1 }

</bundles_post_ra>
